<compile_context>
chip_gen: v7x
topology: tpu7x:2x2x1
jax: 0.10.0
libtpu: 0.0.40
codegen_flags: <defaults>
</compile_context>

<pallas_src>
import math

import jax
import jax.numpy as jnp
from jax.experimental import pallas as pl
from jax.experimental.pallas import tpu as pltpu

D_ENC = 768    # projector hidden dim   (Linear(768, 768, bias=False))
D_PROJ = 512   # projector output dim   (Linear(768, 512, bias=False))


def _vmem_spec():
    return pl.BlockSpec(memory_space=pltpu.MemorySpace.VMEM)


# ------------------------------ fused kernel -------------------------------

def fused_clip_si_kernel(x_ref, w1_ref, w2_hbm, o_ref, w2_vmem, w2_sem):
    """Entire CLIP_SI forward in one kernel (no grid).

    x_ref   : (3B, 768)   bf16  [flat(si_global); flat(si_local); flat(stv)]
    w1_ref  : (768, 2304) bf16  [We@W1_si | We@W1_sv | We@W1_T] (encoder folded)
    w2_hbm  : (768, 1536) bf16  [W2_si | W2_sv | W2_T]  (ANY space, manual DMA)
    o_ref   : (1, 128)    f32   total loss broadcast across a lane-dense row
    w2_vmem : (768, 1536) bf16  VMEM landing buffer for w2_hbm
    w2_sem  : DMA semaphore
    """
    three_b = x_ref.shape[0]
    b = three_b // 3

    # Start streaming the layer-2 weight slab while the layer-1 matmul runs.
    w2_copy = pltpu.make_async_copy(w2_hbm, w2_vmem, w2_sem)
    w2_copy.start()

    # --- fused layer-1 (stand-in encoder already folded into the weights):
    #     h = relu(x_all @ [We@W1_si | We@W1_sv | We@W1_T])        (3B, 2304)
    h = jnp.maximum(
        jnp.dot(x_ref[...], w1_ref[...], preferred_element_type=jnp.float32),
        0.0).astype(jnp.bfloat16)

    w2_copy.wait()
    w2 = w2_vmem[...]

    # --- layer-2: three small MXU passes from static lane-aligned slices ----
    # si path (si_global + si_local share projector_si weights -> 2B rows)
    feat_si = jnp.dot(h[: 2 * b, :D_ENC], w2[:, :D_PROJ],
                      preferred_element_type=jnp.float32)             # (2B,512)
    stv_features = jnp.dot(h[2 * b:, D_ENC:2 * D_ENC],
                           w2[:, D_PROJ:2 * D_PROJ],
                           preferred_element_type=jnp.float32)        # (B, 512)
    # NB: intentionally reproduces the reference bug: projector_TEXT is applied
    # to the stv encoding, not the text encoding.
    text_features = jnp.dot(h[2 * b:, 2 * D_ENC:], w2[:, 2 * D_PROJ:],
                            preferred_element_type=jnp.float32)       # (B, 512)

    # --- both contrastive double-softmax losses from ONE score matmul -------
    # rows: [si_global_features; si_local_features]
    # cols: [text_features     ; stv_features     ]
    # pair 1 lives in the (0,0) BxB block, pair 2 in the (1,1) block; the
    # cross-pair blocks are masked out of the softmax normalizations.
    c_feats = jnp.concatenate([text_features, stv_features], axis=0)  # (2B,512)
    score = jax.lax.dot_general(
        feat_si, c_feats, (((1,), (1,)), ((), ())),
        preferred_element_type=jnp.float32)                           # (2B,2B)

    rows = jax.lax.broadcasted_iota(jnp.int32, score.shape, 0)
    cols = jax.lax.broadcasted_iota(jnp.int32, score.shape, 1)
    same_block = (rows < b) == (cols < b)
    diag = (rows == cols).astype(jnp.float32)
    masked = jnp.where(same_block, score, -1e30)   # kill cross-pair entries

    # log-softmax diagonal directly: -sum(diag - logsumexp). Equals the
    # reference -sum(log(softmax_diag + 1e-10)) to f32 precision (the 1e-10
    # clamp is numerically irrelevant; this form is more stable).
    diag_col = jnp.sum(score * diag, axis=1, keepdims=True)           # (2B, 1)
    m1 = jnp.max(masked, axis=1, keepdims=True)
    lse1 = m1 + jnp.log(jnp.sum(jnp.exp(masked - m1), axis=1, keepdims=True))
    loss_dim1 = -jnp.sum(diag_col - lse1, axis=0, keepdims=True)      # (1, 1)

    diag_row = jnp.sum(score * diag, axis=0, keepdims=True)           # (1, 2B)
    m0 = jnp.max(masked, axis=0, keepdims=True)
    lse0 = m0 + jnp.log(jnp.sum(jnp.exp(masked - m0), axis=0, keepdims=True))
    loss_dim0 = -jnp.sum(diag_row - lse0, axis=1, keepdims=True)      # (1, 1)

    total = loss_dim1 + loss_dim0   # == loss_1 + loss_2 + loss2_1 + loss2_2

    # lane-dense store: broadcast the scalar across the full 128-lane row.
    o_ref[...] = jnp.broadcast_to(total, o_ref.shape)


def fused_forward(x_all, w1_all, w2_all):
    out = pl.pallas_call(
        fused_clip_si_kernel,
        out_shape=jax.ShapeDtypeStruct((1, 128), jnp.float32),
        in_specs=[
            _vmem_spec(),                          # x_all  (auto HBM->VMEM)
            _vmem_spec(),                          # layer-1 weight slab
            pl.BlockSpec(memory_space=pl.ANY),     # layer-2 slab: manual DMA
        ],
        out_specs=_vmem_spec(),
        scratch_shapes=[
            pltpu.VMEM((D_ENC, 3 * D_PROJ), jnp.bfloat16),
            pltpu.SemaphoreType.DMA,
        ],
        compiler_params=pltpu.CompilerParams(
            vmem_limit_bytes=16 * 1024 * 1024),
    )(x_all, w1_all, w2_all)
    return out[0, 0]


# ------------------------------- parameters --------------------------------

def _xavier_normal_t(key, fan_out, fan_in):
    # matches torch.nn.init.xavier_normal_ on a (fan_out, fan_in) Linear
    # weight; returned transposed (fan_in, fan_out) so y = x @ W_t == x @ W.T
    std = math.sqrt(2.0 / (fan_in + fan_out))
    w = std * jax.random.normal(key, (fan_out, fan_in), dtype=jnp.float32)
    return jnp.transpose(w)


def init_params(key, vocab=100):
    keys = jax.random.split(key, 8)
    # stand-in image "encoder": pixel-flatten(768) -> 768 bias-free linear,
    # stored pre-transposed (in, out)
    we_t = (jax.random.normal(keys[0], (D_ENC, D_ENC), jnp.float32)
            / math.sqrt(D_ENC))
    w1_si = _xavier_normal_t(keys[1], D_ENC, D_ENC)      # (768, 768)
    w2_si = _xavier_normal_t(keys[2], D_PROJ, D_ENC)     # (768, 512)
    w1_sv = _xavier_normal_t(keys[3], D_ENC, D_ENC)
    w2_sv = _xavier_normal_t(keys[4], D_PROJ, D_ENC)
    w1_t = _xavier_normal_t(keys[5], D_ENC, D_ENC)
    w2_t = _xavier_normal_t(keys[6], D_PROJ, D_ENC)

    # Fold the bias-free linear encoder into the projector first layers (valid:
    # no nonlinearity between them), then fuse the per-path weights into slabs.
    # f32 math at init, bf16 storage; f32 accumulation in-kernel.
    # TODO(synk): re-derive once a real (nonlinear) ViT encoder replaces the
    # stand-in linear - the fold is only valid for a linear encoder.
    w1_all = jnp.concatenate(
        [we_t @ w1_si, we_t @ w1_sv, we_t @ w1_t], axis=1)   # (768, 2304)
    w2_all = jnp.concatenate([w2_si, w2_sv, w2_t], axis=1)   # (768, 1536)
    return {
        "W1_all": w1_all.astype(jnp.bfloat16),
        "W2_all": w2_all.astype(jnp.bfloat16),
        # stand-in text embedding table (the text-encoder result is dead code
        # in the original forward; kept only for structural parity).
        "text_embed": (jax.random.normal(keys[7], (vocab, D_ENC), jnp.float32)
                       / math.sqrt(D_ENC)),
    }


# ----------------------------- CLIP_SI forward ------------------------------

@jax.jit
def clip_si_forward(params, si_global, text_global, si_local, stv):
    b = si_global.shape[0]
    flat = lambda img: img.reshape(b, -1).astype(jnp.bfloat16)  # NCHW -> (B,768)

    # stack the three projector inputs: the fused kernel runs one layer-1 pass
    x_all = jnp.concatenate([flat(si_global), flat(si_local), flat(stv)], axis=0)

    # stand-in text encoder; its output is unused in the original forward
    # (the reference applies projector_TEXT to stv) -> dead code, DCE'd by XLA.
    _text_enc = jnp.take(params["text_embed"], text_global, axis=0).mean(axis=1)
    del _text_enc

    return fused_forward(x_all, params["W1_all"], params["W2_all"])


# ------------------------------------ main ----------------------------------

if __name__ == "__main__":
    key = jax.random.PRNGKey(0)
    k_param, k1, k2, k3, k4 = jax.random.split(key, 5)

    params = init_params(k_param)

    B, C, H, W = 8, 3, 16, 16            # C*H*W = 768 = encoder input dim
    SEQ, VOCAB = 8, 100

    si_global = jax.random.normal(k1, (B, C, H, W), dtype=jnp.float32)
    si_local = jax.random.normal(k2, (B, C, H, W), dtype=jnp.float32)
    stv = jax.random.normal(k3, (B, C, H, W), dtype=jnp.float32)
    text_global = jax.random.randint(k4, (B, SEQ), 0, VOCAB, dtype=jnp.int32)

    total_loss = clip_si_forward(params, si_global, text_global, si_local, stv)
    jax.block_until_ready(total_loss)

    assert total_loss.shape == () and jnp.isfinite(total_loss)
    print("KERNEL_OK")
</pallas_src>

<mosaic_0001>
module attributes {stable_mosaic.version = 11 : i64} {
  func.func @fused_clip_si_kernel(%arg0: memref<24x768xbf16, #tpu.memory_space<vmem>>, %arg1: memref<768x2304xbf16, #tpu.memory_space<vmem>>, %arg2: memref<768x1536xbf16, #tpu.memory_space<any>>, %arg3: memref<1x128xf32, #tpu.memory_space<vmem>>, %arg4: memref<768x1536xbf16, #tpu.memory_space<vmem>>, %arg5: memref<!tpu.dma_semaphore, #tpu.memory_space<semaphore_mem>>) attributes {dimension_semantics = [], scalar_prefetch = 0 : i64, scratch_operands = 2 : i64, tpu.core_type = #tpu.core_type<tc>} {
    tpu.enqueue_dma source(%arg2 : memref<768x1536xbf16, #tpu.memory_space<any>>) target(%arg4 : memref<768x1536xbf16, #tpu.memory_space<vmem>>) target_semaphore(%arg5 : memref<!tpu.dma_semaphore, #tpu.memory_space<semaphore_mem>>)
    %c0 = arith.constant 0 : index
    %c0_0 = arith.constant 0 : index
    %0 = vector.load %arg0[%c0, %c0_0] : memref<24x768xbf16, #tpu.memory_space<vmem>>, vector<24x768xbf16>
    %c0_1 = arith.constant 0 : index
    %c0_2 = arith.constant 0 : index
    %1 = vector.load %arg1[%c0_1, %c0_2] : memref<768x2304xbf16, #tpu.memory_space<vmem>>, vector<768x2304xbf16>
    %cst = arith.constant dense<0.000000e+00> : vector<24x2304xf32>
    %2 = tpu.matmul %0, %1, %cst {dimension_numbers = #tpu.dot_dimension_numbers<[1], [0], [0], [1], [0, 0, 1, 1], [], []>} : vector<24x768xbf16>, vector<768x2304xbf16>, vector<24x2304xf32> -> vector<24x2304xf32>
    %cst_3 = arith.constant 0.000000e+00 : f32
    %3 = vector.broadcast %cst_3 : f32 to vector<24x2304xf32>
    %4 = arith.maximumf %2, %3 : vector<24x2304xf32>
    %5 = arith.truncf %4 : vector<24x2304xf32> to vector<24x2304xbf16>
    tpu.wait_dma2 semaphore(%arg5 : memref<!tpu.dma_semaphore, #tpu.memory_space<semaphore_mem>>) src(%arg2 : memref<768x1536xbf16, #tpu.memory_space<any>>) dst(%arg4 : memref<768x1536xbf16, #tpu.memory_space<vmem>>)
    %c0_4 = arith.constant 0 : index
    %c0_5 = arith.constant 0 : index
    %6 = vector.load %arg4[%c0_4, %c0_5] : memref<768x1536xbf16, #tpu.memory_space<vmem>>, vector<768x1536xbf16>
    %7 = vector.extract_strided_slice %5 {offsets = [0, 0], sizes = [16, 768], strides = [1, 1]} : vector<24x2304xbf16> to vector<16x768xbf16>
    %8 = vector.extract_strided_slice %6 {offsets = [0, 0], sizes = [768, 512], strides = [1, 1]} : vector<768x1536xbf16> to vector<768x512xbf16>
    %cst_6 = arith.constant dense<0.000000e+00> : vector<16x512xf32>
    %9 = tpu.matmul %7, %8, %cst_6 {dimension_numbers = #tpu.dot_dimension_numbers<[1], [0], [0], [1], [0, 0, 1, 1], [], []>} : vector<16x768xbf16>, vector<768x512xbf16>, vector<16x512xf32> -> vector<16x512xf32>
    %10 = vector.extract_strided_slice %5 {offsets = [16, 768], sizes = [8, 768], strides = [1, 1]} : vector<24x2304xbf16> to vector<8x768xbf16>
    %11 = vector.extract_strided_slice %6 {offsets = [0, 512], sizes = [768, 512], strides = [1, 1]} : vector<768x1536xbf16> to vector<768x512xbf16>
    %cst_7 = arith.constant dense<0.000000e+00> : vector<8x512xf32>
    %12 = tpu.matmul %10, %11, %cst_7 {dimension_numbers = #tpu.dot_dimension_numbers<[1], [0], [0], [1], [0, 0, 1, 1], [], []>} : vector<8x768xbf16>, vector<768x512xbf16>, vector<8x512xf32> -> vector<8x512xf32>
    %13 = vector.extract_strided_slice %5 {offsets = [16, 1536], sizes = [8, 768], strides = [1, 1]} : vector<24x2304xbf16> to vector<8x768xbf16>
    %14 = vector.extract_strided_slice %6 {offsets = [0, 1024], sizes = [768, 512], strides = [1, 1]} : vector<768x1536xbf16> to vector<768x512xbf16>
    %cst_8 = arith.constant dense<0.000000e+00> : vector<8x512xf32>
    %15 = tpu.matmul %13, %14, %cst_8 {dimension_numbers = #tpu.dot_dimension_numbers<[1], [0], [0], [1], [0, 0, 1, 1], [], []>} : vector<8x768xbf16>, vector<768x512xbf16>, vector<8x512xf32> -> vector<8x512xf32>
    %16 = tpu.concatenate %15, %12 in 0 : vector<8x512xf32>, vector<8x512xf32> -> vector<16x512xf32>
    %cst_9 = arith.constant dense<0.000000e+00> : vector<16x16xf32>
    %17 = tpu.matmul %9, %16, %cst_9 {dimension_numbers = #tpu.dot_dimension_numbers<[1], [1], [0], [0], [0, 0, 1, 0], [], []>} : vector<16x512xf32>, vector<16x512xf32>, vector<16x16xf32> -> vector<16x16xf32>
    %18 = tpu.iota {dimensions = array<i32: 0>} : vector<16x16xi32>
    %19 = tpu.iota {dimensions = array<i32: 1>} : vector<16x16xi32>
    %c8_i32 = arith.constant 8 : i32
    %20 = vector.broadcast %c8_i32 : i32 to vector<16x16xi32>
    %21 = arith.cmpi slt, %18, %20 : vector<16x16xi32>
    %c8_i32_10 = arith.constant 8 : i32
    %22 = vector.broadcast %c8_i32_10 : i32 to vector<16x16xi32>
    %23 = arith.cmpi slt, %19, %22 : vector<16x16xi32>
    %24 = arith.xori %21, %23 : vector<16x16xi1>
    %cst_11 = arith.constant dense<true> : vector<16x16xi1>
    %25 = arith.xori %24, %cst_11 : vector<16x16xi1>
    %26 = arith.cmpi eq, %18, %19 : vector<16x16xi32>
    %27 = arith.extui %26 : vector<16x16xi1> to vector<16x16xi32>
    %28 = arith.sitofp %27 : vector<16x16xi32> to vector<16x16xf32>
    %cst_12 = arith.constant -1.000000e+30 : f32
    %29 = vector.broadcast %cst_12 : f32 to vector<16x16xf32>
    %30 = arith.select %25, %17, %29 : vector<16x16xi1>, vector<16x16xf32>
    %31 = arith.mulf %17, %28 : vector<16x16xf32>
    %cst_13 = arith.constant dense<0.000000e+00> : vector<16xf32>
    %32 = vector.multi_reduction <add>, %31, %cst_13 [1] : vector<16x16xf32> to vector<16xf32>
    %33 = vector.shape_cast %32 : vector<16xf32> to vector<16x1xf32>
    %cst_14 = arith.constant dense<0xFF800000> : vector<16xf32>
    %34 = vector.multi_reduction <maximumf>, %30, %cst_14 [1] : vector<16x16xf32> to vector<16xf32>
    %35 = vector.shape_cast %34 : vector<16xf32> to vector<16x1xf32>
    %36 = vector.broadcast %35 : vector<16x1xf32> to vector<16x16xf32>
    %37 = arith.subf %30, %36 : vector<16x16xf32>
    %38 = math.exp %37 : vector<16x16xf32>
    %cst_15 = arith.constant dense<0.000000e+00> : vector<16xf32>
    %39 = vector.multi_reduction <add>, %38, %cst_15 [1] : vector<16x16xf32> to vector<16xf32>
    %40 = vector.shape_cast %39 : vector<16xf32> to vector<16x1xf32>
    %41 = math.log %40 : vector<16x1xf32>
    %42 = arith.addf %35, %41 : vector<16x1xf32>
    %43 = arith.subf %33, %42 : vector<16x1xf32>
    %cst_16 = arith.constant dense<0.000000e+00> : vector<1xf32>
    %44 = vector.multi_reduction <add>, %43, %cst_16 [0] : vector<16x1xf32> to vector<1xf32>
    %45 = vector.shape_cast %44 : vector<1xf32> to vector<1x1xf32>
    %cst_17 = arith.constant 0.000000e+00 : f32
    %46 = vector.broadcast %cst_17 : f32 to vector<1x1xf32>
    %47 = arith.subf %46, %45 : vector<1x1xf32>
    %48 = arith.mulf %17, %28 : vector<16x16xf32>
    %cst_18 = arith.constant dense<0.000000e+00> : vector<16xf32>
    %49 = vector.multi_reduction <add>, %48, %cst_18 [0] : vector<16x16xf32> to vector<16xf32>
    %50 = vector.shape_cast %49 : vector<16xf32> to vector<1x16xf32>
    %cst_19 = arith.constant dense<0xFF800000> : vector<16xf32>
    %51 = vector.multi_reduction <maximumf>, %30, %cst_19 [0] : vector<16x16xf32> to vector<16xf32>
    %52 = vector.shape_cast %51 : vector<16xf32> to vector<1x16xf32>
    %53 = vector.broadcast %52 : vector<1x16xf32> to vector<16x16xf32>
    %54 = arith.subf %30, %53 : vector<16x16xf32>
    %55 = math.exp %54 : vector<16x16xf32>
    %cst_20 = arith.constant dense<0.000000e+00> : vector<16xf32>
    %56 = vector.multi_reduction <add>, %55, %cst_20 [0] : vector<16x16xf32> to vector<16xf32>
    %57 = vector.shape_cast %56 : vector<16xf32> to vector<1x16xf32>
    %58 = math.log %57 : vector<1x16xf32>
    %59 = arith.addf %52, %58 : vector<1x16xf32>
    %60 = arith.subf %50, %59 : vector<1x16xf32>
    %cst_21 = arith.constant dense<0.000000e+00> : vector<1xf32>
    %61 = vector.multi_reduction <add>, %60, %cst_21 [1] : vector<1x16xf32> to vector<1xf32>
    %62 = vector.shape_cast %61 : vector<1xf32> to vector<1x1xf32>
    %cst_22 = arith.constant 0.000000e+00 : f32
    %63 = vector.broadcast %cst_22 : f32 to vector<1x1xf32>
    %64 = arith.subf %63, %62 : vector<1x1xf32>
    %65 = arith.addf %47, %64 : vector<1x1xf32>
    %66 = vector.shape_cast %65 : vector<1x1xf32> to vector<1x1xf32>
    %67 = vector.broadcast %66 : vector<1x1xf32> to vector<1x128xf32>
    %c0_23 = arith.constant 0 : index
    %c0_24 = arith.constant 0 : index
    %68 = vector.load %arg3[%c0_23, %c0_24] : memref<1x128xf32, #tpu.memory_space<vmem>>, vector<1x128xf32>
    tpu.vector_store %arg3[%c0_23, %c0_24], %67 {strides = array<i32>} : memref<1x128xf32, #tpu.memory_space<vmem>>, vector<1x128xf32>,
    return
  }
}

</mosaic_0001>

<bundles_post_ra>
// kernel: clip_si_forward.1
= control target key start
LH: loop header
LB: loop body
LE: loop exit
PB: predicated region body
PF: predicated region fallthrough
CT: control target
= control target key end

     0   :  { %8 = vsyncpa [#allocation5], 0  ;;  %s11086_s0 = inlined_call_operand.vmem [shape: bf16[24,768], index: 0, kind: input, shape index: {}]   ;;  %s11087_s1 = inlined_call_operand.hbm [shape: bf16[768,2304], index: 1, kind: input, shape index: {}]   ;;  %s11088_s2 = inlined_call_operand.hbm [shape: bf16[768,1536], index: 2, kind: input, shape index: {}]   ;;  %s11089_s3 = inlined_call_operand.hbm [shape: f32[1,128], index: 3, kind: output, shape index: {}]  }
   0x1   :  { %9 = vsyncpa [#allocation6], 0  ;;  %s10664_s12 = smov [#allocation4]   ;;  %s10614_s16 = scalar_lea.hbm %s11087_s1, 110592 }
   0x2   :  { %s17_s13 = sshll.u32 %s10664_s12, 4  ;;  %p10615_p0 = scmp.ne.s32.totalorder %s11087_s1, %s10614_s16  ;;  %s18_s13 = int_to_ptr.vmem [resolvable:$true] %s17_s13 }
   0x3   :  { %p10618_p1 = scmp.lt.u32.totalorder %s10614_s16, %s11087_s1 }
   0x5   :  { %p10620_p2 = pnand %p10618_p1, %p10615_p0 }
   0x7   :  { %10623 = shalt.err (!%p10620_p2)
}
   0x8   :  { %s10624_s21 = scalar_lea.vmem %s18_s13, 110592  ;;  %p10629_p4 = scmp.lt.s32.totalorder %s18_s13, %s18_s13 }
   0x9   :  { %p10625_p3 = scmp.ne.s32.totalorder %s18_s13, %s10624_s21  ;;  %p10630_p5 = scmp.lt.s32.totalorder %s10624_s21, %s10624_s21 }
   0xb   :  { %p10631_p6 = por %p10630_p5, %p10629_p4 }
   0xd   :  { %p10632_p7 = pnand %p10631_p6, %p10625_p3 }
   0xf   :  { %10635 = shalt.err (!%p10632_p7)
}
  0x10   :  { %s10665_s22 = smov 1152   ;;  %s10666_s23 = smov 72  }
  0x11   :  { %23 = dma.hbm_to_vmem [thread:$0]  %s11087_s1, 110592, %s18_s13, [#allocation5], %s10665_s22, %s10665_s22, %s10666_s23  }
  0x12   :  { %10658 = dma.done.wait [#allocation5], 110592  }
  0x13   :  { %10659 = vsyncadd [#allocation5], 4294856704  ;;  %s31_s26 = sld [smem:[#allocation0]]   ;;  %s10667_s27 = smov 1536  }
  0x14   :  { %43 = sst [smem:[#allocation9]] %s10667_s27  ;;  %s10668_s28 = smov 12  }
  0x15   :  { %45 = sst [smem:[#allocation9 + $0x1]] %s10667_s27  ;;  %s10669_s29 = smov 64  }
  0x16   :  { %47 = sst [smem:[#allocation9 + $0x2]] %s10668_s28  ;;  %s10670_s30 = smov 128  }
  0x17   :  { %49 = sst [smem:[#allocation9 + $0x3]] %s10669_s29  ;;  %s10671_s4 = smov 2  }
  0x18   :  { %51 = sst [smem:[#allocation9 + $0x4]] %s10670_s30  ;;  %s10672_s6 = smov 768  }
  0x19   :  { %53 = sst [smem:[#allocation9 + $0x5]] %s10671_s4  ;;  %s8238_s5 = sshll.u32 %s31_s26, 26 }
  0x1a   :  { %55 = sst [smem:[#allocation9 + $0x6]] %s10672_s6  ;;  %s8239_s7 = sadd.s32 134217728, %s8238_s5 }
  0x1b   :  { %57 = sst [smem:[#allocation9 + $0x7]] %s10669_s29  ;;  %s10673_s1 = smov 4  }
  0x1c   :  { %59 = sst [smem:[#allocation9 + $0x8]] %s10673_s1  ;;  %s10674_s8 = smov [#allocation2]  }
  0x1d   :  { %s39_s9 = sshll.u32 %s10674_s8, 4  ;;  %s10675_s10 = smov [#allocation3]   ;;  %s40_s9 = int_to_ptr.vmem [resolvable:$true] %s39_s9 }
  0x1e   :  { %s10676_s11 = smov [#allocation8]  }
  0x1f   :  { %61 = dma.general %s11088_s2, 73728, %s40_s9, %s10675_s10, %s10676_s11, [#allocation9], %s8239_s7, 0  }
  0x20   :  { %v9267_v0 = vld [vmem:[#allocation4 + $0x4] ss:$72 sps:$4 sm:$0xff]   ;;  %v9271_v2 = vld [vmem:[#allocation4] ss:$72 sps:$4 sm:$0xff]   ;;  %v9273_v4 = vld [vmem:[#allocation4 + $0x94] ss:$72 sps:$4 sm:$0xff]  }
  0x21   :  { %v9269_v1 = vld [vmem:[#allocation4 + $0x904] ss:$72 sps:$4 sm:$0xff]   ;;  %5306 = vmatprep.subr.bf16.mxu1 %v9267_v0  ;;  %v9272_v3 = vld [vmem:[#allocation4 + $0x900] ss:$72 sps:$4 sm:$0xff]   ;;  %v9275_v5 = vld [vmem:[#allocation4 + $0x994] ss:$72 sps:$4 sm:$0xff]  }
  0x22   :  { %5355 = vmatprep.subr.bf16.mxu0 %v9269_v1  ;;  %5307 = vmatpush1.bf16.msra.mxu1 %v9271_v2  ;;  %v9277_v6 = vld [vmem:[#allocation4 + $0x90] ss:$72 sps:$4 sm:$0xff]   ;;  %v9279_v8 = vld [vmem:[#allocation4 + $0x124] ss:$72 sps:$4 sm:$0xff]   ;;  %v9283_v10 = vld [vmem:[#allocation4 + $0x120] ss:$72 sps:$4 sm:$0xff]  }
  0x23   :  { %5356 = vmatpush1.bf16.msra.mxu0 %v9272_v3  ;;  %5308 = vmatprep.subr.bf16.mxu1 %v9273_v4  ;;  %v9278_v7 = vld [vmem:[#allocation4 + $0x990] ss:$72 sps:$4 sm:$0xff]   ;;  %v9281_v9 = vld [vmem:[#allocation4 + $0xa24] ss:$72 sps:$4 sm:$0xff]   ;;  %v9284_v11 = vld [vmem:[#allocation4 + $0xa20] ss:$72 sps:$4 sm:$0xff]  }
  0x24   :  { %5357 = vmatprep.subr.bf16.mxu0 %v9275_v5  ;;  %v9285_v12 = vld [vmem:[#allocation4 + $0x1b4] ss:$72 sps:$4 sm:$0xff]   ;;  %v9289_v14 = vld [vmem:[#allocation4 + $0x1b0] ss:$72 sps:$4 sm:$0xff]   ;;  %v9291_v16 = vld [vmem:[#allocation4 + $0x244] ss:$72 sps:$4 sm:$0xff]  }
  0x25   :  { %v9287_v13 = vld [vmem:[#allocation4 + $0xab4] ss:$72 sps:$4 sm:$0xff]   ;;  %v9290_v15 = vld [vmem:[#allocation4 + $0xab0] ss:$72 sps:$4 sm:$0xff]   ;;  %v9293_v17 = vld [vmem:[#allocation4 + $0xb44] ss:$72 sps:$4 sm:$0xff]  }
  0x26   :  { %5309 = vmatpush1.bf16.msra.mxu1 %v9277_v6  ;;  %v9295_v18 = vld [vmem:[#allocation4 + $0x240] ss:$72 sps:$4 sm:$0xff]   ;;  %v9297_v20 = vld [vmem:[#allocation4 + $0x2d4] ss:$72 sps:$4 sm:$0xff]   ;;  %v9301_v22 = vld [vmem:[#allocation4 + $0x2d0] ss:$72 sps:$4 sm:$0xff]  }
  0x27   :  { %5358 = vmatpush1.bf16.msra.mxu0 %v9278_v7  ;;  %5310 = vmatprep.subr.bf16.mxu1 %v9279_v8  ;;  %v9296_v19 = vld [vmem:[#allocation4 + $0xb40] ss:$72 sps:$4 sm:$0xff]   ;;  %v9299_v21 = vld [vmem:[#allocation4 + $0xbd4] ss:$72 sps:$4 sm:$0xff]   ;;  %v9302_v23 = vld [vmem:[#allocation4 + $0xbd0] ss:$72 sps:$4 sm:$0xff]  }
  0x28   :  { %5359 = vmatprep.subr.bf16.mxu0 %v9281_v9  ;;  %v9303_v24 = vld [vmem:[#allocation4 + $0x364] ss:$72 sps:$4 sm:$0xff]   ;;  %v9307_v26 = vld [vmem:[#allocation4 + $0x360] ss:$72 sps:$4 sm:$0xff]   ;;  %v9309_v28 = vld [vmem:[#allocation4 + $0x3f4] ss:$72 sps:$4 sm:$0xff]  }
  0x29   :  { %v9305_v25 = vld [vmem:[#allocation4 + $0xc64] ss:$72 sps:$4 sm:$0xff]   ;;  %v9308_v27 = vld [vmem:[#allocation4 + $0xc60] ss:$72 sps:$4 sm:$0xff]   ;;  %v9311_v29 = vld [vmem:[#allocation4 + $0xcf4] ss:$72 sps:$4 sm:$0xff]  }
  0x2a   :  { %5311 = vmatpush1.bf16.msra.mxu1 %v9283_v10  ;;  %v9313_v30 = vld [vmem:[#allocation4 + $0x3f0] ss:$72 sps:$4 sm:$0xff]   ;;  %v9315_v32 = vld [vmem:[#allocation4 + $0x484] ss:$72 sps:$4 sm:$0xff]   ;;  %v9319_v34 = vld [vmem:[#allocation4 + $0x480] ss:$72 sps:$4 sm:$0xff]  }
  0x2b   :  { %5360 = vmatpush1.bf16.msra.mxu0 %v9284_v11  ;;  %5312 = vmatprep.subr.bf16.mxu1 %v9285_v12  ;;  %v9314_v31 = vld [vmem:[#allocation4 + $0xcf0] ss:$72 sps:$4 sm:$0xff]   ;;  %v9317_v33 = vld [vmem:[#allocation4 + $0xd84] ss:$72 sps:$4 sm:$0xff]   ;;  %v9320_v35 = vld [vmem:[#allocation4 + $0xd80] ss:$72 sps:$4 sm:$0xff]  }
  0x2c   :  { %5361 = vmatprep.subr.bf16.mxu0 %v9287_v13  ;;  %v9321_v36 = vld [vmem:[#allocation4 + $0x514] ss:$72 sps:$4 sm:$0xff]   ;;  %v9325_v38 = vld [vmem:[#allocation4 + $0x510] ss:$72 sps:$4 sm:$0xff]   ;;  %v9327_v40 = vld [vmem:[#allocation4 + $0x5a4] ss:$72 sps:$4 sm:$0xff]  }
  0x2d   :  { %v9323_v37 = vld [vmem:[#allocation4 + $0xe14] ss:$72 sps:$4 sm:$0xff]   ;;  %v9326_v39 = vld [vmem:[#allocation4 + $0xe10] ss:$72 sps:$4 sm:$0xff]   ;;  %v9329_v41 = vld [vmem:[#allocation4 + $0xea4] ss:$72 sps:$4 sm:$0xff]  }
  0x2e   :  { %5313 = vmatpush1.bf16.msra.mxu1 %v9289_v14  ;;  %v9331_v42 = vld [vmem:[#allocation4 + $0x5a0] ss:$72 sps:$4 sm:$0xff]   ;;  %v9333_v44 = vld [vmem:[#allocation4 + $0x634] ss:$72 sps:$4 sm:$0xff]   ;;  %v9337_v46 = vld [vmem:[#allocation4 + $0x630] ss:$72 sps:$4 sm:$0xff]  }
  0x2f   :  { %5362 = vmatpush1.bf16.msra.mxu0 %v9290_v15  ;;  %5314 = vmatprep.subr.bf16.mxu1 %v9291_v16  ;;  %v9332_v43 = vld [vmem:[#allocation4 + $0xea0] ss:$72 sps:$4 sm:$0xff]   ;;  %v9335_v45 = vld [vmem:[#allocation4 + $0xf34] ss:$72 sps:$4 sm:$0xff]   ;;  %v9338_v47 = vld [vmem:[#allocation4 + $0xf30] ss:$72 sps:$4 sm:$0xff]  }
  0x30   :  { %5363 = vmatprep.subr.bf16.mxu0 %v9293_v17  ;;  %v10718_v48 = vld [vmem:[%s11086_s0 + $0x4] ss:$24 sps:$4 sm:$0xff]   ;;  %v9343_v52 = vld [vmem:[#allocation4 + $0x6c0] ss:$72 sps:$4 sm:$0xff]   ;;  %v9349_v56 = vld [vmem:[#allocation4 + $0x750] ss:$72 sps:$4 sm:$0xff]  }
  0x31   :  { %v10723_v49 = vld [vmem:[%s11086_s0 + $0xc] ss:$24 sps:$4 sm:$0xff]   ;;  %5338 = vmatprep.mubr.bf16.mxu1 %v10718_v48  ;;  %v9344_v53 = vld [vmem:[#allocation4 + $0xfc0] ss:$72 sps:$4 sm:$0xff]   ;;  %v9345_v54 = vld [vmem:[#allocation4 + $0x754] ss:$72 sps:$4 sm:$0xff]  }
  0x32   :  { %5315 = vmatpush1.bf16.msra.mxu1 %v9295_v18  ;;  %v9339_v50 = vld [vmem:[#allocation4 + $0x6c4] ss:$72 sps:$4 sm:$0xff]   ;;  %5387 = vmatprep.mubr.bf16.mxu0 %v10723_v49  ;;  %v9347_v55 = vld [vmem:[#allocation4 + $0x1054] ss:$72 sps:$4 sm:$0xff]   ;;  %v9350_v57 = vld [vmem:[#allocation4 + $0x1050] ss:$72 sps:$4 sm:$0xff]  }
  0x33   :  { %5364 = vmatpush1.bf16.msra.mxu0 %v9296_v19  ;;  %5316 = vmatprep.subr.bf16.mxu1 %v9297_v20  ;;  %v9341_v51 = vld [vmem:[#allocation4 + $0xfc4] ss:$72 sps:$4 sm:$0xff]   ;;  %v9355_v60 = vld [vmem:[#allocation4 + $0x7e0] ss:$72 sps:$4 sm:$0xff]   ;;  %v9357_v62 = vld [vmem:[#allocation4 + $0x874] ss:$72 sps:$4 sm:$0xff]  }
  0x34   :  { %5365 = vmatprep.subr.bf16.mxu0 %v9299_v21  ;;  %v9351_v58 = vld [vmem:[#allocation4 + $0x7e4] ss:$72 sps:$4 sm:$0xff]   ;;  %v9356_v61 = vld [vmem:[#allocation4 + $0x10e0] ss:$72 sps:$4 sm:$0xff]   ;;  %v9359_v63 = vld [vmem:[#allocation4 + $0x1174] ss:$72 sps:$4 sm:$0xff]  }
  0x35   :  { %v9353_v59 = vld [vmem:[#allocation4 + $0x10e4] ss:$72 sps:$4 sm:$0xff]   ;;  %v9361_v0 = vld [vmem:[#allocation4 + $0x870] ss:$72 sps:$4 sm:$0xff]   ;;  %v9367_v4 = vld [vmem:[#allocation4 + $0x1200] ss:$72 sps:$4 sm:$0xff]  }
  0x36   :  { %5317 = vmatpush1.bf16.msra.mxu1 %v9301_v22  ;;  %v9362_v1 = vld [vmem:[#allocation4 + $0x1170] ss:$72 sps:$4 sm:$0xff]   ;;  %v9369_v2 = vld [vmem:[#allocation4 + $0x1204] ss:$72 sps:$4 sm:$0xff]   ;;  %v10735_v7 = vld [vmem:[%s11086_s0 + $0x8] ss:$24 sps:$4 sm:$0xff]  }
  0x37   :  { %5366 = vmatpush1.bf16.msra.mxu0 %v9302_v23  ;;  %5318 = vmatprep.subr.bf16.mxu1 %v9303_v24  ;;  %v9372_v3 = vld [vmem:[#allocation4 + $0xc] ss:$72 sps:$4 sm:$0xff]   ;;  %v9370_v5 = vld [vmem:[#allocation4 + $0x8] ss:$72 sps:$4 sm:$0xff]   ;;  %v10730_v6 = vld [vmem:[%s11086_s0] ss:$24 sps:$4 sm:$0xff]  }
  0x38   :  { %5367 = vmatprep.subr.bf16.mxu0 %v9305_v25  ;;  %v9377_v8 = vld [vmem:[#allocation4 + $0x1294] ss:$72 sps:$4 sm:$0xff]   ;;  %v9375_v10 = vld [vmem:[#allocation4 + $0x1290] ss:$72 sps:$4 sm:$0xff]   ;;  %v9383_v12 = vld [vmem:[#allocation4 + $0x1324] ss:$72 sps:$4 sm:$0xff]  }
  0x39   :  { %v9380_v9 = vld [vmem:[#allocation4 + $0x9c] ss:$72 sps:$4 sm:$0xff]   ;;  %v9378_v11 = vld [vmem:[#allocation4 + $0x98] ss:$72 sps:$4 sm:$0xff]   ;;  %v9386_v13 = vld [vmem:[#allocation4 + $0x12c] ss:$72 sps:$4 sm:$0xff]  }
  0x3a   :  { %5319 = vmatpush1.bf16.msra.mxu1 %v9307_v26  ;;  %v9381_v14 = vld [vmem:[#allocation4 + $0x1320] ss:$72 sps:$4 sm:$0xff]   ;;  %v9389_v16 = vld [vmem:[#allocation4 + $0x13b4] ss:$72 sps:$4 sm:$0xff]   ;;  %v9387_v18 = vld [vmem:[#allocation4 + $0x13b0] ss:$72 sps:$4 sm:$0xff]  }
  0x3b   :  { %5368 = vmatpush1.bf16.msra.mxu0 %v9308_v27  ;;  %5320 = vmatprep.subr.bf16.mxu1 %v9309_v28  ;;  %v9384_v15 = vld [vmem:[#allocation4 + $0x128] ss:$72 sps:$4 sm:$0xff]   ;;  %v9392_v17 = vld [vmem:[#allocation4 + $0x1bc] ss:$72 sps:$4 sm:$0xff]   ;;  %v9390_v19 = vld [vmem:[#allocation4 + $0x1b8] ss:$72 sps:$4 sm:$0xff]  }
  0x3c   :  { %5369 = vmatprep.subr.bf16.mxu0 %v9311_v29  ;;  %v9395_v20 = vld [vmem:[#allocation4 + $0x1444] ss:$72 sps:$4 sm:$0xff]   ;;  %v9393_v22 = vld [vmem:[#allocation4 + $0x1440] ss:$72 sps:$4 sm:$0xff]   ;;  %v9401_v24 = vld [vmem:[#allocation4 + $0x14d4] ss:$72 sps:$4 sm:$0xff]  }
  0x3d   :  { %v9398_v21 = vld [vmem:[#allocation4 + $0x24c] ss:$72 sps:$4 sm:$0xff]   ;;  %v9396_v23 = vld [vmem:[#allocation4 + $0x248] ss:$72 sps:$4 sm:$0xff]   ;;  %v9404_v25 = vld [vmem:[#allocation4 + $0x2dc] ss:$72 sps:$4 sm:$0xff]  }
  0x3e   :  { %5321 = vmatpush1.bf16.msra.mxu1 %v9313_v30  ;;  %v69_v26 = vld [vmem:[%s11086_s0 + $0x38] sm:$0xff]  ;;  %v68_v29 = vld [vmem:[%s11086_s0 + $0x30] sm:$0xff] }
  0x3f   :  { %5370 = vmatpush1.bf16.msra.mxu0 %v9314_v31  ;;  %5322 = vmatprep.subr.bf16.mxu1 %v9315_v32  ;;  %v10742_v27 = vcombine.high %v69_v26, %v69_v26  ;;  %v10744_v28 = vcombine.low %v69_v26, %v69_v26  ;;  %v9399_v30 = vld [vmem:[#allocation4 + $0x14d0] ss:$72 sps:$4 sm:$0xff]   ;;  %v10749_v32 = vcombine.high %v68_v29, %v68_v29  ;;  %v9486_v26 = vld [vmem:[#allocation4 + $0xa2c] ss:$72 sps:$4 sm:$0xff]  }
  0x40   :  { %5371 = vmatprep.subr.bf16.mxu0 %v9317_v33  ;;  %v9402_v31 = vld [vmem:[#allocation4 + $0x2d8] ss:$72 sps:$4 sm:$0xff]   ;;  %v10751_v33 = vcombine.low %v68_v29, %v68_v29  ;;  %v9489_v29 = vld [vmem:[#allocation4 + $0x134] ss:$72 sps:$4 sm:$0xff]  }
  0x42   :  { %5323 = vmatpush1.bf16.msra.mxu1 %v9319_v34  ;;  %v9407_v34 = vld [vmem:[#allocation4 + $0x1564] ss:$72 sps:$4 sm:$0xff]  }
  0x43   :  { %5372 = vmatpush1.bf16.msra.mxu0 %v9320_v35  ;;  %5324 = vmatprep.subr.bf16.mxu1 %v9321_v36  ;;  %v9410_v35 = vld [vmem:[#allocation4 + $0x36c] ss:$72 sps:$4 sm:$0xff]   ;;  %v9405_v36 = vld [vmem:[#allocation4 + $0x1560] ss:$72 sps:$4 sm:$0xff]  }
  0x44   :  { %5373 = vmatprep.subr.bf16.mxu0 %v9323_v37  ;;  %v9408_v37 = vld [vmem:[#allocation4 + $0x368] ss:$72 sps:$4 sm:$0xff]  }
  0x46   :  { %5325 = vmatpush1.bf16.msra.mxu1 %v9325_v38  ;;  %v9413_v38 = vld [vmem:[#allocation4 + $0x15f4] ss:$72 sps:$4 sm:$0xff]  }
  0x47   :  { %5374 = vmatpush1.bf16.msra.mxu0 %v9326_v39  ;;  %5326 = vmatprep.subr.bf16.mxu1 %v9327_v40  ;;  %v9416_v39 = vld [vmem:[#allocation4 + $0x3fc] ss:$72 sps:$4 sm:$0xff]   ;;  %v10760_v40 = vld [vmem:[%s11086_s0 + $0x14] ss:$24 sps:$4 sm:$0xff]  }
  0x48   :  { %5375 = vmatprep.subr.bf16.mxu0 %v9329_v41  ;;  %v9411_v41 = vld [vmem:[#allocation4 + $0x15f0] ss:$72 sps:$4 sm:$0xff]  }
  0x4a   :  { %5327 = vmatpush1.bf16.msra.mxu1 %v9331_v42  ;;  %v9414_v42 = vld [vmem:[#allocation4 + $0x3f8] ss:$72 sps:$4 sm:$0xff]  }
  0x4b   :  { %5376 = vmatpush1.bf16.msra.mxu0 %v9332_v43  ;;  %5328 = vmatprep.subr.bf16.mxu1 %v9333_v44  ;;  %v9419_v43 = vld [vmem:[#allocation4 + $0x1684] ss:$72 sps:$4 sm:$0xff]  }
  0x4c   :  { %5377 = vmatprep.subr.bf16.mxu0 %v9335_v45  ;;  %v9422_v44 = vld [vmem:[#allocation4 + $0x48c] ss:$72 sps:$4 sm:$0xff]   ;;  %v9417_v45 = vld [vmem:[#allocation4 + $0x1680] ss:$72 sps:$4 sm:$0xff]  }
  0x4e   :  { %5329 = vmatpush1.bf16.msra.mxu1 %v9337_v46  ;;  %v9420_v46 = vld [vmem:[#allocation4 + $0x488] ss:$72 sps:$4 sm:$0xff]  }
  0x4f   :  { %5378 = vmatpush1.bf16.msra.mxu0 %v9338_v47  ;;  %5330 = vmatprep.subr.bf16.mxu1 %v9339_v50  ;;  %v9425_v47 = vld [vmem:[#allocation4 + $0x1714] ss:$72 sps:$4 sm:$0xff]  }
  0x50   :  { %5379 = vmatprep.subr.bf16.mxu0 %v9341_v51  ;;  %v9428_v50 = vld [vmem:[#allocation4 + $0x51c] ss:$72 sps:$4 sm:$0xff]   ;;  %v9423_v51 = vld [vmem:[#allocation4 + $0x1710] ss:$72 sps:$4 sm:$0xff]  }
  0x52   :  { %5331 = vmatpush1.bf16.msra.mxu1 %v9343_v52  ;;  %v9426_v52 = vld [vmem:[#allocation4 + $0x518] ss:$72 sps:$4 sm:$0xff]  }
  0x53   :  { %5380 = vmatpush1.bf16.msra.mxu0 %v9344_v53  ;;  %5332 = vmatprep.subr.bf16.mxu1 %v9345_v54  ;;  %v9431_v53 = vld [vmem:[#allocation4 + $0x17a4] ss:$72 sps:$4 sm:$0xff]  }
  0x54   :  { %5381 = vmatprep.subr.bf16.mxu0 %v9347_v55  ;;  %v9434_v54 = vld [vmem:[#allocation4 + $0x5ac] ss:$72 sps:$4 sm:$0xff]   ;;  %v9429_v55 = vld [vmem:[#allocation4 + $0x17a0] ss:$72 sps:$4 sm:$0xff]  }
  0x56   :  { %5333 = vmatpush1.bf16.msra.mxu1 %v9349_v56  ;;  %v9432_v56 = vld [vmem:[#allocation4 + $0x5a8] ss:$72 sps:$4 sm:$0xff]  }
  0x57   :  { %5382 = vmatpush1.bf16.msra.mxu0 %v9350_v57  ;;  %5334 = vmatprep.subr.bf16.mxu1 %v9351_v58  ;;  %v9437_v57 = vld [vmem:[#allocation4 + $0x1834] ss:$72 sps:$4 sm:$0xff]  }
  0x58   :  { %5383 = vmatprep.subr.bf16.mxu0 %v9353_v59  ;;  %v9440_v58 = vld [vmem:[#allocation4 + $0x63c] ss:$72 sps:$4 sm:$0xff]   ;;  %v9435_v59 = vld [vmem:[#allocation4 + $0x1830] ss:$72 sps:$4 sm:$0xff]  }
  0x5a   :  { %5335 = vmatpush1.bf16.msra.mxu1 %v9355_v60  ;;  %v9438_v60 = vld [vmem:[#allocation4 + $0x638] ss:$72 sps:$4 sm:$0xff]  }
  0x5b   :  { %5384 = vmatpush1.bf16.msra.mxu0 %v9356_v61  ;;  %5336 = vmatprep.subr.bf16.mxu1 %v9357_v62  ;;  %v9443_v61 = vld [vmem:[#allocation4 + $0x18c4] ss:$72 sps:$4 sm:$0xff]  }
  0x5c   :  { %5385 = vmatprep.subr.bf16.mxu0 %v9359_v63  ;;  %v9446_v62 = vld [vmem:[#allocation4 + $0x6cc] ss:$72 sps:$4 sm:$0xff]   ;;  %v9441_v63 = vld [vmem:[#allocation4 + $0x18c0] ss:$72 sps:$4 sm:$0xff]  }
  0x5e   :  { %5337 = vmatpush1.bf16.msra.mxu1 %v9361_v0  ;;  %v9444_v0 = vld [vmem:[#allocation4 + $0x6c8] ss:$72 sps:$4 sm:$0xff]  }
  0x5f   :  { %5386 = vmatpush1.bf16.msra.mxu0 %v9362_v1  ;;  %5453 = vmatprep.subr.bf16.mxu1 %v9372_v3  ;;  %v9449_v1 = vld [vmem:[#allocation4 + $0x1954] ss:$72 sps:$4 sm:$0xff]   ;;  %v9447_v3 = vld [vmem:[#allocation4 + $0x1950] ss:$72 sps:$4 sm:$0xff]  }
  0x60   :  { %5404 = vmatprep.subr.bf16.mxu0 %v9369_v2  ;;  %v9452_v2 = vld [vmem:[#allocation4 + $0x75c] ss:$72 sps:$4 sm:$0xff]  }
  0x61   :  { %5339 = vmatmul.mubr.bf16.vlgmr.msra.gmra.mrb[0].mxu1 %v10730_v6 }
  0x62   :  { %5388 = vmatmul.mubr.bf16.vlgmr.msra.gmra.mrb[0].mxu0 %v10735_v7  ;;  %5454 = vmatpush1.bf16.msra.mxu1 %v9370_v5  ;;  %v9458_v5 = vld [vmem:[#allocation4 + $0x19e4] ss:$72 sps:$4 sm:$0xff]  }
  0x63   :  { %5405 = vmatpush1.bf16.msra.mxu0 %v9367_v4  ;;  %5455 = vmatprep.subr.bf16.mxu1 %v9380_v9  ;;  %v9450_v4 = vld [vmem:[#allocation4 + $0x758] ss:$72 sps:$4 sm:$0xff]  }
  0x64   :  { %5406 = vmatprep.subr.bf16.mxu0 %v9377_v8  ;;  %5397 = vmatprep.mubr.bf16.mxu0 %v10742_v27  ;;  %v9461_v8 = vld [vmem:[#allocation4 + $0x7ec] ss:$72 sps:$4 sm:$0xff]   ;;  %v9456_v9 = vld [vmem:[#allocation4 + $0x19e0] ss:$72 sps:$4 sm:$0xff]  }
  0x65   :  { %5348 = vmatprep.mubr.bf16.mxu1 %v10749_v32 }
  0x66   :  { %5456 = vmatpush1.bf16.msra.mxu1 %v9378_v11  ;;  %v9465_v11 = vld [vmem:[#allocation4 + $0x1a74] ss:$72 sps:$4 sm:$0xff]  }
  0x67   :  { %5407 = vmatpush1.bf16.msra.mxu0 %v9375_v10  ;;  %5457 = vmatprep.subr.bf16.mxu1 %v9386_v13  ;;  %v9459_v10 = vld [vmem:[#allocation4 + $0x7e8] ss:$72 sps:$4 sm:$0xff]  }
  0x68   :  { %5408 = vmatprep.subr.bf16.mxu0 %v9383_v12  ;;  %v9468_v12 = vld [vmem:[#allocation4 + $0x87c] ss:$72 sps:$4 sm:$0xff]   ;;  %v9463_v13 = vld [vmem:[#allocation4 + $0x1a70] ss:$72 sps:$4 sm:$0xff]  }
  0x69   :  { %5349 = vmatmul.mubr.bf16.gmra.mrb[4].mxu1 %v10751_v33 }
  0x6a   :  { %5458 = vmatpush1.bf16.msra.mxu1 %v9384_v15  ;;  %5398 = vmatmul.mubr.bf16.gmra.mrb[4].mxu0 %v10744_v28  ;;  %v9474_v15 = vld [vmem:[#allocation4 + $0x90c] ss:$72 sps:$4 sm:$0xff]  }
  0x6b   :  { %5409 = vmatpush1.bf16.msra.mxu0 %v9381_v14  ;;  %5459 = vmatprep.subr.bf16.mxu1 %v9392_v17  ;;  %v9466_v14 = vld [vmem:[#allocation4 + $0x878] ss:$72 sps:$4 sm:$0xff]   ;;  %v10767_v17 = vld [vmem:[%s11086_s0 + $0x10] ss:$24 sps:$4 sm:$0xff]  }
  0x6c   :  { %5410 = vmatprep.subr.bf16.mxu0 %v9389_v16  ;;  %5485 = vmatprep.mubr.bf16.mxu1 %v10718_v48  ;;  %v9477_v16 = vld [vmem:[#allocation4 + $0x14] ss:$72 sps:$4 sm:$0xff]  }
  0x6d   :  { %5436 = vmatprep.mubr.bf16.mxu0 %v10760_v40 }
  0x6e   :  { %5460 = vmatpush1.bf16.msra.mxu1 %v9390_v19  ;;  %v70_v19 = vld [vmem:[%s11086_s0 + $0x40] sm:$0xff] }
  0x6f   :  { %5411 = vmatpush1.bf16.msra.mxu0 %v9387_v18  ;;  %5461 = vmatprep.subr.bf16.mxu1 %v9398_v21  ;;  %v9472_v18 = vld [vmem:[#allocation4 + $0x908] ss:$72 sps:$4 sm:$0xff]   ;;  %v9480_v21 = vld [vmem:[#allocation4 + $0x99c] ss:$72 sps:$4 sm:$0xff]  }
  0x70   :  { %5412 = vmatprep.subr.bf16.mxu0 %v9395_v20  ;;  %v9475_v20 = vld [vmem:[#allocation4 + $0x10] ss:$72 sps:$4 sm:$0xff]  }
  0x72   :  { %5462 = vmatpush1.bf16.msra.mxu1 %v9396_v23  ;;  %v10772_v23 = vcombine.high %v70_v19, %v70_v19 }
  0x73   :  { %5413 = vmatpush1.bf16.msra.mxu0 %v9393_v22  ;;  %5463 = vmatprep.subr.bf16.mxu1 %v9404_v25  ;;  %v9483_v22 = vld [vmem:[#allocation4 + $0xa4] ss:$72 sps:$4 sm:$0xff]   ;;  %v9481_v25 = vld [vmem:[#allocation4 + $0xa0] ss:$72 sps:$4 sm:$0xff]  }
  0x74   :  { %5414 = vmatprep.subr.bf16.mxu0 %v9401_v24  ;;  %v9478_v24 = vld [vmem:[#allocation4 + $0x998] ss:$72 sps:$4 sm:$0xff]  }
  0x76   :  { %5464 = vmatpush1.bf16.msra.mxu1 %v9402_v31  ;;  %v10778_v31 = vcombine.low %v70_v19, %v70_v19  ;;  %v9560_v19 = vld [vmem:[#allocation4 + $0x10ec] ss:$72 sps:$4 sm:$0xff]  }
  0x77   :  { %5415 = vmatpush1.bf16.msra.mxu0 %v9399_v30  ;;  %5465 = vmatprep.subr.bf16.mxu1 %v9410_v35  ;;  %v9484_v30 = vld [vmem:[#allocation4 + $0xa28] ss:$72 sps:$4 sm:$0xff]   ;;  %v9492_v35 = vld [vmem:[#allocation4 + $0xabc] ss:$72 sps:$4 sm:$0xff]  }
  0x78   :  { %5416 = vmatprep.subr.bf16.mxu0 %v9407_v34  ;;  %v9487_v34 = vld [vmem:[#allocation4 + $0x130] ss:$72 sps:$4 sm:$0xff]  }
  0x7a   :  { %5466 = vmatpush1.bf16.msra.mxu1 %v9408_v37  ;;  %v9490_v37 = vld [vmem:[#allocation4 + $0xab8] ss:$72 sps:$4 sm:$0xff]  }
  0x7b   :  { %5417 = vmatpush1.bf16.msra.mxu0 %v9405_v36  ;;  %5467 = vmatprep.subr.bf16.mxu1 %v9416_v39  ;;  %v9495_v36 = vld [vmem:[#allocation4 + $0x1c4] ss:$72 sps:$4 sm:$0xff]  }
  0x7c   :  { %5418 = vmatprep.subr.bf16.mxu0 %v9413_v38  ;;  %v9493_v38 = vld [vmem:[#allocation4 + $0x1c0] ss:$72 sps:$4 sm:$0xff]   ;;  %v9498_v39 = vld [vmem:[#allocation4 + $0xb4c] ss:$72 sps:$4 sm:$0xff]  }
  0x7e   :  { %5468 = vmatpush1.bf16.msra.mxu1 %v9414_v42  ;;  %v9496_v42 = vld [vmem:[#allocation4 + $0xb48] ss:$72 sps:$4 sm:$0xff]  }
  0x7f   :  { %5419 = vmatpush1.bf16.msra.mxu0 %v9411_v41  ;;  %5469 = vmatprep.subr.bf16.mxu1 %v9422_v44  ;;  %v9501_v41 = vld [vmem:[#allocation4 + $0x254] ss:$72 sps:$4 sm:$0xff]  }
  0x80   :  { %5420 = vmatprep.subr.bf16.mxu0 %v9419_v43  ;;  %v9499_v43 = vld [vmem:[#allocation4 + $0x250] ss:$72 sps:$4 sm:$0xff]   ;;  %v9504_v44 = vld [vmem:[#allocation4 + $0xbdc] ss:$72 sps:$4 sm:$0xff]  }
  0x82   :  { %5470 = vmatpush1.bf16.msra.mxu1 %v9420_v46  ;;  %v9502_v46 = vld [vmem:[#allocation4 + $0xbd8] ss:$72 sps:$4 sm:$0xff]  }
  0x83   :  { %5421 = vmatpush1.bf16.msra.mxu0 %v9417_v45  ;;  %5471 = vmatprep.subr.bf16.mxu1 %v9428_v50  ;;  %v9507_v45 = vld [vmem:[#allocation4 + $0x2e4] ss:$72 sps:$4 sm:$0xff]  }
  0x84   :  { %5422 = vmatprep.subr.bf16.mxu0 %v9425_v47  ;;  %v9505_v47 = vld [vmem:[#allocation4 + $0x2e0] ss:$72 sps:$4 sm:$0xff]   ;;  %v9510_v50 = vld [vmem:[#allocation4 + $0xc6c] ss:$72 sps:$4 sm:$0xff]  }
  0x86   :  { %5472 = vmatpush1.bf16.msra.mxu1 %v9426_v52  ;;  %v9508_v52 = vld [vmem:[#allocation4 + $0xc68] ss:$72 sps:$4 sm:$0xff]  }
  0x87   :  { %5423 = vmatpush1.bf16.msra.mxu0 %v9423_v51  ;;  %5473 = vmatprep.subr.bf16.mxu1 %v9434_v54  ;;  %v9513_v51 = vld [vmem:[#allocation4 + $0x374] ss:$72 sps:$4 sm:$0xff]   ;;  %v9514_v54 = vld [vmem:[#allocation4 + $0xcf8] ss:$72 sps:$4 sm:$0xff]  }
  0x88   :  { %5424 = vmatprep.subr.bf16.mxu0 %v9431_v53  ;;  %v9519_v53 = vld [vmem:[#allocation4 + $0x404] ss:$72 sps:$4 sm:$0xff]  }
  0x8a   :  { %5474 = vmatpush1.bf16.msra.mxu1 %v9432_v56  ;;  %v9522_v56 = vld [vmem:[#allocation4 + $0xd8c] ss:$72 sps:$4 sm:$0xff]  }
  0x8b   :  { %5425 = vmatpush1.bf16.msra.mxu0 %v9429_v55  ;;  %5475 = vmatprep.subr.bf16.mxu1 %v9440_v58  ;;  %v9517_v55 = vld [vmem:[#allocation4 + $0x400] ss:$72 sps:$4 sm:$0xff]  }
  0x8c   :  { %5426 = vmatprep.subr.bf16.mxu0 %v9437_v57  ;;  %v9525_v57 = vld [vmem:[#allocation4 + $0x494] ss:$72 sps:$4 sm:$0xff]   ;;  %v9520_v58 = vld [vmem:[#allocation4 + $0xd88] ss:$72 sps:$4 sm:$0xff]  }
  0x8e   :  { %5476 = vmatpush1.bf16.msra.mxu1 %v9438_v60  ;;  %v9528_v60 = vld [vmem:[#allocation4 + $0xe1c] ss:$72 sps:$4 sm:$0xff]  }
  0x8f   :  { %5427 = vmatpush1.bf16.msra.mxu0 %v9435_v59  ;;  %5477 = vmatprep.subr.bf16.mxu1 %v9446_v62  ;;  %v9523_v59 = vld [vmem:[#allocation4 + $0x490] ss:$72 sps:$4 sm:$0xff]  }
  0x90   :  { %5428 = vmatprep.subr.bf16.mxu0 %v9443_v61  ;;  %v9531_v61 = vld [vmem:[#allocation4 + $0x524] ss:$72 sps:$4 sm:$0xff]   ;;  %v9526_v62 = vld [vmem:[#allocation4 + $0xe18] ss:$72 sps:$4 sm:$0xff]  }
  0x92   :  { %5478 = vmatpush1.bf16.msra.mxu1 %v9444_v0  ;;  %v9534_v0 = vld [vmem:[#allocation4 + $0xeac] ss:$72 sps:$4 sm:$0xff]  }
  0x93   :  { %5429 = vmatpush1.bf16.msra.mxu0 %v9441_v63  ;;  %5479 = vmatprep.subr.bf16.mxu1 %v9452_v2  ;;  %v9529_v63 = vld [vmem:[#allocation4 + $0x520] ss:$72 sps:$4 sm:$0xff]  }
  0x94   :  { %5430 = vmatprep.subr.bf16.mxu0 %v9449_v1  ;;  %v9537_v1 = vld [vmem:[#allocation4 + $0x5b4] ss:$72 sps:$4 sm:$0xff]   ;;  %v9532_v2 = vld [vmem:[#allocation4 + $0xea8] ss:$72 sps:$4 sm:$0xff]  }
  0x96   :  { %5480 = vmatpush1.bf16.msra.mxu1 %v9450_v4  ;;  %v9540_v4 = vld [vmem:[#allocation4 + $0xf3c] ss:$72 sps:$4 sm:$0xff]  }
  0x97   :  { %5431 = vmatpush1.bf16.msra.mxu0 %v9447_v3  ;;  %5481 = vmatprep.subr.bf16.mxu1 %v9461_v8  ;;  %v9535_v3 = vld [vmem:[#allocation4 + $0x5b0] ss:$72 sps:$4 sm:$0xff]  }
  0x98   :  { %5432 = vmatprep.subr.bf16.mxu0 %v9458_v5  ;;  %v9543_v5 = vld [vmem:[#allocation4 + $0x644] ss:$72 sps:$4 sm:$0xff]   ;;  %v9538_v8 = vld [vmem:[#allocation4 + $0xf38] ss:$72 sps:$4 sm:$0xff]  }
  0x9a   :  { %5482 = vmatpush1.bf16.msra.mxu1 %v9459_v10  ;;  %v9546_v10 = vld [vmem:[#allocation4 + $0xfcc] ss:$72 sps:$4 sm:$0xff]  }
  0x9b   :  { %5433 = vmatpush1.bf16.msra.mxu0 %v9456_v9  ;;  %5483 = vmatprep.subr.bf16.mxu1 %v9468_v12  ;;  %v9541_v9 = vld [vmem:[#allocation4 + $0x640] ss:$72 sps:$4 sm:$0xff]  }
  0x9c   :  { %5434 = vmatprep.subr.bf16.mxu0 %v9465_v11  ;;  %v9549_v11 = vld [vmem:[#allocation4 + $0x6d4] ss:$72 sps:$4 sm:$0xff]   ;;  %v9544_v12 = vld [vmem:[#allocation4 + $0xfc8] ss:$72 sps:$4 sm:$0xff]  }
  0x9e   :  { %5484 = vmatpush1.bf16.msra.mxu1 %v9466_v14  ;;  %v9552_v14 = vld [vmem:[#allocation4 + $0x105c] ss:$72 sps:$4 sm:$0xff]  }
  0x9f   :  { %5435 = vmatpush1.bf16.msra.mxu0 %v9463_v13  ;;  %5502 = vmatprep.subr.bf16.mxu1 %v9474_v15  ;;  %v9547_v13 = vld [vmem:[#allocation4 + $0x6d0] ss:$72 sps:$4 sm:$0xff]   ;;  %v9555_v15 = vld [vmem:[#allocation4 + $0x764] ss:$72 sps:$4 sm:$0xff]  }
  0xa0   :  { %5600 = vmatprep.subr.bf16.mxu0 %v9477_v16  ;;  %v9550_v16 = vld [vmem:[#allocation4 + $0x1058] ss:$72 sps:$4 sm:$0xff]  }
  0xa1   :  { %5486 = vmatmul.mubr.bf16.vlgmr.msra.gmra.mrb[8].mxu1 %v10730_v6 }
  0xa2   :  { %5437 = vmatmul.mubr.bf16.vlgmr.msra.gmra.mrb[0].mxu0 %v10767_v17  ;;  %5503 = vmatpush1.bf16.msra.mxu1 %v9472_v18  ;;  %v9553_v18 = vld [vmem:[#allocation4 + $0x760] ss:$72 sps:$4 sm:$0xff]  }
  0xa3   :  { %5601 = vmatpush1.bf16.msra.mxu0 %v9475_v20  ;;  %5504 = vmatprep.subr.bf16.mxu1 %v9480_v21  ;;  %v9563_v20 = vld [vmem:[#allocation4 + $0x7f4] ss:$72 sps:$4 sm:$0xff]   ;;  %v9558_v21 = vld [vmem:[#allocation4 + $0x10e8] ss:$72 sps:$4 sm:$0xff]  }
  0xa4   :  { %5602 = vmatprep.subr.bf16.mxu0 %v9483_v22  ;;  %5446 = vmatprep.mubr.bf16.mxu0 %v10772_v23  ;;  %v9561_v22 = vld [vmem:[#allocation4 + $0x7f0] ss:$72 sps:$4 sm:$0xff]  }
  0xa5   :  { %5495 = vmatprep.mubr.bf16.mxu1 %v10749_v32 }
  0xa6   :  { %5505 = vmatpush1.bf16.msra.mxu1 %v9478_v24  ;;  %v9566_v24 = vld [vmem:[#allocation4 + $0x117c] ss:$72 sps:$4 sm:$0xff]  }
  0xa7   :  { %5603 = vmatpush1.bf16.msra.mxu0 %v9481_v25  ;;  %5506 = vmatprep.subr.bf16.mxu1 %v9486_v26  ;;  %v9569_v25 = vld [vmem:[#allocation4 + $0x884] ss:$72 sps:$4 sm:$0xff]   ;;  %v9564_v26 = vld [vmem:[#allocation4 + $0x1178] ss:$72 sps:$4 sm:$0xff]  }
  0xa8   :  { %5604 = vmatprep.subr.bf16.mxu0 %v9489_v29  ;;  %v9567_v29 = vld [vmem:[#allocation4 + $0x880] ss:$72 sps:$4 sm:$0xff]  }
  0xa9   :  { %5496 = vmatmul.mubr.bf16.gmra.mrb[12].mxu1 %v10751_v33 }
  0xaa   :  { %5447 = vmatmul.mubr.bf16.gmra.mrb[8].mxu0 %v10778_v31  ;;  %5507 = vmatpush1.bf16.msra.mxu1 %v9484_v30  ;;  %v9572_v30 = vld [vmem:[#allocation4 + $0x120c] ss:$72 sps:$4 sm:$0xff]  }
  0xab   :  { %5605 = vmatpush1.bf16.msra.mxu0 %v9487_v34  ;;  %5508 = vmatprep.subr.bf16.mxu1 %v9492_v35  ;;  %v9575_v34 = vld [vmem:[#allocation4 + $0x914] ss:$72 sps:$4 sm:$0xff]   ;;  %v9570_v35 = vld [vmem:[#allocation4 + $0x1208] ss:$72 sps:$4 sm:$0xff]  }
  0xac   :  { %5606 = vmatprep.subr.bf16.mxu0 %v9495_v36  ;;  %5534 = vmatprep.mubr.bf16.mxu1 %v10723_v49  ;;  %v9516_v49 = vld [vmem:[#allocation4 + $0xcfc] ss:$72 sps:$4 sm:$0xff]   ;;  %v9573_v36 = vld [vmem:[#allocation4 + $0x910] ss:$72 sps:$4 sm:$0xff]  }
  0xad   :  { %5632 = vmatprep.mubr.bf16.mxu0 %v10718_v48  ;;  %v9511_v48 = vld [vmem:[#allocation4 + $0x370] ss:$72 sps:$4 sm:$0xff]  }
  0xae   :  { %5509 = vmatpush1.bf16.msra.mxu1 %v9490_v37  ;;  %v9578_v37 = vld [vmem:[#allocation4 + $0x129c] ss:$72 sps:$4 sm:$0xff]  }
  0xaf   :  { %5607 = vmatpush1.bf16.msra.mxu0 %v9493_v38  ;;  %5510 = vmatprep.subr.bf16.mxu1 %v9498_v39  ;;  %v9581_v38 = vld [vmem:[#allocation4 + $0x9a4] ss:$72 sps:$4 sm:$0xff]   ;;  %v9576_v39 = vld [vmem:[#allocation4 + $0x1298] ss:$72 sps:$4 sm:$0xff]  }
  0xb0   :  { %5608 = vmatprep.subr.bf16.mxu0 %v9501_v41  ;;  %v9579_v41 = vld [vmem:[#allocation4 + $0x9a0] ss:$72 sps:$4 sm:$0xff]  }
  0xb2   :  { %5511 = vmatpush1.bf16.msra.mxu1 %v9496_v42  ;;  %v9584_v42 = vld [vmem:[#allocation4 + $0x132c] ss:$72 sps:$4 sm:$0xff]  }
  0xb3   :  { %5609 = vmatpush1.bf16.msra.mxu0 %v9499_v43  ;;  %5512 = vmatprep.subr.bf16.mxu1 %v9504_v44  ;;  %v9587_v43 = vld [vmem:[#allocation4 + $0xa34] ss:$72 sps:$4 sm:$0xff]   ;;  %v9582_v44 = vld [vmem:[#allocation4 + $0x1328] ss:$72 sps:$4 sm:$0xff]  }
  0xb4   :  { %5610 = vmatprep.subr.bf16.mxu0 %v9507_v45  ;;  %v9585_v45 = vld [vmem:[#allocation4 + $0xa30] ss:$72 sps:$4 sm:$0xff]  }
  0xb6   :  { %5513 = vmatpush1.bf16.msra.mxu1 %v9502_v46  ;;  %v9590_v46 = vld [vmem:[#allocation4 + $0x13bc] ss:$72 sps:$4 sm:$0xff]  }
  0xb7   :  { %5611 = vmatpush1.bf16.msra.mxu0 %v9505_v47  ;;  %5514 = vmatprep.subr.bf16.mxu1 %v9510_v50  ;;  %v9591_v47 = vld [vmem:[#allocation4 + $0xac0] ss:$72 sps:$4 sm:$0xff]   ;;  %v9596_v50 = vld [vmem:[#allocation4 + $0x144c] ss:$72 sps:$4 sm:$0xff]  }
  0xb8   :  { %5612 = vmatprep.subr.bf16.mxu0 %v9513_v51  ;;  %v9599_v51 = vld [vmem:[#allocation4 + $0xb54] ss:$72 sps:$4 sm:$0xff]  }
  0xba   :  { %5515 = vmatpush1.bf16.msra.mxu1 %v9508_v52  ;;  %v10794_v52 = vld [vmem:[%s11086_s0 + $0xc] ss:$24 sps:$4 sm:$0xff]  }
  0xbb   :  { %5613 = vmatpush1.bf16.msra.mxu0 %v9511_v48  ;;  %5516 = vmatprep.subr.bf16.mxu1 %v9516_v49  ;;  %v9594_v48 = vld [vmem:[#allocation4 + $0x1448] ss:$72 sps:$4 sm:$0xff]  }
  0xbc   :  { %5614 = vmatprep.subr.bf16.mxu0 %v9519_v53  ;;  %v9597_v49 = vld [vmem:[#allocation4 + $0xb50] ss:$72 sps:$4 sm:$0xff]   ;;  %v9602_v53 = vld [vmem:[#allocation4 + $0x14dc] ss:$72 sps:$4 sm:$0xff]  }
  0xbe   :  { %5517 = vmatpush1.bf16.msra.mxu1 %v9514_v54  ;;  %v9605_v54 = vld [vmem:[#allocation4 + $0xbe4] ss:$72 sps:$4 sm:$0xff]  }
  0xbf   :  { %5615 = vmatpush1.bf16.msra.mxu0 %v9517_v55  ;;  %5518 = vmatprep.subr.bf16.mxu1 %v9522_v56  ;;  %v9600_v55 = vld [vmem:[#allocation4 + $0x14d8] ss:$72 sps:$4 sm:$0xff]  }
  0xc0   :  { %5616 = vmatprep.subr.bf16.mxu0 %v9525_v57  ;;  %v9603_v56 = vld [vmem:[#allocation4 + $0xbe0] ss:$72 sps:$4 sm:$0xff]   ;;  %v9611_v57 = vld [vmem:[#allocation4 + $0xc74] ss:$72 sps:$4 sm:$0xff]  }
  0xc2   :  { %5519 = vmatpush1.bf16.msra.mxu1 %v9520_v58  ;;  %v9606_v58 = vld [vmem:[#allocation4 + $0x1568] ss:$72 sps:$4 sm:$0xff]  }
  0xc3   :  { %5617 = vmatpush1.bf16.msra.mxu0 %v9523_v59  ;;  %5520 = vmatprep.subr.bf16.mxu1 %v9528_v60  ;;  %v9609_v59 = vld [vmem:[#allocation4 + $0xc70] ss:$72 sps:$4 sm:$0xff]   ;;  %v9614_v60 = vld [vmem:[#allocation4 + $0x15fc] ss:$72 sps:$4 sm:$0xff]  }
  0xc4   :  { %5618 = vmatprep.subr.bf16.mxu0 %v9531_v61  ;;  %v9617_v61 = vld [vmem:[#allocation4 + $0xd04] ss:$72 sps:$4 sm:$0xff]  }
  0xc6   :  { %5521 = vmatpush1.bf16.msra.mxu1 %v9526_v62  ;;  %v9612_v62 = vld [vmem:[#allocation4 + $0x15f8] ss:$72 sps:$4 sm:$0xff]  }
  0xc7   :  { %5619 = vmatpush1.bf16.msra.mxu0 %v9529_v63  ;;  %5522 = vmatprep.subr.bf16.mxu1 %v9534_v0  ;;  %v9615_v63 = vld [vmem:[#allocation4 + $0xd00] ss:$72 sps:$4 sm:$0xff]   ;;  %v9620_v0 = vld [vmem:[#allocation4 + $0x168c] ss:$72 sps:$4 sm:$0xff]  }
  0xc8   :  { %5620 = vmatprep.subr.bf16.mxu0 %v9537_v1  ;;  %v9623_v1 = vld [vmem:[#allocation4 + $0xd94] ss:$72 sps:$4 sm:$0xff]  }
  0xca   :  { %5523 = vmatpush1.bf16.msra.mxu1 %v9532_v2  ;;  %v9618_v2 = vld [vmem:[#allocation4 + $0x1688] ss:$72 sps:$4 sm:$0xff]  }
  0xcb   :  { %5621 = vmatpush1.bf16.msra.mxu0 %v9535_v3  ;;  %5524 = vmatprep.subr.bf16.mxu1 %v9540_v4  ;;  %v9621_v3 = vld [vmem:[#allocation4 + $0xd90] ss:$72 sps:$4 sm:$0xff]   ;;  %v9626_v4 = vld [vmem:[#allocation4 + $0x171c] ss:$72 sps:$4 sm:$0xff]  }
  0xcc   :  { %5622 = vmatprep.subr.bf16.mxu0 %v9543_v5  ;;  %v9629_v5 = vld [vmem:[#allocation4 + $0xe24] ss:$72 sps:$4 sm:$0xff]  }
  0xce   :  { %5525 = vmatpush1.bf16.msra.mxu1 %v9538_v8  ;;  %v9624_v8 = vld [vmem:[#allocation4 + $0x1718] ss:$72 sps:$4 sm:$0xff]  }
  0xcf   :  { %5623 = vmatpush1.bf16.msra.mxu0 %v9541_v9  ;;  %5526 = vmatprep.subr.bf16.mxu1 %v9546_v10  ;;  %v9627_v9 = vld [vmem:[#allocation4 + $0xe20] ss:$72 sps:$4 sm:$0xff]   ;;  %v9632_v10 = vld [vmem:[#allocation4 + $0x17ac] ss:$72 sps:$4 sm:$0xff]  }
  0xd0   :  { %5624 = vmatprep.subr.bf16.mxu0 %v9549_v11  ;;  %v9635_v11 = vld [vmem:[#allocation4 + $0xeb4] ss:$72 sps:$4 sm:$0xff]  }
  0xd2   :  { %5527 = vmatpush1.bf16.msra.mxu1 %v9544_v12  ;;  %v9630_v12 = vld [vmem:[#allocation4 + $0x17a8] ss:$72 sps:$4 sm:$0xff]  }
  0xd3   :  { %5625 = vmatpush1.bf16.msra.mxu0 %v9547_v13  ;;  %5528 = vmatprep.subr.bf16.mxu1 %v9552_v14  ;;  %v9633_v13 = vld [vmem:[#allocation4 + $0xeb0] ss:$72 sps:$4 sm:$0xff]   ;;  %v9638_v14 = vld [vmem:[#allocation4 + $0x183c] ss:$72 sps:$4 sm:$0xff]  }
  0xd4   :  { %5626 = vmatprep.subr.bf16.mxu0 %v9555_v15  ;;  %v9641_v15 = vld [vmem:[#allocation4 + $0xf44] ss:$72 sps:$4 sm:$0xff]  }
  0xd6   :  { %5529 = vmatpush1.bf16.msra.mxu1 %v9550_v16  ;;  %v9636_v16 = vld [vmem:[#allocation4 + $0x1838] ss:$72 sps:$4 sm:$0xff]  }
  0xd7   :  { %5627 = vmatpush1.bf16.msra.mxu0 %v9553_v18  ;;  %5530 = vmatprep.subr.bf16.mxu1 %v9560_v19  ;;  %v9639_v18 = vld [vmem:[#allocation4 + $0xf40] ss:$72 sps:$4 sm:$0xff]   ;;  %v9644_v19 = vld [vmem:[#allocation4 + $0x18cc] ss:$72 sps:$4 sm:$0xff]  }
  0xd8   :  { %5628 = vmatprep.subr.bf16.mxu0 %v9563_v20  ;;  %v9647_v20 = vld [vmem:[#allocation4 + $0xfd4] ss:$72 sps:$4 sm:$0xff]  }
  0xda   :  { %5531 = vmatpush1.bf16.msra.mxu1 %v9558_v21  ;;  %v9642_v21 = vld [vmem:[#allocation4 + $0x18c8] ss:$72 sps:$4 sm:$0xff]  }
  0xdb   :  { %5629 = vmatpush1.bf16.msra.mxu0 %v9561_v22  ;;  %5532 = vmatprep.subr.bf16.mxu1 %v9566_v24  ;;  %v9645_v22 = vld [vmem:[#allocation4 + $0xfd0] ss:$72 sps:$4 sm:$0xff]   ;;  %v9650_v24 = vld [vmem:[#allocation4 + $0x195c] ss:$72 sps:$4 sm:$0xff]  }
  0xdc   :  { %5630 = vmatprep.subr.bf16.mxu0 %v9569_v25  ;;  %v9653_v25 = vld [vmem:[#allocation4 + $0x1064] ss:$72 sps:$4 sm:$0xff]  }
  0xde   :  { %5533 = vmatpush1.bf16.msra.mxu1 %v9564_v26  ;;  %v9648_v26 = vld [vmem:[#allocation4 + $0x1958] ss:$72 sps:$4 sm:$0xff]  }
  0xdf   :  { %5631 = vmatpush1.bf16.msra.mxu0 %v9567_v29  ;;  %5551 = vmatprep.subr.bf16.mxu1 %v9572_v30  ;;  %v9651_v29 = vld [vmem:[#allocation4 + $0x1060] ss:$72 sps:$4 sm:$0xff]   ;;  %v9656_v30 = vld [vmem:[#allocation4 + $0x19ec] ss:$72 sps:$4 sm:$0xff]  }
  0xe0   :  { %5649 = vmatprep.subr.bf16.mxu0 %v9575_v34  ;;  %v9659_v34 = vld [vmem:[#allocation4 + $0x10f4] ss:$72 sps:$4 sm:$0xff]  }
  0xe1   :  { %5535 = vmatmul.mubr.bf16.vlgmr.msra.gmra.mrb[8].mxu1 %v10735_v7  ;;  %v9588_v7 = vld [vmem:[#allocation4 + $0x13b8] ss:$72 sps:$4 sm:$0xff]  }
  0xe2   :  { %5633 = vmatmul.mubr.bf16.vlgmr.msra.gmra.mrb[12].mxu0 %v10730_v6  ;;  %5552 = vmatpush1.bf16.msra.mxu1 %v9570_v35  ;;  %v9593_v6 = vld [vmem:[#allocation4 + $0xac4] ss:$72 sps:$4 sm:$0xff]   ;;  %v9654_v35 = vld [vmem:[#allocation4 + $0x19e8] ss:$72 sps:$4 sm:$0xff]  }
  0xe3   :  { %5650 = vmatpush1.bf16.msra.mxu0 %v9573_v36  ;;  %5553 = vmatprep.subr.bf16.mxu1 %v9578_v37  ;;  %v9657_v36 = vld [vmem:[#allocation4 + $0x10f0] ss:$72 sps:$4 sm:$0xff]   ;;  %v9662_v37 = vld [vmem:[#allocation4 + $0x1a7c] ss:$72 sps:$4 sm:$0xff]  }
  0xe4   :  { %5651 = vmatprep.subr.bf16.mxu0 %v9581_v38  ;;  %5642 = vmatprep.mubr.bf16.mxu0 %v10749_v32  ;;  %v9665_v38 = vld [vmem:[#allocation4 + $0x1184] ss:$72 sps:$4 sm:$0xff]  }
  0xe5   :  { %5544 = vmatprep.mubr.bf16.mxu1 %v10742_v27 }
  0xe6   :  { %5554 = vmatpush1.bf16.msra.mxu1 %v9576_v39  ;;  %v9660_v39 = vld [vmem:[#allocation4 + $0x1a78] ss:$72 sps:$4 sm:$0xff]  }
  0xe7   :  { %5652 = vmatpush1.bf16.msra.mxu0 %v9579_v41  ;;  %5555 = vmatprep.subr.bf16.mxu1 %v9584_v42  ;;  %v9663_v41 = vld [vmem:[#allocation4 + $0x1180] ss:$72 sps:$4 sm:$0xff]   ;;  %v9668_v42 = vld [vmem:[#allocation4 + $0x1214] ss:$72 sps:$4 sm:$0xff]  }
  0xe8   :  { %5653 = vmatprep.subr.bf16.mxu0 %v9587_v43  ;;  %v9671_v43 = vld [vmem:[#allocation4 + $0x1c] ss:$72 sps:$4 sm:$0xff]  }
  0xe9   :  { %5545 = vmatmul.mubr.bf16.gmra.mrb[16].mxu1 %v10744_v28 }
  0xea   :  { %5643 = vmatmul.mubr.bf16.gmra.mrb[16].mxu0 %v10751_v33  ;;  %5556 = vmatpush1.bf16.msra.mxu1 %v9582_v44  ;;  %v9666_v44 = vld [vmem:[#allocation4 + $0x1210] ss:$72 sps:$4 sm:$0xff]  }
  0xeb   :  { %5654 = vmatpush1.bf16.msra.mxu0 %v9585_v45  ;;  %5557 = vmatprep.subr.bf16.mxu1 %v9590_v46  ;;  %v9669_v45 = vld [vmem:[#allocation4 + $0x18] ss:$72 sps:$4 sm:$0xff]   ;;  %v9674_v46 = vld [vmem:[#allocation4 + $0x12a4] ss:$72 sps:$4 sm:$0xff]  }
  0xec   :  { %5655 = vmatprep.subr.bf16.mxu0 %v9593_v6  ;;  %5583 = vmatprep.mubr.bf16.mxu1 %v10760_v40  ;;  %v9608_v40 = vld [vmem:[#allocation4 + $0x156c] ss:$72 sps:$4 sm:$0xff]  }
  0xed   :  { %5681 = vmatprep.mubr.bf16.mxu0 %v10794_v52  ;;  %v9677_v6 = vld [vmem:[#allocation4 + $0xac] ss:$72 sps:$4 sm:$0xff]  }
  0xee   :  { %5558 = vmatpush1.bf16.msra.mxu1 %v9588_v7  ;;  %v10579_v7 = vld [vmem:[%s11086_s0 + $0x8] ss:$24 sps:$4 sm:$0xff]  }
  0xef   :  { %5656 = vmatpush1.bf16.msra.mxu0 %v9591_v47  ;;  %5559 = vmatprep.subr.bf16.mxu1 %v9596_v50  ;;  %v9672_v47 = vld [vmem:[#allocation4 + $0x12a0] ss:$72 sps:$4 sm:$0xff]  }
  0xf0   :  { %5657 = vmatprep.subr.bf16.mxu0 %v9599_v51  ;;  %v9675_v50 = vld [vmem:[#allocation4 + $0xa8] ss:$72 sps:$4 sm:$0xff]   ;;  %v9680_v51 = vld [vmem:[#allocation4 + $0x1334] ss:$72 sps:$4 sm:$0xff]  }
  0xf2   :  { %5560 = vmatpush1.bf16.msra.mxu1 %v9594_v48  ;;  %v9683_v48 = vld [vmem:[#allocation4 + $0x13c] ss:$72 sps:$4 sm:$0xff]  }
  0xf3   :  { %5658 = vmatpush1.bf16.msra.mxu0 %v9597_v49  ;;  %5561 = vmatprep.subr.bf16.mxu1 %v9602_v53  ;;  %v9678_v49 = vld [vmem:[#allocation4 + $0x1330] ss:$72 sps:$4 sm:$0xff]   ;;  %v9686_v53 = vld [vmem:[#allocation4 + $0x13c4] ss:$72 sps:$4 sm:$0xff]  }
  0xf4   :  { %5659 = vmatprep.subr.bf16.mxu0 %v9605_v54  ;;  %v9689_v54 = vld [vmem:[#allocation4 + $0x1cc] ss:$72 sps:$4 sm:$0xff]  }
  0xf6   :  { %5562 = vmatpush1.bf16.msra.mxu1 %v9600_v55  ;;  %v9684_v55 = vld [vmem:[#allocation4 + $0x13c0] ss:$72 sps:$4 sm:$0xff]  }
  0xf7   :  { %5660 = vmatpush1.bf16.msra.mxu0 %v9603_v56  ;;  %5563 = vmatprep.subr.bf16.mxu1 %v9608_v40  ;;  %v9687_v56 = vld [vmem:[#allocation4 + $0x1c8] ss:$72 sps:$4 sm:$0xff]   ;;  %v9692_v40 = vld [vmem:[#allocation4 + $0x1454] ss:$72 sps:$4 sm:$0xff]  }
  0xf8   :  { %5661 = vmatprep.subr.bf16.mxu0 %v9611_v57  ;;  %v9695_v57 = vld [vmem:[#allocation4 + $0x25c] ss:$72 sps:$4 sm:$0xff]  }
  0xfa   :  { %5564 = vmatpush1.bf16.msra.mxu1 %v9606_v58  ;;  %v10580_v58 = vld [vmem:[%s11086_s0 + $0x14] ss:$24 sps:$4 sm:$0xff]  }
  0xfb   :  { %5662 = vmatpush1.bf16.msra.mxu0 %v9609_v59  ;;  %5565 = vmatprep.subr.bf16.mxu1 %v9614_v60  ;;  %v10811_v59 = vld [vmem:[%s11086_s0 + $0x4] ss:$24 sps:$4 sm:$0xff]   ;;  %v9690_v60 = vld [vmem:[#allocation4 + $0x1450] ss:$72 sps:$4 sm:$0xff]  }
  0xfc   :  { %5663 = vmatprep.subr.bf16.mxu0 %v9617_v61  ;;  %v9693_v61 = vld [vmem:[#allocation4 + $0x258] ss:$72 sps:$4 sm:$0xff]  }
  0xfe   :  { %5566 = vmatpush1.bf16.msra.mxu1 %v9612_v62  ;;  %v9698_v62 = vld [vmem:[#allocation4 + $0x14e4] ss:$72 sps:$4 sm:$0xff]  }
  0xff   :  { %5664 = vmatpush1.bf16.msra.mxu0 %v9615_v63  ;;  %5567 = vmatprep.subr.bf16.mxu1 %v9620_v0  ;;  %v9701_v63 = vld [vmem:[#allocation4 + $0x2ec] ss:$72 sps:$4 sm:$0xff]   ;;  %v9696_v0 = vld [vmem:[#allocation4 + $0x14e0] ss:$72 sps:$4 sm:$0xff]  }
 0x100   :  { %5665 = vmatprep.subr.bf16.mxu0 %v9623_v1  ;;  %v9699_v1 = vld [vmem:[#allocation4 + $0x2e8] ss:$72 sps:$4 sm:$0xff]  }
 0x102   :  { %5568 = vmatpush1.bf16.msra.mxu1 %v9618_v2  ;;  %v9704_v2 = vld [vmem:[#allocation4 + $0x1574] ss:$72 sps:$4 sm:$0xff]  }
 0x103   :  { %5666 = vmatpush1.bf16.msra.mxu0 %v9621_v3  ;;  %5569 = vmatprep.subr.bf16.mxu1 %v9626_v4  ;;  %v9707_v3 = vld [vmem:[#allocation4 + $0x37c] ss:$72 sps:$4 sm:$0xff]  }
 0x104   :  { %5667 = vmatprep.subr.bf16.mxu0 %v9629_v5 }
 0x106   :  { %5570 = vmatpush1.bf16.msra.mxu1 %v9624_v8  ;;  %v9702_v8 = vld [vmem:[#allocation4 + $0x1570] ss:$72 sps:$4 sm:$0xff]  }
 0x107   :  { %5668 = vmatpush1.bf16.msra.mxu0 %v9627_v9  ;;  %5571 = vmatprep.subr.bf16.mxu1 %v9632_v10  ;;  %v9705_v9 = vld [vmem:[#allocation4 + $0x378] ss:$72 sps:$4 sm:$0xff]  }
 0x108   :  { %5669 = vmatprep.subr.bf16.mxu0 %v9635_v11  ;;  %v9710_v11 = vld [vmem:[#allocation4 + $0x1604] ss:$72 sps:$4 sm:$0xff]  }
 0x10a   :  { %5572 = vmatpush1.bf16.msra.mxu1 %v9630_v12  ;;  %v9713_v12 = vld [vmem:[#allocation4 + $0x40c] ss:$72 sps:$4 sm:$0xff]  }
 0x10b   :  { %5670 = vmatpush1.bf16.msra.mxu0 %v9633_v13  ;;  %5573 = vmatprep.subr.bf16.mxu1 %v9638_v14  ;;  %v9708_v14 = vld [vmem:[#allocation4 + $0x1600] ss:$72 sps:$4 sm:$0xff]  }
 0x10c   :  { %5671 = vmatprep.subr.bf16.mxu0 %v9641_v15  ;;  %v9711_v15 = vld [vmem:[#allocation4 + $0x408] ss:$72 sps:$4 sm:$0xff]  }
 0x10e   :  { %5574 = vmatpush1.bf16.msra.mxu1 %v9636_v16  ;;  %v9716_v16 = vld [vmem:[#allocation4 + $0x1694] ss:$72 sps:$4 sm:$0xff]  }
 0x10f   :  { %5672 = vmatpush1.bf16.msra.mxu0 %v9639_v18  ;;  %5575 = vmatprep.subr.bf16.mxu1 %v9644_v19  ;;  %v9719_v18 = vld [vmem:[#allocation4 + $0x49c] ss:$72 sps:$4 sm:$0xff]   ;;  %v9714_v19 = vld [vmem:[#allocation4 + $0x1690] ss:$72 sps:$4 sm:$0xff]  }
 0x110   :  { %5673 = vmatprep.subr.bf16.mxu0 %v9647_v20  ;;  %v9717_v20 = vld [vmem:[#allocation4 + $0x498] ss:$72 sps:$4 sm:$0xff]  }
 0x112   :  { %5576 = vmatpush1.bf16.msra.mxu1 %v9642_v21  ;;  %v9722_v21 = vld [vmem:[#allocation4 + $0x1724] ss:$72 sps:$4 sm:$0xff]  }
 0x113   :  { %5674 = vmatpush1.bf16.msra.mxu0 %v9645_v22  ;;  %5577 = vmatprep.subr.bf16.mxu1 %v9650_v24  ;;  %v9725_v22 = vld [vmem:[#allocation4 + $0x52c] ss:$72 sps:$4 sm:$0xff]   ;;  %v9720_v24 = vld [vmem:[#allocation4 + $0x1720] ss:$72 sps:$4 sm:$0xff]  }
 0x114   :  { %5675 = vmatprep.subr.bf16.mxu0 %v9653_v25  ;;  %v9723_v25 = vld [vmem:[#allocation4 + $0x528] ss:$72 sps:$4 sm:$0xff]  }
 0x116   :  { %5578 = vmatpush1.bf16.msra.mxu1 %v9648_v26  ;;  %v9728_v26 = vld [vmem:[#allocation4 + $0x17b4] ss:$72 sps:$4 sm:$0xff]  }
 0x117   :  { %5676 = vmatpush1.bf16.msra.mxu0 %v9651_v29  ;;  %5579 = vmatprep.subr.bf16.mxu1 %v9656_v30  ;;  %v9731_v29 = vld [vmem:[#allocation4 + $0x5bc] ss:$72 sps:$4 sm:$0xff]   ;;  %v9726_v30 = vld [vmem:[#allocation4 + $0x17b0] ss:$72 sps:$4 sm:$0xff]  }
 0x118   :  { %5677 = vmatprep.subr.bf16.mxu0 %v9659_v34  ;;  %v9729_v34 = vld [vmem:[#allocation4 + $0x5b8] ss:$72 sps:$4 sm:$0xff]  }
 0x11a   :  { %5580 = vmatpush1.bf16.msra.mxu1 %v9654_v35  ;;  %v9734_v35 = vld [vmem:[#allocation4 + $0x1844] ss:$72 sps:$4 sm:$0xff]  }
 0x11b   :  { %5678 = vmatpush1.bf16.msra.mxu0 %v9657_v36  ;;  %5581 = vmatprep.subr.bf16.mxu1 %v9662_v37  ;;  %v9737_v36 = vld [vmem:[#allocation4 + $0x64c] ss:$72 sps:$4 sm:$0xff]  }
 0x11c   :  { %5679 = vmatprep.subr.bf16.mxu0 %v9665_v38 }
 0x11e   :  { %5582 = vmatpush1.bf16.msra.mxu1 %v9660_v39 }
 0x11f   :  { %5680 = vmatpush1.bf16.msra.mxu0 %v9663_v41  ;;  %5747 = vmatprep.subr.bf16.mxu1 %v9671_v43  ;;  %v9735_v43 = vld [vmem:[#allocation4 + $0x648] ss:$72 sps:$4 sm:$0xff]  }
 0x120   :  { %5698 = vmatprep.subr.bf16.mxu0 %v9668_v42  ;;  %v9732_v42 = vld [vmem:[#allocation4 + $0x1840] ss:$72 sps:$4 sm:$0xff]  }
 0x121   :  { %5584 = vmatmul.mubr.bf16.vlgmr.msra.gmra.mrb[8].mxu1 %v10767_v17  ;;  %v9681_v17 = vld [vmem:[#allocation4 + $0x138] ss:$72 sps:$4 sm:$0xff]  }
 0x122   :  { %5682 = vmatmul.mubr.bf16.vlgmr.msra.gmra.mrb[12].mxu0 %v10579_v7  ;;  %5748 = vmatpush1.bf16.msra.mxu1 %v9669_v45 }
 0x123   :  { %5699 = vmatpush1.bf16.msra.mxu0 %v9666_v44  ;;  %5749 = vmatprep.subr.bf16.mxu1 %v9677_v6  ;;  %v9743_v6 = vld [vmem:[#allocation4 + $0x6dc] ss:$72 sps:$4 sm:$0xff]  }
 0x124   :  { %5700 = vmatprep.subr.bf16.mxu0 %v9674_v46  ;;  %5691 = vmatprep.mubr.bf16.mxu0 %v10742_v27  ;;  %v9740_v46 = vld [vmem:[#allocation4 + $0x18d4] ss:$72 sps:$4 sm:$0xff]  }
 0x125   :  { %5593 = vmatprep.mubr.bf16.mxu1 %v10772_v23 }
 0x126   :  { %5750 = vmatpush1.bf16.msra.mxu1 %v9675_v50  ;;  %v9738_v50 = vld [vmem:[#allocation4 + $0x18d0] ss:$72 sps:$4 sm:$0xff]  }
 0x127   :  { %5701 = vmatpush1.bf16.msra.mxu0 %v9672_v47  ;;  %5751 = vmatprep.subr.bf16.mxu1 %v9683_v48  ;;  %v9746_v48 = vld [vmem:[#allocation4 + $0x1964] ss:$72 sps:$4 sm:$0xff]  }
 0x128   :  { %5702 = vmatprep.subr.bf16.mxu0 %v9680_v51  ;;  %v9741_v51 = vld [vmem:[#allocation4 + $0x6d8] ss:$72 sps:$4 sm:$0xff]  }
 0x129   :  { %5594 = vmatmul.mubr.bf16.gmra.mrb[20].mxu1 %v10778_v31 }
 0x12a   :  { %5692 = vmatmul.mubr.bf16.gmra.mrb[20].mxu0 %v10744_v28  ;;  %5752 = vmatpush1.bf16.msra.mxu1 %v9681_v17  ;;  %v9744_v17 = vld [vmem:[#allocation4 + $0x1960] ss:$72 sps:$4 sm:$0xff]  }
 0x12b   :  { %5703 = vmatpush1.bf16.msra.mxu0 %v9678_v49  ;;  %5753 = vmatprep.subr.bf16.mxu1 %v9689_v54  ;;  %v9749_v49 = vld [vmem:[#allocation4 + $0x76c] ss:$72 sps:$4 sm:$0xff]  }
 0x12c   :  { %5704 = vmatprep.subr.bf16.mxu0 %v9686_v53  ;;  %5730 = vmatprep.mubr.bf16.mxu0 %v10580_v58  ;;  %v9747_v53 = vld [vmem:[#allocation4 + $0x768] ss:$72 sps:$4 sm:$0xff]   ;;  %v9752_v54 = vld [vmem:[#allocation4 + $0x19f4] ss:$72 sps:$4 sm:$0xff]  }
 0x12d   :  { %5779 = vmatprep.mubr.bf16.mxu1 %v10811_v59  ;;  %v9761_v58 = vld [vmem:[#allocation4 + $0x88c] ss:$72 sps:$4 sm:$0xff]  }
 0x12e   :  { %5754 = vmatpush1.bf16.msra.mxu1 %v9687_v56  ;;  %v9750_v56 = vld [vmem:[#allocation4 + $0x19f0] ss:$72 sps:$4 sm:$0xff]  }
 0x12f   :  { %5705 = vmatpush1.bf16.msra.mxu0 %v9684_v55  ;;  %5755 = vmatprep.subr.bf16.mxu1 %v9695_v57  ;;  %v9755_v55 = vld [vmem:[#allocation4 + $0x7fc] ss:$72 sps:$4 sm:$0xff]  }
 0x130   :  { %5706 = vmatprep.subr.bf16.mxu0 %v9692_v40  ;;  %v9753_v40 = vld [vmem:[#allocation4 + $0x7f8] ss:$72 sps:$4 sm:$0xff]   ;;  %v9758_v57 = vld [vmem:[#allocation4 + $0x1a84] ss:$72 sps:$4 sm:$0xff]  }
 0x132   :  { %5756 = vmatpush1.bf16.msra.mxu1 %v9693_v61  ;;  %v9759_v61 = vld [vmem:[#allocation4 + $0x888] ss:$72 sps:$4 sm:$0xff]  }
 0x133   :  { %5707 = vmatpush1.bf16.msra.mxu0 %v9690_v60  ;;  %5757 = vmatprep.subr.bf16.mxu1 %v9701_v63  ;;  %v9756_v60 = vld [vmem:[#allocation4 + $0x1a80] ss:$72 sps:$4 sm:$0xff]   ;;  %v9767_v63 = vld [vmem:[#allocation4 + $0x24] ss:$72 sps:$4 sm:$0xff]  }
 0x134   :  { %5708 = vmatprep.subr.bf16.mxu0 %v9698_v62  ;;  %v10814_v4 = vpop.f32.mrb[0].mxu1  ;;  %v9764_v62 = vld [vmem:[#allocation4 + $0x91c] ss:$72 sps:$4 sm:$0xff]  }
 0x135   :  { %v10816_v5 = vpop.f32.mrb[1].mxu1 }
 0x136   :  { %5758 = vmatpush1.bf16.msra.mxu1 %v9699_v1  ;;  %v10818_v10 = vpop.f32.mrb[2].mxu1  ;;  %v9765_v1 = vld [vmem:[#allocation4 + $0x20] ss:$72 sps:$4 sm:$0xff]  }
 0x137   :  { %5709 = vmatpush1.bf16.msra.mxu0 %v9696_v0  ;;  %5759 = vmatprep.subr.bf16.mxu1 %v9707_v3  ;;  %v10820_v13 = vpop.f32.mrb[3].mxu1  ;;  %v9762_v0 = vld [vmem:[#allocation4 + $0x918] ss:$72 sps:$4 sm:$0xff]   ;;  %v9773_v3 = vld [vmem:[#allocation4 + $0xb4] ss:$72 sps:$4 sm:$0xff]  }
 0x138   :  { %5710 = vmatprep.subr.bf16.mxu0 %v9704_v2  ;;  %v9770_v2 = vld [vmem:[#allocation4 + $0x9ac] ss:$72 sps:$4 sm:$0xff]  }
 0x13a   :  { %5760 = vmatpush1.bf16.msra.mxu1 %v9705_v9  ;;  %v10828_v9 = vld [vmem:[%s11086_s0] ss:$24 sps:$4 sm:$0xff]  }
 0x13b   :  { %5711 = vmatpush1.bf16.msra.mxu0 %v9702_v8  ;;  %5761 = vmatprep.subr.bf16.mxu1 %v9713_v12  ;;  %v10582_v8 = vld [vmem:[%s11086_s0 + $0x10] ss:$24 sps:$4 sm:$0xff]  }
 0x13c   :  { %5712 = vmatprep.subr.bf16.mxu0 %v9710_v11  ;;  %v5350_v38 = vpop.f32.mrb[4].mxu1  ;;  %v9768_v11 = vld [vmem:[#allocation4 + $0x9a8] ss:$72 sps:$4 sm:$0xff]  }
 0x13d   :  { %v5399_v37 = vpop.f32.mrb[4].mxu0  ;;  %v5351_v41 = vpop.f32.mrb[5].mxu1  ;;  %v9771_v12 = vld [vmem:[#allocation4 + $0xb0] ss:$72 sps:$4 sm:$0xff]   ;;  %v9803_v38 = vld [vmem:[#allocation4 + $0x384] ss:$72 sps:$4 sm:$0xff]  }
 0x13e   :  { %5762 = vmatpush1.bf16.msra.mxu1 %v9711_v15  ;;  %v5400_v39 = vpop.f32.mrb[5].mxu0  ;;  %v5352_v45 = vpop.f32.mrb[6].mxu1  ;;  %v9779_v15 = vld [vmem:[#allocation4 + $0x144] ss:$72 sps:$4 sm:$0xff]   ;;  %v9801_v41 = vld [vmem:[#allocation4 + $0x380] ss:$72 sps:$4 sm:$0xff]  }
 0x13f   :  { %5713 = vmatpush1.bf16.msra.mxu0 %v9708_v14  ;;  %5763 = vmatprep.subr.bf16.mxu1 %v9719_v18  ;;  %v5401_v44 = vpop.f32.mrb[6].mxu0  ;;  %v5353_v47 = vpop.f32.mrb[7].mxu1  ;;  %v9776_v14 = vld [vmem:[#allocation4 + $0xa3c] ss:$72 sps:$4 sm:$0xff]   ;;  %v9777_v18 = vld [vmem:[#allocation4 + $0x140] ss:$72 sps:$4 sm:$0xff]  }
 0x140   :  { %5714 = vmatprep.subr.bf16.mxu0 %v9716_v16  ;;  %v5402_v7 = vpop.f32.mrb[7].mxu0  ;;  %v9774_v16 = vld [vmem:[#allocation4 + $0xa38] ss:$72 sps:$4 sm:$0xff]   ;;  %v9800_v37 = vld [vmem:[#allocation4 + $0xc7c] ss:$72 sps:$4 sm:$0xff]  }
 0x141   :  { %v9809_v7 = vld [vmem:[#allocation4 + $0x414] ss:$72 sps:$4 sm:$0xff]  }
 0x142   :  { %5764 = vmatpush1.bf16.msra.mxu1 %v9717_v20  ;;  %v9785_v20 = vld [vmem:[#allocation4 + $0x1d4] ss:$72 sps:$4 sm:$0xff]  }
 0x143   :  { %5715 = vmatpush1.bf16.msra.mxu0 %v9714_v19  ;;  %5765 = vmatprep.subr.bf16.mxu1 %v9725_v22  ;;  %v9782_v19 = vld [vmem:[#allocation4 + $0xacc] ss:$72 sps:$4 sm:$0xff]   ;;  %v9783_v22 = vld [vmem:[#allocation4 + $0x1d0] ss:$72 sps:$4 sm:$0xff]  }
 0x144   :  { %5716 = vmatprep.subr.bf16.mxu0 %v9722_v21  ;;  %v9780_v21 = vld [vmem:[#allocation4 + $0xac8] ss:$72 sps:$4 sm:$0xff]  }
 0x146   :  { %5766 = vmatpush1.bf16.msra.mxu1 %v9723_v25  ;;  %v9791_v25 = vld [vmem:[#allocation4 + $0x264] ss:$72 sps:$4 sm:$0xff]  }
 0x147   :  { %5717 = vmatpush1.bf16.msra.mxu0 %v9720_v24  ;;  %5767 = vmatprep.subr.bf16.mxu1 %v9731_v29  ;;  %v9788_v24 = vld [vmem:[#allocation4 + $0xb5c] ss:$72 sps:$4 sm:$0xff]   ;;  %v9789_v29 = vld [vmem:[#allocation4 + $0x260] ss:$72 sps:$4 sm:$0xff]  }
 0x148   :  { %5718 = vmatprep.subr.bf16.mxu0 %v9728_v26  ;;  %v9786_v26 = vld [vmem:[#allocation4 + $0xb58] ss:$72 sps:$4 sm:$0xff]  }
 0x14a   :  { %5768 = vmatpush1.bf16.msra.mxu1 %v9729_v34  ;;  %v9797_v34 = vld [vmem:[#allocation4 + $0x2f4] ss:$72 sps:$4 sm:$0xff]  }
 0x14b   :  { %5719 = vmatpush1.bf16.msra.mxu0 %v9726_v30  ;;  %5769 = vmatprep.subr.bf16.mxu1 %v9737_v36  ;;  %v9794_v30 = vld [vmem:[#allocation4 + $0xbec] ss:$72 sps:$4 sm:$0xff]   ;;  %v9795_v36 = vld [vmem:[#allocation4 + $0x2f0] ss:$72 sps:$4 sm:$0xff]  }
 0x14c   :  { %5720 = vmatprep.subr.bf16.mxu0 %v9734_v35  ;;  %v9792_v35 = vld [vmem:[#allocation4 + $0xbe8] ss:$72 sps:$4 sm:$0xff]  }
 0x14e   :  { %5770 = vmatpush1.bf16.msra.mxu1 %v9735_v43 }
 0x14f   :  { %5721 = vmatpush1.bf16.msra.mxu0 %v9732_v42  ;;  %5771 = vmatprep.subr.bf16.mxu1 %v9743_v6  ;;  %v9806_v6 = vld [vmem:[#allocation4 + $0xd0c] ss:$72 sps:$4 sm:$0xff]  }
 0x150   :  { %5722 = vmatprep.subr.bf16.mxu0 %v9740_v46 }
 0x152   :  { %5772 = vmatpush1.bf16.msra.mxu1 %v9741_v51 }
 0x153   :  { %5723 = vmatpush1.bf16.msra.mxu0 %v9738_v50  ;;  %5773 = vmatprep.subr.bf16.mxu1 %v9749_v49  ;;  %v9804_v50 = vld [vmem:[#allocation4 + $0xd08] ss:$72 sps:$4 sm:$0xff]  }
 0x154   :  { %5724 = vmatprep.subr.bf16.mxu0 %v9746_v48 }
 0x156   :  { %5774 = vmatpush1.bf16.msra.mxu1 %v9747_v53  ;;  %v9815_v53 = vld [vmem:[#allocation4 + $0x4a4] ss:$72 sps:$4 sm:$0xff]  }
 0x157   :  { %5725 = vmatpush1.bf16.msra.mxu0 %v9744_v17  ;;  %5775 = vmatprep.subr.bf16.mxu1 %v9755_v55 }
 0x158   :  { %5726 = vmatprep.subr.bf16.mxu0 %v9752_v54 }
 0x15a   :  { %5776 = vmatpush1.bf16.msra.mxu1 %v9753_v40 }
 0x15b   :  { %5727 = vmatpush1.bf16.msra.mxu0 %v9750_v56  ;;  %5777 = vmatprep.subr.bf16.mxu1 %v9761_v58  ;;  %v9813_v58 = vld [vmem:[#allocation4 + $0x4a0] ss:$72 sps:$4 sm:$0xff]  }
 0x15c   :  { %5728 = vmatprep.subr.bf16.mxu0 %v9758_v57  ;;  %v9810_v57 = vld [vmem:[#allocation4 + $0xd98] ss:$72 sps:$4 sm:$0xff]  }
 0x15e   :  { %5778 = vmatpush1.bf16.msra.mxu1 %v9759_v61 }
 0x15f   :  { %5729 = vmatpush1.bf16.msra.mxu0 %v9756_v60  ;;  %5794 = vmatprep.subr.bf16.mxu1 %v9764_v62  ;;  %v9818_v62 = vld [vmem:[#allocation4 + $0xe2c] ss:$72 sps:$4 sm:$0xff]  }
 0x160   :  { %5888 = vmatprep.subr.bf16.mxu0 %v9767_v63  ;;  %v9821_v63 = vld [vmem:[#allocation4 + $0x534] ss:$72 sps:$4 sm:$0xff]  }
 0x161   :  { %5780 = vmatmul.mubr.bf16.vlgmr.msra.gmra.mrb[24].mxu1 %v10828_v9 }
 0x162   :  { %5731 = vmatmul.mubr.bf16.vlgmr.msra.gmra.mrb[12].mxu0 %v10582_v8  ;;  %5795 = vmatpush1.bf16.msra.mxu1 %v9762_v0  ;;  %v9824_v8 = vld [vmem:[#allocation4 + $0xebc] ss:$72 sps:$4 sm:$0xff]  }
 0x163   :  { %5889 = vmatpush1.bf16.msra.mxu0 %v9765_v1  ;;  %5796 = vmatprep.subr.bf16.mxu1 %v9770_v2  ;;  %v9816_v2 = vld [vmem:[#allocation4 + $0xe28] ss:$72 sps:$4 sm:$0xff]  }
 0x164   :  { %5890 = vmatprep.subr.bf16.mxu0 %v9773_v3  ;;  %5740 = vmatprep.mubr.bf16.mxu0 %v10772_v23  ;;  %v9819_v3 = vld [vmem:[#allocation4 + $0x530] ss:$72 sps:$4 sm:$0xff]  }
 0x165   :  { %5785 = vmatprep.mubr.bf16.mxu1 %v10749_v32 }
 0x166   :  { %5797 = vmatpush1.bf16.msra.mxu1 %v9768_v11  ;;  %v9827_v11 = vld [vmem:[#allocation4 + $0x5c4] ss:$72 sps:$4 sm:$0xff]  }
 0x167   :  { %5891 = vmatpush1.bf16.msra.mxu0 %v9771_v12  ;;  %5798 = vmatprep.subr.bf16.mxu1 %v9776_v14  ;;  %v9822_v12 = vld [vmem:[#allocation4 + $0xeb8] ss:$72 sps:$4 sm:$0xff]  }
 0x168   :  { %5892 = vmatprep.subr.bf16.mxu0 %v9779_v15  ;;  %v9825_v14 = vld [vmem:[#allocation4 + $0x5c0] ss:$72 sps:$4 sm:$0xff]   ;;  %v9830_v15 = vld [vmem:[#allocation4 + $0xf4c] ss:$72 sps:$4 sm:$0xff]  }
 0x169   :  { %5786 = vmatmul.mubr.bf16.gmra.mrb[28].mxu1 %v10751_v33 }
 0x16a   :  { %5741 = vmatmul.mubr.bf16.gmra.mrb[24].mxu0 %v10778_v31  ;;  %5799 = vmatpush1.bf16.msra.mxu1 %v9774_v16  ;;  %v9833_v16 = vld [vmem:[#allocation4 + $0x654] ss:$72 sps:$4 sm:$0xff]  }
 0x16b   :  { %5893 = vmatpush1.bf16.msra.mxu0 %v9777_v18  ;;  %5800 = vmatprep.subr.bf16.mxu1 %v9782_v19  ;;  %v9828_v18 = vld [vmem:[#allocation4 + $0xf48] ss:$72 sps:$4 sm:$0xff]  }
 0x16c   :  { %5894 = vmatprep.subr.bf16.mxu0 %v9785_v20  ;;  %5920 = vmatprep.mubr.bf16.mxu0 %v10811_v59  ;;  %v9798_v59 = vld [vmem:[#allocation4 + $0xc78] ss:$72 sps:$4 sm:$0xff]   ;;  %v9836_v20 = vld [vmem:[#allocation4 + $0xfdc] ss:$72 sps:$4 sm:$0xff]  }
 0x16d   :  { %5826 = vmatprep.mubr.bf16.mxu1 %v10794_v52  ;;  %v9831_v19 = vld [vmem:[#allocation4 + $0x650] ss:$72 sps:$4 sm:$0xff]  }
 0x16e   :  { %5801 = vmatpush1.bf16.msra.mxu1 %v9780_v21  ;;  %v9839_v21 = vld [vmem:[#allocation4 + $0x6e4] ss:$72 sps:$4 sm:$0xff]  }
 0x16f   :  { %5895 = vmatpush1.bf16.msra.mxu0 %v9783_v22  ;;  %5802 = vmatprep.subr.bf16.mxu1 %v9788_v24  ;;  %v9834_v22 = vld [vmem:[#allocation4 + $0xfd8] ss:$72 sps:$4 sm:$0xff]  }
 0x170   :  { %5896 = vmatprep.subr.bf16.mxu0 %v9791_v25  ;;  %v9837_v24 = vld [vmem:[#allocation4 + $0x6e0] ss:$72 sps:$4 sm:$0xff]   ;;  %v9842_v25 = vld [vmem:[#allocation4 + $0x106c] ss:$72 sps:$4 sm:$0xff]  }
 0x172   :  { %5803 = vmatpush1.bf16.msra.mxu1 %v9786_v26  ;;  %v9845_v26 = vld [vmem:[#allocation4 + $0x774] ss:$72 sps:$4 sm:$0xff]  }
 0x173   :  { %5897 = vmatpush1.bf16.msra.mxu0 %v9789_v29  ;;  %5804 = vmatprep.subr.bf16.mxu1 %v9794_v30  ;;  %v9840_v29 = vld [vmem:[#allocation4 + $0x1068] ss:$72 sps:$4 sm:$0xff]  }
 0x174   :  { %5898 = vmatprep.subr.bf16.mxu0 %v9797_v34  ;;  %v9843_v30 = vld [vmem:[#allocation4 + $0x770] ss:$72 sps:$4 sm:$0xff]   ;;  %v9848_v34 = vld [vmem:[#allocation4 + $0x10fc] ss:$72 sps:$4 sm:$0xff]  }
 0x175   :  { %v5438_v39 = vpop.f32.mrb[0].mxu0 }
 0x176   :  { %v9127_v52 = vadd.f32 %v5438_v39, %v10814_v4  ;;  %v5440_v42 = vpop.f32.mrb[1].mxu0  ;;  %5805 = vmatpush1.bf16.msra.mxu1 %v9792_v35  ;;  %v9851_v35 = vld [vmem:[#allocation4 + $0x804] ss:$72 sps:$4 sm:$0xff]   ;;  %v9857_v39 = vld [vmem:[#allocation4 + $0x894] ss:$72 sps:$4 sm:$0xff]  }
 0x177   :  { %v9128_v43 = vadd.f32 %v5440_v42, %v10816_v5  ;;  %v5442_v44 = vpop.f32.mrb[2].mxu0  ;;  %5899 = vmatpush1.bf16.msra.mxu0 %v9795_v36  ;;  %5806 = vmatprep.subr.bf16.mxu1 %v9800_v37  ;;  %v9807_v5 = vld [vmem:[#allocation4 + $0x410] ss:$72 sps:$4 sm:$0xff]   ;;  %v9849_v37 = vld [vmem:[#allocation4 + $0x800] ss:$72 sps:$4 sm:$0xff]  }
 0x178   :  { %v9129_v45 = vadd.f32 %v5442_v44, %v10818_v10  ;;  %v5444_v46 = vpop.f32.mrb[3].mxu0  ;;  %5900 = vmatprep.subr.bf16.mxu0 %v9803_v38  ;;  %v6593_v51 = vmax.f32 %v9127_v52, 0.0  ;;  %v9812_v10 = vld [vmem:[#allocation4 + $0xd9c] ss:$72 sps:$4 sm:$0xff]   ;;  %v9846_v36 = vld [vmem:[#allocation4 + $0x10f8] ss:$72 sps:$4 sm:$0xff]  }
 0x179   :  { %v9130_v47 = vadd.f32 %v5444_v46, %v10820_v13  ;;  %v6594_v49 = vmax.f32 %v9128_v43, 0.0  ;;  %v9854_v38 = vld [vmem:[#allocation4 + $0x118c] ss:$72 sps:$4 sm:$0xff]   ;;  %v9860_v52 = vld [vmem:[#allocation4 + $0x121c] ss:$72 sps:$4 sm:$0xff]  }
 0x17a   :  { %v6599_v48 = vmax.f32 %v9129_v45, 0.0  ;;  %5807 = vmatpush1.bf16.msra.mxu1 %v9798_v59  ;;  %v9852_v59 = vld [vmem:[#allocation4 + $0x1188] ss:$72 sps:$4 sm:$0xff]   ;;  %v9863_v42 = vld [vmem:[#allocation4 + $0x924] ss:$72 sps:$4 sm:$0xff]  }
 0x17b   :  { %v6600_v4 = vmax.f32 %v9130_v47, 0.0  ;;  %5901 = vmatpush1.bf16.msra.mxu0 %v9801_v41  ;;  %5808 = vmatprep.subr.bf16.mxu1 %v9806_v6  ;;  %v9855_v41 = vld [vmem:[#allocation4 + $0x890] ss:$72 sps:$4 sm:$0xff]   ;;  %v9861_v44 = vld [vmem:[#allocation4 + $0x920] ss:$72 sps:$4 sm:$0xff]  }
 0x17c   :  { %v10841_v17 = vpack.c.bf16 %v6599_v48, %v6593_v51  ;;  %5902 = vmatprep.subr.bf16.mxu0 %v9809_v7  ;;  %v5497_v56 = vpop.f32.mrb[12].mxu1  ;;  %v9858_v43 = vld [vmem:[#allocation4 + $0x1218] ss:$72 sps:$4 sm:$0xff]   ;;  %v9866_v45 = vld [vmem:[#allocation4 + $0x12ac] ss:$72 sps:$4 sm:$0xff]  }
 0x17d   :  { %v10843_v54 = vpack.c.bf16 %v6600_v4, %v6594_v49  ;;  %v5448_v55 = vpop.f32.mrb[8].mxu0  ;;  %v5498_v13 = vpop.f32.mrb[13].mxu1  ;;  %v9869_v46 = vld [vmem:[#allocation4 + $0x9b4] ss:$72 sps:$4 sm:$0xff]   ;;  %v10849_v6 = vld [vmem:[%s11086_s0 + $0x8] ss:$24 sps:$4 sm:$0xff]  }
 0x17e   :  { %v5449_v40 = vpop.f32.mrb[9].mxu0  ;;  %5809 = vmatpush1.bf16.msra.mxu1 %v9804_v50  ;;  %v5499_v61 = vpop.f32.mrb[14].mxu1  ;;  %v9864_v7 = vld [vmem:[#allocation4 + $0x12a8] ss:$72 sps:$4 sm:$0xff]   ;;  %v9872_v50 = vld [vmem:[#allocation4 + $0x133c] ss:$72 sps:$4 sm:$0xff]  }
 0x17f   :  { %5903 = vmatpush1.bf16.msra.mxu0 %v9807_v5  ;;  %v5450_v60 = vpop.f32.mrb[10].mxu0  ;;  %5810 = vmatprep.subr.bf16.mxu1 %v9812_v10  ;;  %v5500_v1 = vpop.f32.mrb[15].mxu1  ;;  %v9867_v47 = vld [vmem:[#allocation4 + $0x9b0] ss:$72 sps:$4 sm:$0xff]   ;;  %v9875_v51 = vld [vmem:[#allocation4 + $0xa44] ss:$72 sps:$4 sm:$0xff]  }
 0x180   :  { %5904 = vmatprep.subr.bf16.mxu0 %v9815_v53  ;;  %v5451_v0 = vpop.f32.mrb[11].mxu0  ;;  %v9870_v48 = vld [vmem:[#allocation4 + $0x1338] ss:$72 sps:$4 sm:$0xff]   ;;  %v9881_v4 = vld [vmem:[#allocation4 + $0xad4] ss:$72 sps:$4 sm:$0xff]  }
 0x181   :  { %v9873_v49 = vld [vmem:[#allocation4 + $0xa40] ss:$72 sps:$4 sm:$0xff]   ;;  %v9879_v10 = vld [vmem:[#allocation4 + $0xad0] ss:$72 sps:$4 sm:$0xff]   ;;  %v9884_v53 = vld [vmem:[#allocation4 + $0x145c] ss:$72 sps:$4 sm:$0xff]  }
 0x182   :  { %5811 = vmatpush1.bf16.msra.mxu1 %v9810_v57  ;;  %v9876_v5 = vld [vmem:[#allocation4 + $0x13c8] ss:$72 sps:$4 sm:$0xff]   ;;  %v9887_v55 = vld [vmem:[#allocation4 + $0xb64] ss:$72 sps:$4 sm:$0xff]   ;;  %v9882_v13 = vld [vmem:[#allocation4 + $0x1458] ss:$72 sps:$4 sm:$0xff]  }
 0x183   :  { %5905 = vmatpush1.bf16.msra.mxu0 %v9813_v58  ;;  %5812 = vmatprep.subr.bf16.mxu1 %v9818_v62  ;;  %v10859_v56 = vld [vmem:[%s11086_s0 + $0x14] ss:$24 sps:$4 sm:$0xff]   ;;  %v9885_v57 = vld [vmem:[#allocation4 + $0xb60] ss:$72 sps:$4 sm:$0xff]   ;;  %v9891_v62 = vld [vmem:[#allocation4 + $0xbf0] ss:$72 sps:$4 sm:$0xff]  }
 0x184   :  { %5906 = vmatprep.subr.bf16.mxu0 %v9821_v63  ;;  %v10586_v40 = vld [vmem:[%s11086_s0 + $0xc] ss:$24 sps:$4 sm:$0xff]   ;;  %v9893_v60 = vld [vmem:[#allocation4 + $0xbf4] ss:$72 sps:$4 sm:$0xff]   ;;  %v9888_v61 = vld [vmem:[#allocation4 + $0x14e8] ss:$72 sps:$4 sm:$0xff]  }
 0x185   :  { %v9890_v58 = vld [vmem:[#allocation4 + $0x14ec] ss:$72 sps:$4 sm:$0xff]   ;;  %v9896_v63 = vld [vmem:[#allocation4 + $0x157c] ss:$72 sps:$4 sm:$0xff]   ;;  %v9894_v1 = vld [vmem:[#allocation4 + $0x1578] ss:$72 sps:$4 sm:$0xff]  }
 0x186   :  { %5813 = vmatpush1.bf16.msra.mxu1 %v9816_v2  ;;  %v9899_v0 = vld [vmem:[#allocation4 + $0xc84] ss:$72 sps:$4 sm:$0xff]   ;;  %v9897_v2 = vld [vmem:[#allocation4 + $0xc80] ss:$72 sps:$4 sm:$0xff]  }
 0x187   :  { %5907 = vmatpush1.bf16.msra.mxu0 %v9819_v3  ;;  %5814 = vmatprep.subr.bf16.mxu1 %v9824_v8  ;;  %v9902_v3 = vld [vmem:[#allocation4 + $0x160c] ss:$72 sps:$4 sm:$0xff]  }
 0x188   :  { %5908 = vmatprep.subr.bf16.mxu0 %v9827_v11  ;;  %v9905_v8 = vld [vmem:[#allocation4 + $0xd14] ss:$72 sps:$4 sm:$0xff]   ;;  %v9900_v11 = vld [vmem:[#allocation4 + $0x1608] ss:$72 sps:$4 sm:$0xff]  }
 0x18a   :  { %5815 = vmatpush1.bf16.msra.mxu1 %v9822_v12  ;;  %v9903_v12 = vld [vmem:[#allocation4 + $0xd10] ss:$72 sps:$4 sm:$0xff]  }
 0x18b   :  { %5909 = vmatpush1.bf16.msra.mxu0 %v9825_v14  ;;  %5816 = vmatprep.subr.bf16.mxu1 %v9830_v15  ;;  %v9908_v14 = vld [vmem:[#allocation4 + $0x169c] ss:$72 sps:$4 sm:$0xff]  }
 0x18c   :  { %5910 = vmatprep.subr.bf16.mxu0 %v9833_v16  ;;  %v9911_v15 = vld [vmem:[#allocation4 + $0xda4] ss:$72 sps:$4 sm:$0xff]  }
 0x18e   :  { %5817 = vmatpush1.bf16.msra.mxu1 %v9828_v18 }
 0x18f   :  { %5911 = vmatpush1.bf16.msra.mxu0 %v9831_v19  ;;  %5818 = vmatprep.subr.bf16.mxu1 %v9836_v20 }
 0x190   :  { %5912 = vmatprep.subr.bf16.mxu0 %v9839_v21  ;;  %v9906_v21 = vld [vmem:[#allocation4 + $0x1698] ss:$72 sps:$4 sm:$0xff]  }
 0x192   :  { %5819 = vmatpush1.bf16.msra.mxu1 %v9834_v22  ;;  %v9909_v22 = vld [vmem:[#allocation4 + $0xda0] ss:$72 sps:$4 sm:$0xff]  }
 0x193   :  { %5913 = vmatpush1.bf16.msra.mxu0 %v9837_v24  ;;  %5820 = vmatprep.subr.bf16.mxu1 %v9842_v25 }
 0x194   :  { %5914 = vmatprep.subr.bf16.mxu0 %v9845_v26  ;;  %v9914_v26 = vld [vmem:[#allocation4 + $0x172c] ss:$72 sps:$4 sm:$0xff]  }
 0x196   :  { %5821 = vmatpush1.bf16.msra.mxu1 %v9840_v29  ;;  %v9917_v29 = vld [vmem:[#allocation4 + $0xe34] ss:$72 sps:$4 sm:$0xff]  }
 0x197   :  { %5915 = vmatpush1.bf16.msra.mxu0 %v9843_v30  ;;  %5822 = vmatprep.subr.bf16.mxu1 %v9848_v34 }
 0x198   :  { %5916 = vmatprep.subr.bf16.mxu0 %v9851_v35  ;;  %v9912_v35 = vld [vmem:[#allocation4 + $0x1728] ss:$72 sps:$4 sm:$0xff]  }
 0x19a   :  { %5823 = vmatpush1.bf16.msra.mxu1 %v9846_v36  ;;  %v9915_v36 = vld [vmem:[#allocation4 + $0xe30] ss:$72 sps:$4 sm:$0xff]  }
 0x19b   :  { %5917 = vmatpush1.bf16.msra.mxu0 %v9849_v37  ;;  %5824 = vmatprep.subr.bf16.mxu1 %v9854_v38  ;;  %v9920_v37 = vld [vmem:[#allocation4 + $0x17bc] ss:$72 sps:$4 sm:$0xff]  }
 0x19c   :  { %5918 = vmatprep.subr.bf16.mxu0 %v9857_v39  ;;  %v9923_v38 = vld [vmem:[#allocation4 + $0xec4] ss:$72 sps:$4 sm:$0xff]   ;;  %v9918_v39 = vld [vmem:[#allocation4 + $0x17b8] ss:$72 sps:$4 sm:$0xff]  }
 0x19e   :  { %5825 = vmatpush1.bf16.msra.mxu1 %v9852_v59  ;;  %v9921_v59 = vld [vmem:[#allocation4 + $0xec0] ss:$72 sps:$4 sm:$0xff]  }
 0x19f   :  { %5919 = vmatpush1.bf16.msra.mxu0 %v9855_v41  ;;  %5841 = vmatprep.subr.bf16.mxu1 %v9860_v52  ;;  %v9926_v41 = vld [vmem:[#allocation4 + $0x184c] ss:$72 sps:$4 sm:$0xff]  }
 0x1a0   :  { %5935 = vmatprep.subr.bf16.mxu0 %v9863_v42  ;;  %v9929_v52 = vld [vmem:[#allocation4 + $0xf54] ss:$72 sps:$4 sm:$0xff]   ;;  %v9924_v42 = vld [vmem:[#allocation4 + $0x1848] ss:$72 sps:$4 sm:$0xff]  }
 0x1a1   :  { %5827 = vmatmul.mubr.bf16.vlgmr.msra.gmra.mrb[32].mxu1 %v10849_v6 }
 0x1a2   :  { %5921 = vmatmul.mubr.bf16.vlgmr.msra.gmra.mrb[28].mxu0 %v10828_v9  ;;  %5842 = vmatpush1.bf16.msra.mxu1 %v9858_v43  ;;  %v9878_v9 = vld [vmem:[#allocation4 + $0x13cc] ss:$72 sps:$4 sm:$0xff]   ;;  %v9927_v43 = vld [vmem:[#allocation4 + $0xf50] ss:$72 sps:$4 sm:$0xff]  }
 0x1a3   :  { %5936 = vmatpush1.bf16.msra.mxu0 %v9861_v44  ;;  %5843 = vmatprep.subr.bf16.mxu1 %v9866_v45  ;;  %v9932_v44 = vld [vmem:[#allocation4 + $0x18dc] ss:$72 sps:$4 sm:$0xff]  }
 0x1a4   :  { %5937 = vmatprep.subr.bf16.mxu0 %v9869_v46  ;;  %5832 = vmatprep.mubr.bf16.mxu1 %v10742_v27  ;;  %v9935_v45 = vld [vmem:[#allocation4 + $0xfe4] ss:$72 sps:$4 sm:$0xff]   ;;  %v9930_v46 = vld [vmem:[#allocation4 + $0x18d8] ss:$72 sps:$4 sm:$0xff]  }
 0x1a5   :  { %5926 = vmatprep.mubr.bf16.mxu0 %v10749_v32 }
 0x1a6   :  { %5844 = vmatpush1.bf16.msra.mxu1 %v9864_v7  ;;  %v9933_v7 = vld [vmem:[#allocation4 + $0xfe0] ss:$72 sps:$4 sm:$0xff]  }
 0x1a7   :  { %5938 = vmatpush1.bf16.msra.mxu0 %v9867_v47  ;;  %5845 = vmatprep.subr.bf16.mxu1 %v9872_v50  ;;  %v9938_v47 = vld [vmem:[#allocation4 + $0x196c] ss:$72 sps:$4 sm:$0xff]  }
 0x1a8   :  { %5939 = vmatprep.subr.bf16.mxu0 %v9875_v51  ;;  %v9941_v50 = vld [vmem:[#allocation4 + $0x1074] ss:$72 sps:$4 sm:$0xff]   ;;  %v9936_v51 = vld [vmem:[#allocation4 + $0x1968] ss:$72 sps:$4 sm:$0xff]  }
 0x1a9   :  { %5833 = vmatmul.mubr.bf16.gmra.mrb[28].mxu1 %v10744_v28 }
 0x1aa   :  { %5927 = vmatmul.mubr.bf16.gmra.mrb[32].mxu0 %v10751_v33  ;;  %5846 = vmatpush1.bf16.msra.mxu1 %v9870_v48  ;;  %v9939_v48 = vld [vmem:[#allocation4 + $0x1070] ss:$72 sps:$4 sm:$0xff]  }
 0x1ab   :  { %5940 = vmatpush1.bf16.msra.mxu0 %v9873_v49  ;;  %5847 = vmatprep.subr.bf16.mxu1 %v9878_v9  ;;  %v9944_v49 = vld [vmem:[#allocation4 + $0x19fc] ss:$72 sps:$4 sm:$0xff]  }
 0x1ac   :  { %5941 = vmatprep.subr.bf16.mxu0 %v9881_v4  ;;  %5873 = vmatprep.mubr.bf16.mxu1 %v10859_v56  ;;  %v9947_v9 = vld [vmem:[#allocation4 + $0x1104] ss:$72 sps:$4 sm:$0xff]   ;;  %v9942_v4 = vld [vmem:[#allocation4 + $0x19f8] ss:$72 sps:$4 sm:$0xff]  }
 0x1ad   :  { %5967 = vmatprep.mubr.bf16.mxu0 %v10586_v40  ;;  %v9951_v40 = vld [vmem:[#allocation4 + $0x1190] ss:$72 sps:$4 sm:$0xff]  }
 0x1ae   :  { %5848 = vmatpush1.bf16.msra.mxu1 %v9876_v5  ;;  %v9945_v5 = vld [vmem:[#allocation4 + $0x1100] ss:$72 sps:$4 sm:$0xff]  }
 0x1af   :  { %5942 = vmatpush1.bf16.msra.mxu0 %v9879_v10  ;;  %5849 = vmatprep.subr.bf16.mxu1 %v9884_v53  ;;  %v9950_v10 = vld [vmem:[#allocation4 + $0x1a8c] ss:$72 sps:$4 sm:$0xff]  }
 0x1b0   :  { %5943 = vmatprep.subr.bf16.mxu0 %v9887_v55  ;;  %v9953_v53 = vld [vmem:[#allocation4 + $0x1194] ss:$72 sps:$4 sm:$0xff]   ;;  %v9948_v55 = vld [vmem:[#allocation4 + $0x1a88] ss:$72 sps:$4 sm:$0xff]  }
 0x1b2   :  { %5850 = vmatpush1.bf16.msra.mxu1 %v9882_v13  ;;  %v9956_v13 = vld [vmem:[#allocation4 + $0x1224] ss:$72 sps:$4 sm:$0xff]  }
 0x1b3   :  { %5944 = vmatpush1.bf16.msra.mxu0 %v9885_v57  ;;  %5851 = vmatprep.subr.bf16.mxu1 %v9890_v58  ;;  %v9959_v57 = vld [vmem:[#allocation4 + $0x2c] ss:$72 sps:$4 sm:$0xff]   ;;  %v9954_v58 = vld [vmem:[#allocation4 + $0x1220] ss:$72 sps:$4 sm:$0xff]  }
 0x1b4   :  { %5945 = vmatprep.subr.bf16.mxu0 %v9893_v60  ;;  %v9957_v60 = vld [vmem:[#allocation4 + $0x28] ss:$72 sps:$4 sm:$0xff]  }
 0x1b6   :  { %5852 = vmatpush1.bf16.msra.mxu1 %v9888_v61  ;;  %v9962_v61 = vld [vmem:[#allocation4 + $0x12b4] ss:$72 sps:$4 sm:$0xff]  }
 0x1b7   :  { %5946 = vmatpush1.bf16.msra.mxu0 %v9891_v62  ;;  %5853 = vmatprep.subr.bf16.mxu1 %v9896_v63  ;;  %v9965_v62 = vld [vmem:[#allocation4 + $0xbc] ss:$72 sps:$4 sm:$0xff]   ;;  %v10868_v63 = vld [vmem:[%s11086_s0 + $0x10] ss:$24 sps:$4 sm:$0xff]  }
 0x1b8   :  { %5947 = vmatprep.subr.bf16.mxu0 %v9899_v0  ;;  %v9960_v0 = vld [vmem:[#allocation4 + $0x12b0] ss:$72 sps:$4 sm:$0xff]  }
 0x1ba   :  { %5854 = vmatpush1.bf16.msra.mxu1 %v9894_v1  ;;  %v9963_v1 = vld [vmem:[#allocation4 + $0xb8] ss:$72 sps:$4 sm:$0xff]  }
 0x1bb   :  { %5948 = vmatpush1.bf16.msra.mxu0 %v9897_v2  ;;  %5855 = vmatprep.subr.bf16.mxu1 %v9902_v3  ;;  %v9968_v2 = vld [vmem:[#allocation4 + $0x1344] ss:$72 sps:$4 sm:$0xff]  }
 0x1bc   :  { %5949 = vmatprep.subr.bf16.mxu0 %v9905_v8  ;;  %v5546_v18 = vpop.f32.mrb[16].mxu1  ;;  %v9971_v3 = vld [vmem:[#allocation4 + $0x14c] ss:$72 sps:$4 sm:$0xff]   ;;  %v9966_v8 = vld [vmem:[#allocation4 + $0x1340] ss:$72 sps:$4 sm:$0xff]  }
 0x1bd   :  { %v5644_v16 = vpop.f32.mrb[16].mxu0  ;;  %v5547_v20 = vpop.f32.mrb[17].mxu1  ;;  %v9983_v18 = vld [vmem:[#allocation4 + $0x26c] ss:$72 sps:$4 sm:$0xff]  }
 0x1be   :  { %v5645_v19 = vpop.f32.mrb[17].mxu0  ;;  %5856 = vmatpush1.bf16.msra.mxu1 %v9900_v11  ;;  %v5548_v25 = vpop.f32.mrb[18].mxu1  ;;  %v9969_v11 = vld [vmem:[#allocation4 + $0x148] ss:$72 sps:$4 sm:$0xff]   ;;  %v9980_v16 = vld [vmem:[#allocation4 + $0x1464] ss:$72 sps:$4 sm:$0xff]  }
 0x1bf   :  { %5950 = vmatpush1.bf16.msra.mxu0 %v9903_v12  ;;  %v5646_v24 = vpop.f32.mrb[18].mxu0  ;;  %5857 = vmatprep.subr.bf16.mxu1 %v9908_v14  ;;  %v5549_v34 = vpop.f32.mrb[19].mxu1  ;;  %v9974_v12 = vld [vmem:[#allocation4 + $0x13d4] ss:$72 sps:$4 sm:$0xff]   ;;  %v9972_v14 = vld [vmem:[#allocation4 + $0x13d0] ss:$72 sps:$4 sm:$0xff]  }
 0x1c0   :  { %5951 = vmatprep.subr.bf16.mxu0 %v9911_v15  ;;  %v5647_v30 = vpop.f32.mrb[19].mxu0  ;;  %v9975_v15 = vld [vmem:[#allocation4 + $0x1d8] ss:$72 sps:$4 sm:$0xff]   ;;  %v10880_v19 = vld [vmem:[%s11086_s0 + $0x4] ss:$24 sps:$4 sm:$0xff]  }
 0x1c1   :  { %v9978_v20 = vld [vmem:[#allocation4 + $0x1460] ss:$72 sps:$4 sm:$0xff]   ;;  %v9989_v24 = vld [vmem:[#allocation4 + $0x2fc] ss:$72 sps:$4 sm:$0xff]   ;;  %v9984_v25 = vld [vmem:[#allocation4 + $0x14f0] ss:$72 sps:$4 sm:$0xff]  }
 0x1c2   :  { %5858 = vmatpush1.bf16.msra.mxu1 %v9906_v21  ;;  %v9981_v21 = vld [vmem:[#allocation4 + $0x268] ss:$72 sps:$4 sm:$0xff]  }
 0x1c3   :  { %5952 = vmatpush1.bf16.msra.mxu0 %v9909_v22  ;;  %5859 = vmatprep.subr.bf16.mxu1 %v9914_v26  ;;  %v9986_v22 = vld [vmem:[#allocation4 + $0x14f4] ss:$72 sps:$4 sm:$0xff]   ;;  %v9987_v26 = vld [vmem:[#allocation4 + $0x2f8] ss:$72 sps:$4 sm:$0xff]  }
 0x1c4   :  { %5953 = vmatprep.subr.bf16.mxu0 %v9917_v29  ;;  %v9995_v29 = vld [vmem:[#allocation4 + $0x38c] ss:$72 sps:$4 sm:$0xff]   ;;  %v9990_v34 = vld [vmem:[#allocation4 + $0x1580] ss:$72 sps:$4 sm:$0xff]  }
 0x1c6   :  { %5860 = vmatpush1.bf16.msra.mxu1 %v9912_v35  ;;  %v9993_v35 = vld [vmem:[#allocation4 + $0x388] ss:$72 sps:$4 sm:$0xff]  }
 0x1c7   :  { %5954 = vmatpush1.bf16.msra.mxu0 %v9915_v36  ;;  %5861 = vmatprep.subr.bf16.mxu1 %v9920_v37  ;;  %v9998_v37 = vld [vmem:[#allocation4 + $0x1614] ss:$72 sps:$4 sm:$0xff]  }
 0x1c8   :  { %5955 = vmatprep.subr.bf16.mxu0 %v9923_v38 }
 0x1ca   :  { %5862 = vmatpush1.bf16.msra.mxu1 %v9918_v39 }
 0x1cb   :  { %5956 = vmatpush1.bf16.msra.mxu0 %v9921_v59  ;;  %5863 = vmatprep.subr.bf16.mxu1 %v9926_v41 }
 0x1cc   :  { %5957 = vmatprep.subr.bf16.mxu0 %v9929_v52  ;;  %v10001_v52 = vld [vmem:[#allocation4 + $0x41c] ss:$72 sps:$4 sm:$0xff]  }
 0x1ce   :  { %5864 = vmatpush1.bf16.msra.mxu1 %v9924_v42 }
 0x1cf   :  { %5958 = vmatpush1.bf16.msra.mxu0 %v9927_v43  ;;  %5865 = vmatprep.subr.bf16.mxu1 %v9932_v44 }
 0x1d0   :  { %5959 = vmatprep.subr.bf16.mxu0 %v9935_v45 }
 0x1d2   :  { %5866 = vmatpush1.bf16.msra.mxu1 %v9930_v46  ;;  %v9996_v46 = vld [vmem:[#allocation4 + $0x1610] ss:$72 sps:$4 sm:$0xff]  }
 0x1d3   :  { %5960 = vmatpush1.bf16.msra.mxu0 %v9933_v7  ;;  %5867 = vmatprep.subr.bf16.mxu1 %v9938_v47  ;;  %v9999_v7 = vld [vmem:[#allocation4 + $0x418] ss:$72 sps:$4 sm:$0xff]   ;;  %v10004_v47 = vld [vmem:[#allocation4 + $0x16a4] ss:$72 sps:$4 sm:$0xff]  }
 0x1d4   :  { %5961 = vmatprep.subr.bf16.mxu0 %v9941_v50  ;;  %v10007_v50 = vld [vmem:[#allocation4 + $0x4ac] ss:$72 sps:$4 sm:$0xff]  }
 0x1d6   :  { %5868 = vmatpush1.bf16.msra.mxu1 %v9936_v51 }
 0x1d7   :  { %5962 = vmatpush1.bf16.msra.mxu0 %v9939_v48  ;;  %5869 = vmatprep.subr.bf16.mxu1 %v9944_v49 }
 0x1d8   :  { %5963 = vmatprep.subr.bf16.mxu0 %v9947_v9 }
 0x1da   :  { %5870 = vmatpush1.bf16.msra.mxu1 %v9942_v4  ;;  %v10002_v4 = vld [vmem:[#allocation4 + $0x16a0] ss:$72 sps:$4 sm:$0xff]  }
 0x1db   :  { %5964 = vmatpush1.bf16.msra.mxu0 %v9945_v5  ;;  %5871 = vmatprep.subr.bf16.mxu1 %v9950_v10  ;;  %v10005_v5 = vld [vmem:[#allocation4 + $0x4a8] ss:$72 sps:$4 sm:$0xff]  }
 0x1dc   :  { %5965 = vmatprep.subr.bf16.mxu0 %v9953_v53 }
 0x1de   :  { %5872 = vmatpush1.bf16.msra.mxu1 %v9948_v55  ;;  %v10010_v55 = vld [vmem:[#allocation4 + $0x1734] ss:$72 sps:$4 sm:$0xff]  }
 0x1df   :  { %5966 = vmatpush1.bf16.msra.mxu0 %v9951_v40  ;;  %6029 = vmatprep.subr.bf16.mxu1 %v9959_v57  ;;  %v10013_v40 = vld [vmem:[#allocation4 + $0x53c] ss:$72 sps:$4 sm:$0xff]  }
 0x1e0   :  { %5982 = vmatprep.subr.bf16.mxu0 %v9956_v13 }
 0x1e1   :  { %5874 = vmatmul.mubr.bf16.vlgmr.msra.gmra.mrb[36].mxu1 %v10868_v63 }
 0x1e2   :  { %5968 = vmatmul.mubr.bf16.vlgmr.msra.gmra.mrb[36].mxu0 %v10849_v6  ;;  %6030 = vmatpush1.bf16.msra.mxu1 %v9957_v60  ;;  %v9977_v6 = vld [vmem:[#allocation4 + $0x1dc] ss:$72 sps:$4 sm:$0xff]   ;;  %v10011_v60 = vld [vmem:[#allocation4 + $0x538] ss:$72 sps:$4 sm:$0xff]  }
 0x1e3   :  { %5983 = vmatpush1.bf16.msra.mxu0 %v9954_v58  ;;  %6031 = vmatprep.subr.bf16.mxu1 %v9965_v62  ;;  %v10008_v58 = vld [vmem:[#allocation4 + $0x1730] ss:$72 sps:$4 sm:$0xff]   ;;  %v10019_v62 = vld [vmem:[#allocation4 + $0x5cc] ss:$72 sps:$4 sm:$0xff]  }
 0x1e4   :  { %5984 = vmatprep.subr.bf16.mxu0 %v9962_v61  ;;  %5879 = vmatprep.mubr.bf16.mxu1 %v10772_v23  ;;  %v10016_v61 = vld [vmem:[#allocation4 + $0x17c4] ss:$72 sps:$4 sm:$0xff]  }
 0x1e5   :  { %5973 = vmatprep.mubr.bf16.mxu0 %v10742_v27 }
 0x1e6   :  { %6032 = vmatpush1.bf16.msra.mxu1 %v9963_v1  ;;  %v10017_v1 = vld [vmem:[#allocation4 + $0x5c8] ss:$72 sps:$4 sm:$0xff]  }
 0x1e7   :  { %5985 = vmatpush1.bf16.msra.mxu0 %v9960_v0  ;;  %6033 = vmatprep.subr.bf16.mxu1 %v9971_v3  ;;  %v10014_v0 = vld [vmem:[#allocation4 + $0x17c0] ss:$72 sps:$4 sm:$0xff]   ;;  %v10025_v3 = vld [vmem:[#allocation4 + $0x65c] ss:$72 sps:$4 sm:$0xff]  }
 0x1e8   :  { %5986 = vmatprep.subr.bf16.mxu0 %v9968_v2  ;;  %v10022_v2 = vld [vmem:[#allocation4 + $0x1854] ss:$72 sps:$4 sm:$0xff]  }
 0x1e9   :  { %5880 = vmatmul.mubr.bf16.gmra.mrb[28].mxu1 %v10778_v31 }
 0x1ea   :  { %5974 = vmatmul.mubr.bf16.gmra.mrb[32].mxu0 %v10744_v28  ;;  %6034 = vmatpush1.bf16.msra.mxu1 %v9969_v11  ;;  %v10023_v11 = vld [vmem:[#allocation4 + $0x658] ss:$72 sps:$4 sm:$0xff]  }
 0x1eb   :  { %5987 = vmatpush1.bf16.msra.mxu0 %v9966_v8  ;;  %6035 = vmatprep.subr.bf16.mxu1 %v9977_v6  ;;  %v10020_v8 = vld [vmem:[#allocation4 + $0x1850] ss:$72 sps:$4 sm:$0xff]   ;;  %v10031_v6 = vld [vmem:[#allocation4 + $0x6ec] ss:$72 sps:$4 sm:$0xff]  }
 0x1ec   :  { %5988 = vmatprep.subr.bf16.mxu0 %v9974_v12  ;;  %6014 = vmatprep.mubr.bf16.mxu0 %v10859_v56  ;;  %v9992_v56 = vld [vmem:[#allocation4 + $0x1584] ss:$72 sps:$4 sm:$0xff]  }
 0x1ed   :  { %6061 = vmatprep.mubr.bf16.mxu1 %v10880_v19  ;;  %v10028_v12 = vld [vmem:[#allocation4 + $0x18e4] ss:$72 sps:$4 sm:$0xff]  }
 0x1ee   :  { %6036 = vmatpush1.bf16.msra.mxu1 %v9975_v15  ;;  %v10029_v15 = vld [vmem:[#allocation4 + $0x6e8] ss:$72 sps:$4 sm:$0xff]  }
 0x1ef   :  { %5989 = vmatpush1.bf16.msra.mxu0 %v9972_v14  ;;  %6037 = vmatprep.subr.bf16.mxu1 %v9983_v18  ;;  %v10026_v14 = vld [vmem:[#allocation4 + $0x18e0] ss:$72 sps:$4 sm:$0xff]   ;;  %v10037_v18 = vld [vmem:[#allocation4 + $0x77c] ss:$72 sps:$4 sm:$0xff]  }
 0x1f0   :  { %5990 = vmatprep.subr.bf16.mxu0 %v9980_v16  ;;  %v10034_v16 = vld [vmem:[#allocation4 + $0x1974] ss:$72 sps:$4 sm:$0xff]  }
 0x1f2   :  { %6038 = vmatpush1.bf16.msra.mxu1 %v9981_v21  ;;  %v10035_v21 = vld [vmem:[#allocation4 + $0x778] ss:$72 sps:$4 sm:$0xff]  }
 0x1f3   :  { %5991 = vmatpush1.bf16.msra.mxu0 %v9978_v20  ;;  %6039 = vmatprep.subr.bf16.mxu1 %v9989_v24  ;;  %v10032_v20 = vld [vmem:[#allocation4 + $0x1970] ss:$72 sps:$4 sm:$0xff]   ;;  %v10043_v24 = vld [vmem:[#allocation4 + $0x80c] ss:$72 sps:$4 sm:$0xff]  }
 0x1f4   :  { %5992 = vmatprep.subr.bf16.mxu0 %v9986_v22  ;;  %v5585_v30 = vpop.f32.mrb[8].mxu1  ;;  %v10040_v22 = vld [vmem:[#allocation4 + $0x1a04] ss:$72 sps:$4 sm:$0xff]  }
 0x1f5   :  { %v5587_v36 = vpop.f32.mrb[9].mxu1  ;;  %v6595_v39 = vmax.f32 %v5585_v30, 0.0  ;;  %v10044_v30 = vld [vmem:[#allocation4 + $0x1a90] ss:$72 sps:$4 sm:$0xff]  }
 0x1f6   :  { %v5589_v38 = vpop.f32.mrb[10].mxu1  ;;  %6040 = vmatpush1.bf16.msra.mxu1 %v9987_v26  ;;  %v6596_v42 = vmax.f32 %v5587_v36, 0.0  ;;  %v10041_v26 = vld [vmem:[#allocation4 + $0x808] ss:$72 sps:$4 sm:$0xff]   ;;  %v10055_v36 = vld [vmem:[#allocation4 + $0x34] ss:$72 sps:$4 sm:$0xff]  }
 0x1f7   :  { %5993 = vmatpush1.bf16.msra.mxu0 %v9984_v25  ;;  %v6601_v59 = vmax.f32 %v5589_v38, 0.0  ;;  %v5591_v41 = vpop.f32.mrb[11].mxu1  ;;  %6041 = vmatprep.subr.bf16.mxu1 %v9995_v29  ;;  %v10038_v25 = vld [vmem:[#allocation4 + $0x1a00] ss:$72 sps:$4 sm:$0xff]   ;;  %v10049_v29 = vld [vmem:[#allocation4 + $0x89c] ss:$72 sps:$4 sm:$0xff]  }
 0x1f8   :  { %5994 = vmatprep.subr.bf16.mxu0 %v9992_v56  ;;  %v6602_v43 = vmax.f32 %v5591_v41, 0.0  ;;  %v10046_v56 = vld [vmem:[#allocation4 + $0x1a94] ss:$72 sps:$4 sm:$0xff]   ;;  %v10053_v38 = vld [vmem:[#allocation4 + $0x30] ss:$72 sps:$4 sm:$0xff]  }
 0x1f9   :  { %v10883_v44 = vpack.c.bf16 %v6601_v59, %v6595_v39  ;;  %v10058_v39 = vld [vmem:[#allocation4 + $0x9bc] ss:$72 sps:$4 sm:$0xff]   ;;  %v10891_v41 = vld [vmem:[%s11086_s0] ss:$24 sps:$4 sm:$0xff]  }
 0x1fa   :  { %v10885_v45 = vpack.c.bf16 %v6602_v43, %v6596_v42  ;;  %6042 = vmatpush1.bf16.msra.mxu1 %v9993_v35  ;;  %v10052_v35 = vld [vmem:[#allocation4 + $0x92c] ss:$72 sps:$4 sm:$0xff]   ;;  %v10059_v42 = vld [vmem:[#allocation4 + $0xc0] ss:$72 sps:$4 sm:$0xff]  }
 0x1fb   :  { %5995 = vmatpush1.bf16.msra.mxu0 %v9990_v34  ;;  %6043 = vmatprep.subr.bf16.mxu1 %v10001_v52  ;;  %v10047_v34 = vld [vmem:[#allocation4 + $0x898] ss:$72 sps:$4 sm:$0xff]   ;;  %v10061_v59 = vld [vmem:[#allocation4 + $0xc4] ss:$72 sps:$4 sm:$0xff]  }
 0x1fc   :  { %5996 = vmatprep.subr.bf16.mxu0 %v9998_v37  ;;  %v5595_v48 = vpop.f32.mrb[20].mxu1  ;;  %v10050_v37 = vld [vmem:[#allocation4 + $0x928] ss:$72 sps:$4 sm:$0xff]   ;;  %v10056_v52 = vld [vmem:[#allocation4 + $0x9b8] ss:$72 sps:$4 sm:$0xff]  }
 0x1fd   :  { %v5693_v51 = vpop.f32.mrb[20].mxu0  ;;  %v5596_v9 = vpop.f32.mrb[21].mxu1  ;;  %v10064_v43 = vld [vmem:[#allocation4 + $0xa4c] ss:$72 sps:$4 sm:$0xff]   ;;  %v10071_v48 = vld [vmem:[#allocation4 + $0x1e0] ss:$72 sps:$4 sm:$0xff]  }
 0x1fe   :  { %v5694_v49 = vpop.f32.mrb[21].mxu0  ;;  %6044 = vmatpush1.bf16.msra.mxu1 %v9999_v7  ;;  %v5597_v53 = vpop.f32.mrb[22].mxu1  ;;  %v10065_v7 = vld [vmem:[#allocation4 + $0x150] ss:$72 sps:$4 sm:$0xff]   ;;  %v10079_v9 = vld [vmem:[#allocation4 + $0x274] ss:$72 sps:$4 sm:$0xff]  }
 0x1ff   :  { %5997 = vmatpush1.bf16.msra.mxu0 %v9996_v46  ;;  %v5695_v10 = vpop.f32.mrb[22].mxu0  ;;  %6045 = vmatprep.subr.bf16.mxu1 %v10007_v50  ;;  %v5598_v57 = vpop.f32.mrb[23].mxu1  ;;  %v10067_v46 = vld [vmem:[#allocation4 + $0x154] ss:$72 sps:$4 sm:$0xff]   ;;  %v10073_v50 = vld [vmem:[#allocation4 + $0x1e4] ss:$72 sps:$4 sm:$0xff]  }
 0x200   :  { %5998 = vmatprep.subr.bf16.mxu0 %v10004_v47  ;;  %v5696_v13 = vpop.f32.mrb[23].mxu0  ;;  %v10070_v47 = vld [vmem:[#allocation4 + $0xadc] ss:$72 sps:$4 sm:$0xff]   ;;  %v10068_v51 = vld [vmem:[#allocation4 + $0xad8] ss:$72 sps:$4 sm:$0xff]  }
 0x201   :  { %v10076_v49 = vld [vmem:[#allocation4 + $0xb6c] ss:$72 sps:$4 sm:$0xff]   ;;  %v10077_v10 = vld [vmem:[#allocation4 + $0x270] ss:$72 sps:$4 sm:$0xff]   ;;  %v10082_v53 = vld [vmem:[#allocation4 + $0xbfc] ss:$72 sps:$4 sm:$0xff]  }
 0x202   :  { %6046 = vmatpush1.bf16.msra.mxu1 %v10005_v5  ;;  %v10074_v5 = vld [vmem:[#allocation4 + $0xb68] ss:$72 sps:$4 sm:$0xff]   ;;  %v10091_v57 = vld [vmem:[#allocation4 + $0x394] ss:$72 sps:$4 sm:$0xff]  }
 0x203   :  { %5999 = vmatpush1.bf16.msra.mxu0 %v10002_v4  ;;  %6047 = vmatprep.subr.bf16.mxu1 %v10013_v40  ;;  %v10902_v4 = vld [vmem:[%s11086_s0 + $0xc] ss:$24 sps:$4 sm:$0xff]   ;;  %v10080_v40 = vld [vmem:[#allocation4 + $0xbf8] ss:$72 sps:$4 sm:$0xff]  }
 0x204   :  { %6000 = vmatprep.subr.bf16.mxu0 %v10010_v55  ;;  %v10085_v55 = vld [vmem:[#allocation4 + $0x304] ss:$72 sps:$4 sm:$0xff]   ;;  %v10083_v13 = vld [vmem:[#allocation4 + $0x300] ss:$72 sps:$4 sm:$0xff]  }
 0x206   :  { %6048 = vmatpush1.bf16.msra.mxu1 %v10011_v60 }
 0x207   :  { %6001 = vmatpush1.bf16.msra.mxu0 %v10008_v58  ;;  %6049 = vmatprep.subr.bf16.mxu1 %v10019_v62  ;;  %v10086_v62 = vld [vmem:[#allocation4 + $0xc88] ss:$72 sps:$4 sm:$0xff]  }
 0x208   :  { %6002 = vmatprep.subr.bf16.mxu0 %v10016_v61 }
 0x20a   :  { %6050 = vmatpush1.bf16.msra.mxu1 %v10017_v1 }
 0x20b   :  { %6003 = vmatpush1.bf16.msra.mxu0 %v10014_v0  ;;  %6051 = vmatprep.subr.bf16.mxu1 %v10025_v3  ;;  %v10094_v3 = vld [vmem:[#allocation4 + $0xd1c] ss:$72 sps:$4 sm:$0xff]  }
 0x20c   :  { %6004 = vmatprep.subr.bf16.mxu0 %v10022_v2  ;;  %v10089_v2 = vld [vmem:[#allocation4 + $0x390] ss:$72 sps:$4 sm:$0xff]  }
 0x20e   :  { %6052 = vmatpush1.bf16.msra.mxu1 %v10023_v11 }
 0x20f   :  { %6005 = vmatpush1.bf16.msra.mxu0 %v10020_v8  ;;  %6053 = vmatprep.subr.bf16.mxu1 %v10031_v6 }
 0x210   :  { %6006 = vmatprep.subr.bf16.mxu0 %v10028_v12 }
 0x212   :  { %6054 = vmatpush1.bf16.msra.mxu1 %v10029_v15 }
 0x213   :  { %6007 = vmatpush1.bf16.msra.mxu0 %v10026_v14  ;;  %6055 = vmatprep.subr.bf16.mxu1 %v10037_v18  ;;  %v10097_v14 = vld [vmem:[#allocation4 + $0x424] ss:$72 sps:$4 sm:$0xff]  }
 0x214   :  { %6008 = vmatprep.subr.bf16.mxu0 %v10034_v16 }
 0x216   :  { %6056 = vmatpush1.bf16.msra.mxu1 %v10035_v21 }
 0x217   :  { %6009 = vmatpush1.bf16.msra.mxu0 %v10032_v20  ;;  %6057 = vmatprep.subr.bf16.mxu1 %v10043_v24  ;;  %v10095_v24 = vld [vmem:[#allocation4 + $0x420] ss:$72 sps:$4 sm:$0xff]  }
 0x218   :  { %6010 = vmatprep.subr.bf16.mxu0 %v10040_v22  ;;  %v10092_v22 = vld [vmem:[#allocation4 + $0xd18] ss:$72 sps:$4 sm:$0xff]  }
 0x21a   :  { %6058 = vmatpush1.bf16.msra.mxu1 %v10041_v26  ;;  %v10103_v26 = vld [vmem:[#allocation4 + $0x4b4] ss:$72 sps:$4 sm:$0xff]  }
 0x21b   :  { %6011 = vmatpush1.bf16.msra.mxu0 %v10038_v25  ;;  %6059 = vmatprep.subr.bf16.mxu1 %v10049_v29  ;;  %v10100_v25 = vld [vmem:[#allocation4 + $0xdac] ss:$72 sps:$4 sm:$0xff]  }
 0x21c   :  { %6012 = vmatprep.subr.bf16.mxu0 %v10046_v56 }
 0x21e   :  { %6060 = vmatpush1.bf16.msra.mxu1 %v10047_v34  ;;  %v10101_v34 = vld [vmem:[#allocation4 + $0x4b0] ss:$72 sps:$4 sm:$0xff]  }
 0x21f   :  { %6013 = vmatpush1.bf16.msra.mxu0 %v10044_v30  ;;  %6076 = vmatprep.subr.bf16.mxu1 %v10052_v35  ;;  %v10098_v30 = vld [vmem:[#allocation4 + $0xda8] ss:$72 sps:$4 sm:$0xff]  }
 0x220   :  { %6170 = vmatprep.subr.bf16.mxu0 %v10055_v36  ;;  %v10106_v36 = vld [vmem:[#allocation4 + $0xe3c] ss:$72 sps:$4 sm:$0xff]  }
 0x221   :  { %6062 = vmatmul.mubr.bf16.vlgmr.msra.gmra.mrb[40].mxu1 %v10891_v41 }
 0x222   :  { %6015 = vmatmul.mubr.bf16.vlgmr.msra.gmra.mrb[40].mxu0 %v10868_v63  ;;  %6077 = vmatpush1.bf16.msra.mxu1 %v10050_v37  ;;  %v10062_v63 = vld [vmem:[#allocation4 + $0xa48] ss:$72 sps:$4 sm:$0xff]   ;;  %v10109_v37 = vld [vmem:[#allocation4 + $0x544] ss:$72 sps:$4 sm:$0xff]  }
 0x223   :  { %6171 = vmatpush1.bf16.msra.mxu0 %v10053_v38  ;;  %6078 = vmatprep.subr.bf16.mxu1 %v10058_v39  ;;  %v10104_v39 = vld [vmem:[#allocation4 + $0xe38] ss:$72 sps:$4 sm:$0xff]  }
 0x224   :  { %6172 = vmatprep.subr.bf16.mxu0 %v10061_v59  ;;  %6020 = vmatprep.mubr.bf16.mxu0 %v10772_v23  ;;  %v10107_v59 = vld [vmem:[#allocation4 + $0x540] ss:$72 sps:$4 sm:$0xff]  }
 0x225   :  { %6067 = vmatprep.mubr.bf16.mxu1 %v10749_v32 }
 0x226   :  { %6079 = vmatpush1.bf16.msra.mxu1 %v10056_v52  ;;  %v10112_v52 = vld [vmem:[#allocation4 + $0xecc] ss:$72 sps:$4 sm:$0xff]  }
 0x227   :  { %6173 = vmatpush1.bf16.msra.mxu0 %v10059_v42  ;;  %6080 = vmatprep.subr.bf16.mxu1 %v10064_v43  ;;  %v10115_v42 = vld [vmem:[#allocation4 + $0x5d4] ss:$72 sps:$4 sm:$0xff]   ;;  %v10110_v43 = vld [vmem:[#allocation4 + $0xec8] ss:$72 sps:$4 sm:$0xff]  }
 0x228   :  { %6174 = vmatprep.subr.bf16.mxu0 %v10067_v46  ;;  %v10113_v46 = vld [vmem:[#allocation4 + $0x5d0] ss:$72 sps:$4 sm:$0xff]  }
 0x229   :  { %6068 = vmatmul.mubr.bf16.gmra.mrb[44].mxu1 %v10751_v33 }
 0x22a   :  { %6021 = vmatmul.mubr.bf16.gmra.mrb[32].mxu0 %v10778_v31  ;;  %6081 = vmatpush1.bf16.msra.mxu1 %v10062_v63  ;;  %v10118_v63 = vld [vmem:[#allocation4 + $0xf5c] ss:$72 sps:$4 sm:$0xff]  }
 0x22b   :  { %6175 = vmatpush1.bf16.msra.mxu0 %v10065_v7  ;;  %6082 = vmatprep.subr.bf16.mxu1 %v10070_v47  ;;  %v10121_v7 = vld [vmem:[#allocation4 + $0x664] ss:$72 sps:$4 sm:$0xff]   ;;  %v10116_v47 = vld [vmem:[#allocation4 + $0xf58] ss:$72 sps:$4 sm:$0xff]  }
 0x22c   :  { %6176 = vmatprep.subr.bf16.mxu0 %v10073_v50  ;;  %6202 = vmatprep.mubr.bf16.mxu0 %v10880_v19  ;;  %v10088_v19 = vld [vmem:[#allocation4 + $0xc8c] ss:$72 sps:$4 sm:$0xff]   ;;  %v10119_v50 = vld [vmem:[#allocation4 + $0x660] ss:$72 sps:$4 sm:$0xff]  }
 0x22d   :  { %6108 = vmatprep.mubr.bf16.mxu1 %v10902_v4 }
 0x22e   :  { %6083 = vmatpush1.bf16.msra.mxu1 %v10068_v51  ;;  %v10124_v51 = vld [vmem:[#allocation4 + $0xfec] ss:$72 sps:$4 sm:$0xff]  }
 0x22f   :  { %6177 = vmatpush1.bf16.msra.mxu0 %v10071_v48  ;;  %6084 = vmatprep.subr.bf16.mxu1 %v10076_v49  ;;  %v10127_v48 = vld [vmem:[#allocation4 + $0x6f4] ss:$72 sps:$4 sm:$0xff]   ;;  %v10122_v49 = vld [vmem:[#allocation4 + $0xfe8] ss:$72 sps:$4 sm:$0xff]  }
 0x230   :  { %6178 = vmatprep.subr.bf16.mxu0 %v10079_v9  ;;  %v10125_v9 = vld [vmem:[#allocation4 + $0x6f0] ss:$72 sps:$4 sm:$0xff]  }
 0x232   :  { %6085 = vmatpush1.bf16.msra.mxu1 %v10074_v5  ;;  %v10130_v5 = vld [vmem:[#allocation4 + $0x107c] ss:$72 sps:$4 sm:$0xff]  }
 0x233   :  { %6179 = vmatpush1.bf16.msra.mxu0 %v10077_v10  ;;  %6086 = vmatprep.subr.bf16.mxu1 %v10082_v53  ;;  %v10133_v10 = vld [vmem:[#allocation4 + $0x784] ss:$72 sps:$4 sm:$0xff]   ;;  %v10128_v53 = vld [vmem:[#allocation4 + $0x1078] ss:$72 sps:$4 sm:$0xff]  }
 0x234   :  { %6180 = vmatprep.subr.bf16.mxu0 %v10085_v55  ;;  %v5781_v60 = vpop.f32.mrb[24].mxu1  ;;  %v10131_v55 = vld [vmem:[#allocation4 + $0x780] ss:$72 sps:$4 sm:$0xff]  }
 0x235   :  { %v5732_v58 = vpop.f32.mrb[12].mxu0  ;;  %v5782_v0 = vpop.f32.mrb[25].mxu1  ;;  %v10145_v60 = vld [vmem:[#allocation4 + $0x8a4] ss:$72 sps:$4 sm:$0xff]  }
 0x236   :  { %v5734_v61 = vpop.f32.mrb[13].mxu0  ;;  %6087 = vmatpush1.bf16.msra.mxu1 %v10080_v40  ;;  %v5783_v8 = vpop.f32.mrb[26].mxu1  ;;  %v6597_v11 = vmax.f32 %v5732_v58, 0.0  ;;  %v10136_v40 = vld [vmem:[#allocation4 + $0x110c] ss:$72 sps:$4 sm:$0xff]  }
 0x237   :  { %v5736_v1 = vpop.f32.mrb[14].mxu0  ;;  %6181 = vmatpush1.bf16.msra.mxu0 %v10083_v13  ;;  %6088 = vmatprep.subr.bf16.mxu1 %v10088_v19  ;;  %v5784_v15 = vpop.f32.mrb[27].mxu1  ;;  %v6598_v16 = vmax.f32 %v5734_v61, 0.0  ;;  %v10139_v13 = vld [vmem:[#allocation4 + $0x814] ss:$72 sps:$4 sm:$0xff]  }
 0x238   :  { %v6603_v12 = vmax.f32 %v5736_v1, 0.0  ;;  %v5738_v6 = vpop.f32.mrb[15].mxu0  ;;  %6182 = vmatprep.subr.bf16.mxu0 %v10091_v57  ;;  %v10134_v19 = vld [vmem:[#allocation4 + $0x1108] ss:$72 sps:$4 sm:$0xff]   ;;  %v10142_v58 = vld [vmem:[#allocation4 + $0x119c] ss:$72 sps:$4 sm:$0xff]  }
 0x239   :  { %v6604_v18 = vmax.f32 %v5738_v6, 0.0  ;;  %v10137_v57 = vld [vmem:[#allocation4 + $0x810] ss:$72 sps:$4 sm:$0xff]   ;;  %v10148_v0 = vld [vmem:[#allocation4 + $0x122c] ss:$72 sps:$4 sm:$0xff]  }
 0x23a   :  { %v10905_v20 = vpack.c.bf16 %v6603_v12, %v6597_v11  ;;  %6089 = vmatpush1.bf16.msra.mxu1 %v10086_v62  ;;  %v10140_v61 = vld [vmem:[#allocation4 + $0x1198] ss:$72 sps:$4 sm:$0xff]   ;;  %v10151_v1 = vld [vmem:[#allocation4 + $0x934] ss:$72 sps:$4 sm:$0xff]   ;;  %v10157_v11 = vld [vmem:[#allocation4 + $0x9c4] ss:$72 sps:$4 sm:$0xff]  }
 0x23b   :  { %v10907_v21 = vpack.c.bf16 %v6604_v18, %v6598_v16  ;;  %6183 = vmatpush1.bf16.msra.mxu0 %v10089_v2  ;;  %6090 = vmatprep.subr.bf16.mxu1 %v10094_v3  ;;  %v10143_v62 = vld [vmem:[#allocation4 + $0x8a0] ss:$72 sps:$4 sm:$0xff]   ;;  %v10149_v3 = vld [vmem:[#allocation4 + $0x930] ss:$72 sps:$4 sm:$0xff]   ;;  %v10154_v8 = vld [vmem:[#allocation4 + $0x12bc] ss:$72 sps:$4 sm:$0xff]  }
 0x23c   :  { %6184 = vmatprep.subr.bf16.mxu0 %v10097_v14  ;;  %v10146_v2 = vld [vmem:[#allocation4 + $0x1228] ss:$72 sps:$4 sm:$0xff]   ;;  %v10152_v6 = vld [vmem:[#allocation4 + $0x12b8] ss:$72 sps:$4 sm:$0xff]   ;;  %v10160_v15 = vld [vmem:[#allocation4 + $0x134c] ss:$72 sps:$4 sm:$0xff]  }
 0x23d   :  { %v5742_v56 = vpop.f32.mrb[24].mxu0  ;;  %v10913_v12 = vld [vmem:[%s11086_s0 + $0x8] ss:$24 sps:$4 sm:$0xff]   ;;  %v10163_v16 = vld [vmem:[#allocation4 + $0xa54] ss:$72 sps:$4 sm:$0xff]  }
 0x23e   :  { %v5743_v29 = vpop.f32.mrb[25].mxu0  ;;  %6091 = vmatpush1.bf16.msra.mxu1 %v10092_v22  ;;  %v10155_v14 = vld [vmem:[#allocation4 + $0x9c0] ss:$72 sps:$4 sm:$0xff]   ;;  %v10161_v22 = vld [vmem:[#allocation4 + $0xa50] ss:$72 sps:$4 sm:$0xff]  }
 0x23f   :  { %6185 = vmatpush1.bf16.msra.mxu0 %v10095_v24  ;;  %v5744_v35 = vpop.f32.mrb[26].mxu0  ;;  %6092 = vmatprep.subr.bf16.mxu1 %v10100_v25  ;;  %v10158_v18 = vld [vmem:[#allocation4 + $0x1348] ss:$72 sps:$4 sm:$0xff]   ;;  %v10166_v24 = vld [vmem:[#allocation4 + $0x13dc] ss:$72 sps:$4 sm:$0xff]  }
 0x240   :  { %6186 = vmatprep.subr.bf16.mxu0 %v10103_v26  ;;  %v5745_v38 = vpop.f32.mrb[27].mxu0  ;;  %v10169_v25 = vld [vmem:[#allocation4 + $0xae4] ss:$72 sps:$4 sm:$0xff]   ;;  %v10164_v26 = vld [vmem:[#allocation4 + $0x13d8] ss:$72 sps:$4 sm:$0xff]  }
 0x241   :  { %v10167_v56 = vld [vmem:[#allocation4 + $0xae0] ss:$72 sps:$4 sm:$0xff]   ;;  %v10172_v29 = vld [vmem:[#allocation4 + $0x146c] ss:$72 sps:$4 sm:$0xff]  }
 0x242   :  { %6093 = vmatpush1.bf16.msra.mxu1 %v10098_v30  ;;  %v10175_v30 = vld [vmem:[#allocation4 + $0xb74] ss:$72 sps:$4 sm:$0xff]   ;;  %v10170_v35 = vld [vmem:[#allocation4 + $0x1468] ss:$72 sps:$4 sm:$0xff]   ;;  %v10181_v38 = vld [vmem:[#allocation4 + $0xc04] ss:$72 sps:$4 sm:$0xff]  }
 0x243   :  { %6187 = vmatpush1.bf16.msra.mxu0 %v10101_v34  ;;  %6094 = vmatprep.subr.bf16.mxu1 %v10106_v36  ;;  %v10923_v34 = vld [vmem:[%s11086_s0 + $0x14] ss:$24 sps:$4 sm:$0xff]   ;;  %v10173_v36 = vld [vmem:[#allocation4 + $0xb70] ss:$72 sps:$4 sm:$0xff]  }
 0x244   :  { %6188 = vmatprep.subr.bf16.mxu0 %v10109_v37  ;;  %v10178_v37 = vld [vmem:[#allocation4 + $0x14fc] ss:$72 sps:$4 sm:$0xff]  }
 0x246   :  { %6095 = vmatpush1.bf16.msra.mxu1 %v10104_v39  ;;  %v10176_v39 = vld [vmem:[#allocation4 + $0x14f8] ss:$72 sps:$4 sm:$0xff]  }
 0x247   :  { %6189 = vmatpush1.bf16.msra.mxu0 %v10107_v59  ;;  %6096 = vmatprep.subr.bf16.mxu1 %v10112_v52  ;;  %v10179_v59 = vld [vmem:[#allocation4 + $0xc00] ss:$72 sps:$4 sm:$0xff]   ;;  %v10184_v52 = vld [vmem:[#allocation4 + $0x158c] ss:$72 sps:$4 sm:$0xff]  }
 0x248   :  { %6190 = vmatprep.subr.bf16.mxu0 %v10115_v42  ;;  %v10187_v42 = vld [vmem:[#allocation4 + $0xc94] ss:$72 sps:$4 sm:$0xff]  }
 0x24a   :  { %6097 = vmatpush1.bf16.msra.mxu1 %v10110_v43 }
 0x24b   :  { %6191 = vmatpush1.bf16.msra.mxu0 %v10113_v46  ;;  %6098 = vmatprep.subr.bf16.mxu1 %v10118_v63 }
 0x24c   :  { %6192 = vmatprep.subr.bf16.mxu0 %v10121_v7 }
 0x24e   :  { %6099 = vmatpush1.bf16.msra.mxu1 %v10116_v47 }
 0x24f   :  { %6193 = vmatpush1.bf16.msra.mxu0 %v10119_v50  ;;  %6100 = vmatprep.subr.bf16.mxu1 %v10124_v51  ;;  %v10182_v50 = vld [vmem:[#allocation4 + $0x1588] ss:$72 sps:$4 sm:$0xff]  }
 0x250   :  { %6194 = vmatprep.subr.bf16.mxu0 %v10127_v48  ;;  %v10185_v51 = vld [vmem:[#allocation4 + $0xc90] ss:$72 sps:$4 sm:$0xff]  }
 0x252   :  { %6101 = vmatpush1.bf16.msra.mxu1 %v10122_v49 }
 0x253   :  { %6195 = vmatpush1.bf16.msra.mxu0 %v10125_v9  ;;  %6102 = vmatprep.subr.bf16.mxu1 %v10130_v5  ;;  %v10190_v9 = vld [vmem:[#allocation4 + $0x161c] ss:$72 sps:$4 sm:$0xff]  }
 0x254   :  { %6196 = vmatprep.subr.bf16.mxu0 %v10133_v10  ;;  %v10193_v5 = vld [vmem:[#allocation4 + $0xd24] ss:$72 sps:$4 sm:$0xff]  }
 0x256   :  { %6103 = vmatpush1.bf16.msra.mxu1 %v10128_v53  ;;  %v10188_v53 = vld [vmem:[#allocation4 + $0x1618] ss:$72 sps:$4 sm:$0xff]  }
 0x257   :  { %6197 = vmatpush1.bf16.msra.mxu0 %v10131_v55  ;;  %6104 = vmatprep.subr.bf16.mxu1 %v10136_v40  ;;  %v10191_v55 = vld [vmem:[#allocation4 + $0xd20] ss:$72 sps:$4 sm:$0xff]   ;;  %v10196_v40 = vld [vmem:[#allocation4 + $0x16ac] ss:$72 sps:$4 sm:$0xff]  }
 0x258   :  { %6198 = vmatprep.subr.bf16.mxu0 %v10139_v13  ;;  %v10199_v13 = vld [vmem:[#allocation4 + $0xdb4] ss:$72 sps:$4 sm:$0xff]  }
 0x25a   :  { %6105 = vmatpush1.bf16.msra.mxu1 %v10134_v19  ;;  %v10194_v19 = vld [vmem:[#allocation4 + $0x16a8] ss:$72 sps:$4 sm:$0xff]  }
 0x25b   :  { %6199 = vmatpush1.bf16.msra.mxu0 %v10137_v57  ;;  %6106 = vmatprep.subr.bf16.mxu1 %v10142_v58  ;;  %v10197_v57 = vld [vmem:[#allocation4 + $0xdb0] ss:$72 sps:$4 sm:$0xff]   ;;  %v10202_v58 = vld [vmem:[#allocation4 + $0x173c] ss:$72 sps:$4 sm:$0xff]  }
 0x25c   :  { %6200 = vmatprep.subr.bf16.mxu0 %v10145_v60  ;;  %v10205_v60 = vld [vmem:[#allocation4 + $0xe44] ss:$72 sps:$4 sm:$0xff]  }
 0x25e   :  { %6107 = vmatpush1.bf16.msra.mxu1 %v10140_v61  ;;  %v10200_v61 = vld [vmem:[#allocation4 + $0x1738] ss:$72 sps:$4 sm:$0xff]  }
 0x25f   :  { %6201 = vmatpush1.bf16.msra.mxu0 %v10143_v62  ;;  %6123 = vmatprep.subr.bf16.mxu1 %v10148_v0  ;;  %v10203_v62 = vld [vmem:[#allocation4 + $0xe40] ss:$72 sps:$4 sm:$0xff]   ;;  %v10208_v0 = vld [vmem:[#allocation4 + $0x17cc] ss:$72 sps:$4 sm:$0xff]  }
 0x260   :  { %6217 = vmatprep.subr.bf16.mxu0 %v10151_v1  ;;  %v10211_v1 = vld [vmem:[#allocation4 + $0xed4] ss:$72 sps:$4 sm:$0xff]  }
 0x261   :  { %6109 = vmatmul.mubr.bf16.vlgmr.msra.gmra.mrb[48].mxu1 %v10913_v12 }
 0x262   :  { %6203 = vmatmul.mubr.bf16.vlgmr.msra.gmra.mrb[44].mxu0 %v10891_v41  ;;  %6124 = vmatpush1.bf16.msra.mxu1 %v10146_v2  ;;  %v10206_v2 = vld [vmem:[#allocation4 + $0x17c8] ss:$72 sps:$4 sm:$0xff]  }
 0x263   :  { %6218 = vmatpush1.bf16.msra.mxu0 %v10149_v3  ;;  %6125 = vmatprep.subr.bf16.mxu1 %v10154_v8  ;;  %v10209_v3 = vld [vmem:[#allocation4 + $0xed0] ss:$72 sps:$4 sm:$0xff]   ;;  %v10214_v8 = vld [vmem:[#allocation4 + $0x185c] ss:$72 sps:$4 sm:$0xff]  }
 0x264   :  { %6219 = vmatprep.subr.bf16.mxu0 %v10157_v11  ;;  %6114 = vmatprep.mubr.bf16.mxu1 %v10742_v27  ;;  %v10217_v11 = vld [vmem:[#allocation4 + $0xf64] ss:$72 sps:$4 sm:$0xff]  }
 0x265   :  { %6208 = vmatprep.mubr.bf16.mxu0 %v10749_v32 }
 0x266   :  { %6126 = vmatpush1.bf16.msra.mxu1 %v10152_v6  ;;  %v10212_v6 = vld [vmem:[#allocation4 + $0x1858] ss:$72 sps:$4 sm:$0xff]  }
 0x267   :  { %6220 = vmatpush1.bf16.msra.mxu0 %v10155_v14  ;;  %6127 = vmatprep.subr.bf16.mxu1 %v10160_v15  ;;  %v10215_v14 = vld [vmem:[#allocation4 + $0xf60] ss:$72 sps:$4 sm:$0xff]   ;;  %v10220_v15 = vld [vmem:[#allocation4 + $0x18ec] ss:$72 sps:$4 sm:$0xff]  }
 0x268   :  { %6221 = vmatprep.subr.bf16.mxu0 %v10163_v16  ;;  %v10223_v16 = vld [vmem:[#allocation4 + $0xff4] ss:$72 sps:$4 sm:$0xff]  }
 0x269   :  { %6115 = vmatmul.mubr.bf16.gmra.mrb[44].mxu1 %v10744_v28 }
 0x26a   :  { %6209 = vmatmul.mubr.bf16.gmra.mrb[48].mxu0 %v10751_v33  ;;  %6128 = vmatpush1.bf16.msra.mxu1 %v10158_v18  ;;  %v10218_v18 = vld [vmem:[#allocation4 + $0x18e8] ss:$72 sps:$4 sm:$0xff]  }
 0x26b   :  { %6222 = vmatpush1.bf16.msra.mxu0 %v10161_v22  ;;  %6129 = vmatprep.subr.bf16.mxu1 %v10166_v24  ;;  %v10221_v22 = vld [vmem:[#allocation4 + $0xff0] ss:$72 sps:$4 sm:$0xff]   ;;  %v10226_v24 = vld [vmem:[#allocation4 + $0x197c] ss:$72 sps:$4 sm:$0xff]  }
 0x26c   :  { %6223 = vmatprep.subr.bf16.mxu0 %v10169_v25  ;;  %6155 = vmatprep.mubr.bf16.mxu1 %v10923_v34  ;;  %v10229_v25 = vld [vmem:[#allocation4 + $0x1084] ss:$72 sps:$4 sm:$0xff]  }
 0x26d   :  { %6249 = vmatprep.mubr.bf16.mxu0 %v10902_v4 }
 0x26e   :  { %6130 = vmatpush1.bf16.msra.mxu1 %v10164_v26  ;;  %v10224_v26 = vld [vmem:[#allocation4 + $0x1978] ss:$72 sps:$4 sm:$0xff]  }
 0x26f   :  { %6224 = vmatpush1.bf16.msra.mxu0 %v10167_v56  ;;  %6131 = vmatprep.subr.bf16.mxu1 %v10172_v29  ;;  %v10227_v56 = vld [vmem:[#allocation4 + $0x1080] ss:$72 sps:$4 sm:$0xff]   ;;  %v10232_v29 = vld [vmem:[#allocation4 + $0x1a0c] ss:$72 sps:$4 sm:$0xff]  }
 0x270   :  { %6225 = vmatprep.subr.bf16.mxu0 %v10175_v30  ;;  %v10235_v30 = vld [vmem:[#allocation4 + $0x1114] ss:$72 sps:$4 sm:$0xff]  }
 0x272   :  { %6132 = vmatpush1.bf16.msra.mxu1 %v10170_v35  ;;  %v10230_v35 = vld [vmem:[#allocation4 + $0x1a08] ss:$72 sps:$4 sm:$0xff]  }
 0x273   :  { %6226 = vmatpush1.bf16.msra.mxu0 %v10173_v36  ;;  %6133 = vmatprep.subr.bf16.mxu1 %v10178_v37  ;;  %v10233_v36 = vld [vmem:[#allocation4 + $0x1110] ss:$72 sps:$4 sm:$0xff]   ;;  %v10238_v37 = vld [vmem:[#allocation4 + $0x1a9c] ss:$72 sps:$4 sm:$0xff]  }
 0x274   :  { %6227 = vmatprep.subr.bf16.mxu0 %v10181_v38  ;;  %v5828_v46 = vpop.f32.mrb[32].mxu1  ;;  %v10241_v38 = vld [vmem:[#allocation4 + $0x11a4] ss:$72 sps:$4 sm:$0xff]  }
 0x275   :  { %v5922_v43 = vpop.f32.mrb[28].mxu0  ;;  %v5829_v7 = vpop.f32.mrb[33].mxu1  ;;  %v10245_v46 = vld [vmem:[#allocation4 + $0x38] ss:$72 sps:$4 sm:$0xff]  }
 0x276   :  { %v5923_v63 = vpop.f32.mrb[29].mxu0  ;;  %6134 = vmatpush1.bf16.msra.mxu1 %v10176_v39  ;;  %v5830_v48 = vpop.f32.mrb[34].mxu1  ;;  %v10236_v39 = vld [vmem:[#allocation4 + $0x1a98] ss:$72 sps:$4 sm:$0xff]   ;;  %v10253_v7 = vld [vmem:[#allocation4 + $0xcc] ss:$72 sps:$4 sm:$0xff]  }
 0x277   :  { %v5924_v47 = vpop.f32.mrb[30].mxu0  ;;  %6228 = vmatpush1.bf16.msra.mxu0 %v10179_v59  ;;  %6135 = vmatprep.subr.bf16.mxu1 %v10184_v52  ;;  %v5831_v10 = vpop.f32.mrb[35].mxu1  ;;  %v10239_v59 = vld [vmem:[#allocation4 + $0x11a0] ss:$72 sps:$4 sm:$0xff]   ;;  %v10244_v52 = vld [vmem:[#allocation4 + $0x1234] ss:$72 sps:$4 sm:$0xff]  }
 0x278   :  { %v5925_v49 = vpop.f32.mrb[31].mxu0  ;;  %6229 = vmatprep.subr.bf16.mxu0 %v10187_v42  ;;  %v10247_v42 = vld [vmem:[#allocation4 + $0x3c] ss:$72 sps:$4 sm:$0xff]   ;;  %v10242_v43 = vld [vmem:[#allocation4 + $0x1230] ss:$72 sps:$4 sm:$0xff]  }
 0x279   :  { %v10250_v63 = vld [vmem:[#allocation4 + $0x12c4] ss:$72 sps:$4 sm:$0xff]   ;;  %v10930_v47 = vld [vmem:[%s11086_s0 + $0x10] ss:$24 sps:$4 sm:$0xff]   ;;  %v10256_v48 = vld [vmem:[#allocation4 + $0x1354] ss:$72 sps:$4 sm:$0xff]  }
 0x27a   :  { %6136 = vmatpush1.bf16.msra.mxu1 %v10182_v50  ;;  %v10248_v50 = vld [vmem:[#allocation4 + $0x12c0] ss:$72 sps:$4 sm:$0xff]   ;;  %v10259_v49 = vld [vmem:[#allocation4 + $0x15c] ss:$72 sps:$4 sm:$0xff]  }
 0x27b   :  { %6230 = vmatpush1.bf16.msra.mxu0 %v10185_v51  ;;  %6137 = vmatprep.subr.bf16.mxu1 %v10190_v9  ;;  %v10251_v51 = vld [vmem:[#allocation4 + $0xc8] ss:$72 sps:$4 sm:$0xff]   ;;  %v10262_v10 = vld [vmem:[#allocation4 + $0x13e4] ss:$72 sps:$4 sm:$0xff]  }
 0x27c   :  { %6231 = vmatprep.subr.bf16.mxu0 %v10193_v5  ;;  %v10254_v9 = vld [vmem:[#allocation4 + $0x1350] ss:$72 sps:$4 sm:$0xff]  }
 0x27d   :  { %v10257_v5 = vld [vmem:[#allocation4 + $0x158] ss:$72 sps:$4 sm:$0xff]  }
 0x27e   :  { %6138 = vmatpush1.bf16.msra.mxu1 %v10188_v53  ;;  %v10265_v53 = vld [vmem:[#allocation4 + $0x1ec] ss:$72 sps:$4 sm:$0xff]  }
 0x27f   :  { %6232 = vmatpush1.bf16.msra.mxu0 %v10191_v55  ;;  %6139 = vmatprep.subr.bf16.mxu1 %v10196_v40  ;;  %v10260_v55 = vld [vmem:[#allocation4 + $0x13e0] ss:$72 sps:$4 sm:$0xff]  }
 0x280   :  { %6233 = vmatprep.subr.bf16.mxu0 %v10199_v13  ;;  %v10263_v40 = vld [vmem:[#allocation4 + $0x1e8] ss:$72 sps:$4 sm:$0xff]   ;;  %v10268_v13 = vld [vmem:[#allocation4 + $0x1474] ss:$72 sps:$4 sm:$0xff]  }
 0x282   :  { %6140 = vmatpush1.bf16.msra.mxu1 %v10194_v19  ;;  %v10271_v19 = vld [vmem:[#allocation4 + $0x27c] ss:$72 sps:$4 sm:$0xff]  }
 0x283   :  { %6234 = vmatpush1.bf16.msra.mxu0 %v10197_v57  ;;  %6141 = vmatprep.subr.bf16.mxu1 %v10202_v58  ;;  %v10942_v57 = vld [vmem:[%s11086_s0 + $0x4] ss:$24 sps:$4 sm:$0xff]   ;;  %v10266_v58 = vld [vmem:[#allocation4 + $0x1470] ss:$72 sps:$4 sm:$0xff]  }
 0x284   :  { %6235 = vmatprep.subr.bf16.mxu0 %v10205_v60  ;;  %v10269_v60 = vld [vmem:[#allocation4 + $0x278] ss:$72 sps:$4 sm:$0xff]  }
 0x286   :  { %6142 = vmatpush1.bf16.msra.mxu1 %v10200_v61  ;;  %v10274_v61 = vld [vmem:[#allocation4 + $0x1504] ss:$72 sps:$4 sm:$0xff]  }
 0x287   :  { %6236 = vmatpush1.bf16.msra.mxu0 %v10203_v62  ;;  %6143 = vmatprep.subr.bf16.mxu1 %v10208_v0  ;;  %v10277_v62 = vld [vmem:[#allocation4 + $0x30c] ss:$72 sps:$4 sm:$0xff]   ;;  %v10272_v0 = vld [vmem:[#allocation4 + $0x1500] ss:$72 sps:$4 sm:$0xff]  }
 0x288   :  { %6237 = vmatprep.subr.bf16.mxu0 %v10211_v1  ;;  %v10275_v1 = vld [vmem:[#allocation4 + $0x308] ss:$72 sps:$4 sm:$0xff]  }
 0x28a   :  { %6144 = vmatpush1.bf16.msra.mxu1 %v10206_v2  ;;  %v10280_v2 = vld [vmem:[#allocation4 + $0x1594] ss:$72 sps:$4 sm:$0xff]  }
 0x28b   :  { %6238 = vmatpush1.bf16.msra.mxu0 %v10209_v3  ;;  %6145 = vmatprep.subr.bf16.mxu1 %v10214_v8  ;;  %v10283_v3 = vld [vmem:[#allocation4 + $0x39c] ss:$72 sps:$4 sm:$0xff]  }
 0x28c   :  { %6239 = vmatprep.subr.bf16.mxu0 %v10217_v11 }
 0x28e   :  { %6146 = vmatpush1.bf16.msra.mxu1 %v10212_v6 }
 0x28f   :  { %6240 = vmatpush1.bf16.msra.mxu0 %v10215_v14  ;;  %6147 = vmatprep.subr.bf16.mxu1 %v10220_v15 }
 0x290   :  { %6241 = vmatprep.subr.bf16.mxu0 %v10223_v16  ;;  %v10278_v16 = vld [vmem:[#allocation4 + $0x1590] ss:$72 sps:$4 sm:$0xff]  }
 0x292   :  { %6148 = vmatpush1.bf16.msra.mxu1 %v10218_v18  ;;  %v10281_v18 = vld [vmem:[#allocation4 + $0x398] ss:$72 sps:$4 sm:$0xff]  }
 0x293   :  { %6242 = vmatpush1.bf16.msra.mxu0 %v10221_v22  ;;  %6149 = vmatprep.subr.bf16.mxu1 %v10226_v24 }
 0x294   :  { %6243 = vmatprep.subr.bf16.mxu0 %v10229_v25 }
 0x296   :  { %6150 = vmatpush1.bf16.msra.mxu1 %v10224_v26  ;;  %v10286_v26 = vld [vmem:[#allocation4 + $0x1624] ss:$72 sps:$4 sm:$0xff]  }
 0x297   :  { %6244 = vmatpush1.bf16.msra.mxu0 %v10227_v56  ;;  %6151 = vmatprep.subr.bf16.mxu1 %v10232_v29  ;;  %v10289_v56 = vld [vmem:[#allocation4 + $0x42c] ss:$72 sps:$4 sm:$0xff]   ;;  %v10284_v29 = vld [vmem:[#allocation4 + $0x1620] ss:$72 sps:$4 sm:$0xff]  }
 0x298   :  { %6245 = vmatprep.subr.bf16.mxu0 %v10235_v30  ;;  %v10287_v30 = vld [vmem:[#allocation4 + $0x428] ss:$72 sps:$4 sm:$0xff]  }
 0x29a   :  { %6152 = vmatpush1.bf16.msra.mxu1 %v10230_v35  ;;  %v10292_v35 = vld [vmem:[#allocation4 + $0x16b4] ss:$72 sps:$4 sm:$0xff]  }
 0x29b   :  { %6246 = vmatpush1.bf16.msra.mxu0 %v10233_v36  ;;  %6153 = vmatprep.subr.bf16.mxu1 %v10238_v37  ;;  %v10295_v36 = vld [vmem:[#allocation4 + $0x4bc] ss:$72 sps:$4 sm:$0xff]  }
 0x29c   :  { %6247 = vmatprep.subr.bf16.mxu0 %v10241_v38 }
 0x29e   :  { %6154 = vmatpush1.bf16.msra.mxu1 %v10236_v39 }
 0x29f   :  { %6248 = vmatpush1.bf16.msra.mxu0 %v10239_v59  ;;  %6311 = vmatprep.subr.bf16.mxu1 %v10247_v42  ;;  %v10290_v42 = vld [vmem:[#allocation4 + $0x16b0] ss:$72 sps:$4 sm:$0xff]  }
 0x2a0   :  { %6264 = vmatprep.subr.bf16.mxu0 %v10244_v52 }
 0x2a1   :  { %6156 = vmatmul.mubr.bf16.vlgmr.msra.gmra.mrb[52].mxu1 %v10930_v47 }
 0x2a2   :  { %6250 = vmatmul.mubr.bf16.vlgmr.msra.gmra.mrb[52].mxu0 %v10913_v12  ;;  %6312 = vmatpush1.bf16.msra.mxu1 %v10245_v46 }
 0x2a3   :  { %6265 = vmatpush1.bf16.msra.mxu0 %v10242_v43  ;;  %6313 = vmatprep.subr.bf16.mxu1 %v10253_v7  ;;  %v10293_v43 = vld [vmem:[#allocation4 + $0x4b8] ss:$72 sps:$4 sm:$0xff]   ;;  %v10298_v7 = vld [vmem:[#allocation4 + $0x1744] ss:$72 sps:$4 sm:$0xff]  }
 0x2a4   :  { %6266 = vmatprep.subr.bf16.mxu0 %v10250_v63  ;;  %6161 = vmatprep.mubr.bf16.mxu1 %v10772_v23 }
 0x2a5   :  { %6255 = vmatprep.mubr.bf16.mxu0 %v10742_v27 }
 0x2a6   :  { %6314 = vmatpush1.bf16.msra.mxu1 %v10251_v51 }
 0x2a7   :  { %6267 = vmatpush1.bf16.msra.mxu0 %v10248_v50  ;;  %6315 = vmatprep.subr.bf16.mxu1 %v10259_v49  ;;  %v10301_v50 = vld [vmem:[#allocation4 + $0x54c] ss:$72 sps:$4 sm:$0xff]   ;;  %v10299_v49 = vld [vmem:[#allocation4 + $0x548] ss:$72 sps:$4 sm:$0xff]  }
 0x2a8   :  { %6268 = vmatprep.subr.bf16.mxu0 %v10256_v48  ;;  %v10296_v48 = vld [vmem:[#allocation4 + $0x1740] ss:$72 sps:$4 sm:$0xff]  }
 0x2a9   :  { %6162 = vmatmul.mubr.bf16.gmra.mrb[44].mxu1 %v10778_v31 }
 0x2aa   :  { %6256 = vmatmul.mubr.bf16.gmra.mrb[48].mxu0 %v10744_v28  ;;  %6316 = vmatpush1.bf16.msra.mxu1 %v10257_v5  ;;  %v10307_v5 = vld [vmem:[#allocation4 + $0x5dc] ss:$72 sps:$4 sm:$0xff]  }
 0x2ab   :  { %6269 = vmatpush1.bf16.msra.mxu0 %v10254_v9  ;;  %6317 = vmatprep.subr.bf16.mxu1 %v10265_v53  ;;  %v10304_v9 = vld [vmem:[#allocation4 + $0x17d4] ss:$72 sps:$4 sm:$0xff]   ;;  %v10305_v53 = vld [vmem:[#allocation4 + $0x5d8] ss:$72 sps:$4 sm:$0xff]  }
 0x2ac   :  { %6270 = vmatprep.subr.bf16.mxu0 %v10262_v10  ;;  %6296 = vmatprep.mubr.bf16.mxu0 %v10923_v34  ;;  %v10302_v10 = vld [vmem:[#allocation4 + $0x17d0] ss:$72 sps:$4 sm:$0xff]  }
 0x2ad   :  { %6343 = vmatprep.mubr.bf16.mxu1 %v10942_v57 }
 0x2ae   :  { %6318 = vmatpush1.bf16.msra.mxu1 %v10263_v40  ;;  %v10313_v40 = vld [vmem:[#allocation4 + $0x66c] ss:$72 sps:$4 sm:$0xff]  }
 0x2af   :  { %6271 = vmatpush1.bf16.msra.mxu0 %v10260_v55  ;;  %6319 = vmatprep.subr.bf16.mxu1 %v10271_v19  ;;  %v10310_v55 = vld [vmem:[#allocation4 + $0x1864] ss:$72 sps:$4 sm:$0xff]   ;;  %v10311_v19 = vld [vmem:[#allocation4 + $0x668] ss:$72 sps:$4 sm:$0xff]  }
 0x2b0   :  { %6272 = vmatprep.subr.bf16.mxu0 %v10268_v13  ;;  %v10308_v13 = vld [vmem:[#allocation4 + $0x1860] ss:$72 sps:$4 sm:$0xff]  }
 0x2b2   :  { %6320 = vmatpush1.bf16.msra.mxu1 %v10269_v60  ;;  %v10319_v60 = vld [vmem:[#allocation4 + $0x6fc] ss:$72 sps:$4 sm:$0xff]  }
 0x2b3   :  { %6273 = vmatpush1.bf16.msra.mxu0 %v10266_v58  ;;  %6321 = vmatprep.subr.bf16.mxu1 %v10277_v62  ;;  %v10316_v58 = vld [vmem:[#allocation4 + $0x18f4] ss:$72 sps:$4 sm:$0xff]   ;;  %v10317_v62 = vld [vmem:[#allocation4 + $0x6f8] ss:$72 sps:$4 sm:$0xff]  }
 0x2b4   :  { %6274 = vmatprep.subr.bf16.mxu0 %v10274_v61  ;;  %v5875_v11 = vpop.f32.mrb[36].mxu1  ;;  %v10314_v61 = vld [vmem:[#allocation4 + $0x18f0] ss:$72 sps:$4 sm:$0xff]  }
 0x2b5   :  { %v5969_v8 = vpop.f32.mrb[36].mxu0  ;;  %v5876_v14 = vpop.f32.mrb[37].mxu1  ;;  %v10331_v11 = vld [vmem:[#allocation4 + $0x81c] ss:$72 sps:$4 sm:$0xff]  }
 0x2b6   :  { %v5970_v6 = vpop.f32.mrb[37].mxu0  ;;  %6322 = vmatpush1.bf16.msra.mxu1 %v10275_v1  ;;  %v5877_v22 = vpop.f32.mrb[38].mxu1  ;;  %v10325_v1 = vld [vmem:[#allocation4 + $0x78c] ss:$72 sps:$4 sm:$0xff]   ;;  %v10329_v14 = vld [vmem:[#allocation4 + $0x818] ss:$72 sps:$4 sm:$0xff]  }
 0x2b7   :  { %v5971_v15 = vpop.f32.mrb[38].mxu0  ;;  %6275 = vmatpush1.bf16.msra.mxu0 %v10272_v0  ;;  %6323 = vmatprep.subr.bf16.mxu1 %v10283_v3  ;;  %v5878_v25 = vpop.f32.mrb[39].mxu1  ;;  %v10322_v0 = vld [vmem:[#allocation4 + $0x1984] ss:$72 sps:$4 sm:$0xff]   ;;  %v10323_v3 = vld [vmem:[#allocation4 + $0x788] ss:$72 sps:$4 sm:$0xff]  }
 0x2b8   :  { %v5972_v24 = vpop.f32.mrb[39].mxu0  ;;  %6276 = vmatprep.subr.bf16.mxu0 %v10280_v2  ;;  %v10320_v2 = vld [vmem:[#allocation4 + $0x1980] ss:$72 sps:$4 sm:$0xff]   ;;  %v10328_v8 = vld [vmem:[#allocation4 + $0x1a14] ss:$72 sps:$4 sm:$0xff]  }
 0x2b9   :  { %v10326_v6 = vld [vmem:[#allocation4 + $0x1a10] ss:$72 sps:$4 sm:$0xff]   ;;  %v10334_v15 = vld [vmem:[#allocation4 + $0x1aa4] ss:$72 sps:$4 sm:$0xff]  }
 0x2ba   :  { %6324 = vmatpush1.bf16.msra.mxu1 %v10281_v18  ;;  %v10332_v18 = vld [vmem:[#allocation4 + $0x1aa0] ss:$72 sps:$4 sm:$0xff]   ;;  %v10340_v24 = vld [vmem:[#allocation4 + $0x93c] ss:$72 sps:$4 sm:$0xff]  }
 0x2bb   :  { %6277 = vmatpush1.bf16.msra.mxu0 %v10278_v16  ;;  %6325 = vmatprep.subr.bf16.mxu1 %v10289_v56  ;;  %v10337_v16 = vld [vmem:[#allocation4 + $0x8ac] ss:$72 sps:$4 sm:$0xff]   ;;  %v10335_v22 = vld [vmem:[#allocation4 + $0x8a8] ss:$72 sps:$4 sm:$0xff]  }
 0x2bc   :  { %6278 = vmatprep.subr.bf16.mxu0 %v10286_v26  ;;  %v5881_v37 = vpop.f32.mrb[28].mxu1  ;;  %v10343_v25 = vld [vmem:[#allocation4 + $0x44] ss:$72 sps:$4 sm:$0xff]   ;;  %v10338_v26 = vld [vmem:[#allocation4 + $0x938] ss:$72 sps:$4 sm:$0xff]  }
 0x2bd   :  { %v6605_v38 = vmax.f32 %v5881_v37, 0.0  ;;  %v5883_v39 = vpop.f32.mrb[29].mxu1  ;;  %v10341_v56 = vld [vmem:[#allocation4 + $0x40] ss:$72 sps:$4 sm:$0xff]   ;;  %v10352_v37 = vld [vmem:[#allocation4 + $0xa5c] ss:$72 sps:$4 sm:$0xff]  }
 0x2be   :  { %v6606_v59 = vmax.f32 %v5883_v39, 0.0  ;;  %v5885_v52 = vpop.f32.mrb[30].mxu1  ;;  %6326 = vmatpush1.bf16.msra.mxu1 %v10287_v30  ;;  %v10349_v30 = vld [vmem:[#allocation4 + $0xd4] ss:$72 sps:$4 sm:$0xff]   ;;  %v10350_v39 = vld [vmem:[#allocation4 + $0xa58] ss:$72 sps:$4 sm:$0xff]  }
 0x2bf   :  { %6279 = vmatpush1.bf16.msra.mxu0 %v10284_v29  ;;  %v10945_v46 = vpack.c.bf16 %v6605_v38, %v6605_v38  ;;  %v5886_v63 = vpop.f32.mrb[31].mxu1  ;;  %6327 = vmatprep.subr.bf16.mxu1 %v10295_v36  ;;  %v10346_v29 = vld [vmem:[#allocation4 + $0x9cc] ss:$72 sps:$4 sm:$0xff]   ;;  %v10347_v36 = vld [vmem:[#allocation4 + $0xd0] ss:$72 sps:$4 sm:$0xff]  }
 0x2c0   :  { %6280 = vmatprep.subr.bf16.mxu0 %v10292_v35  ;;  %v10947_v51 = vpack.c.bf16 %v6606_v59, %v6606_v59  ;;  %v10344_v35 = vld [vmem:[#allocation4 + $0x9c8] ss:$72 sps:$4 sm:$0xff]   ;;  %v10355_v38 = vld [vmem:[#allocation4 + $0x164] ss:$72 sps:$4 sm:$0xff]  }
 0x2c1   :  { %v10353_v59 = vld [vmem:[#allocation4 + $0x160] ss:$72 sps:$4 sm:$0xff]   ;;  %v10358_v52 = vld [vmem:[#allocation4 + $0xaec] ss:$72 sps:$4 sm:$0xff]   ;;  %v10364_v63 = vld [vmem:[#allocation4 + $0xb7c] ss:$72 sps:$4 sm:$0xff]  }
 0x2c2   :  { %6328 = vmatpush1.bf16.msra.mxu1 %v10293_v43  ;;  %v10359_v43 = vld [vmem:[#allocation4 + $0x1f0] ss:$72 sps:$4 sm:$0xff]  }
 0x2c3   :  { %6281 = vmatpush1.bf16.msra.mxu0 %v10290_v42  ;;  %6329 = vmatprep.subr.bf16.mxu1 %v10301_v50  ;;  %v10356_v42 = vld [vmem:[#allocation4 + $0xae8] ss:$72 sps:$4 sm:$0xff]   ;;  %v10362_v50 = vld [vmem:[#allocation4 + $0xb78] ss:$72 sps:$4 sm:$0xff]  }
 0x2c4   :  { %6282 = vmatprep.subr.bf16.mxu0 %v10298_v7  ;;  %v10367_v7 = vld [vmem:[#allocation4 + $0x284] ss:$72 sps:$4 sm:$0xff]  }
 0x2c6   :  { %6330 = vmatpush1.bf16.msra.mxu1 %v10299_v49  ;;  %v10370_v49 = vld [vmem:[#allocation4 + $0xc0c] ss:$72 sps:$4 sm:$0xff]  }
 0x2c7   :  { %6283 = vmatpush1.bf16.msra.mxu0 %v10296_v48  ;;  %6331 = vmatprep.subr.bf16.mxu1 %v10307_v5  ;;  %v10365_v48 = vld [vmem:[#allocation4 + $0x280] ss:$72 sps:$4 sm:$0xff]  }
 0x2c8   :  { %6284 = vmatprep.subr.bf16.mxu0 %v10304_v9  ;;  %v10373_v9 = vld [vmem:[#allocation4 + $0x314] ss:$72 sps:$4 sm:$0xff]   ;;  %v10368_v5 = vld [vmem:[#allocation4 + $0xc08] ss:$72 sps:$4 sm:$0xff]  }
 0x2ca   :  { %6332 = vmatpush1.bf16.msra.mxu1 %v10305_v53  ;;  %v10376_v53 = vld [vmem:[#allocation4 + $0xc9c] ss:$72 sps:$4 sm:$0xff]  }
 0x2cb   :  { %6285 = vmatpush1.bf16.msra.mxu0 %v10302_v10  ;;  %6333 = vmatprep.subr.bf16.mxu1 %v10313_v40  ;;  %v10371_v10 = vld [vmem:[#allocation4 + $0x310] ss:$72 sps:$4 sm:$0xff]  }
 0x2cc   :  { %6286 = vmatprep.subr.bf16.mxu0 %v10310_v55  ;;  %v10379_v55 = vld [vmem:[#allocation4 + $0x3a4] ss:$72 sps:$4 sm:$0xff]  }
 0x2ce   :  { %6334 = vmatpush1.bf16.msra.mxu1 %v10311_v19 }
 0x2cf   :  { %6287 = vmatpush1.bf16.msra.mxu0 %v10308_v13  ;;  %6335 = vmatprep.subr.bf16.mxu1 %v10319_v60  ;;  %v10377_v60 = vld [vmem:[#allocation4 + $0x3a0] ss:$72 sps:$4 sm:$0xff]  }
 0x2d0   :  { %6288 = vmatprep.subr.bf16.mxu0 %v10316_v58  ;;  %v10374_v58 = vld [vmem:[#allocation4 + $0xc98] ss:$72 sps:$4 sm:$0xff]  }
 0x2d2   :  { %6336 = vmatpush1.bf16.msra.mxu1 %v10317_v62 }
 0x2d3   :  { %6289 = vmatpush1.bf16.msra.mxu0 %v10314_v61  ;;  %6337 = vmatprep.subr.bf16.mxu1 %v10325_v1  ;;  %v10385_v1 = vld [vmem:[#allocation4 + $0x434] ss:$72 sps:$4 sm:$0xff]  }
 0x2d4   :  { %6290 = vmatprep.subr.bf16.mxu0 %v10322_v0  ;;  %v10382_v0 = vld [vmem:[#allocation4 + $0xd2c] ss:$72 sps:$4 sm:$0xff]  }
 0x2d6   :  { %6338 = vmatpush1.bf16.msra.mxu1 %v10323_v3  ;;  %v10380_v3 = vld [vmem:[#allocation4 + $0xd28] ss:$72 sps:$4 sm:$0xff]  }
 0x2d7   :  { %6291 = vmatpush1.bf16.msra.mxu0 %v10320_v2  ;;  %6339 = vmatprep.subr.bf16.mxu1 %v10331_v11  ;;  %v10388_v11 = vld [vmem:[#allocation4 + $0xdbc] ss:$72 sps:$4 sm:$0xff]  }
 0x2d8   :  { %6292 = vmatprep.subr.bf16.mxu0 %v10328_v8  ;;  %v10383_v8 = vld [vmem:[#allocation4 + $0x430] ss:$72 sps:$4 sm:$0xff]  }
 0x2da   :  { %6340 = vmatpush1.bf16.msra.mxu1 %v10329_v14 }
 0x2db   :  { %6293 = vmatpush1.bf16.msra.mxu0 %v10326_v6  ;;  %6341 = vmatprep.subr.bf16.mxu1 %v10337_v16  ;;  %v10391_v6 = vld [vmem:[#allocation4 + $0x4c4] ss:$72 sps:$4 sm:$0xff]  }
 0x2dc   :  { %6294 = vmatprep.subr.bf16.mxu0 %v10334_v15 }
 0x2de   :  { %6342 = vmatpush1.bf16.msra.mxu1 %v10335_v22 }
 0x2df   :  { %6295 = vmatpush1.bf16.msra.mxu0 %v10332_v18  ;;  %6358 = vmatprep.subr.bf16.mxu1 %v10340_v24  ;;  %v10386_v24 = vld [vmem:[#allocation4 + $0xdb8] ss:$72 sps:$4 sm:$0xff]  }
 0x2e0   :  { %6452 = vmatprep.subr.bf16.mxu0 %v10343_v25  ;;  %v10389_v25 = vld [vmem:[#allocation4 + $0x4c0] ss:$72 sps:$4 sm:$0xff]  }
 0x2e1   :  { %6344 = vmatmul.mubr.bf16.vlgmr.msra.gmra.mrb[56].mxu1 %v10891_v41  ;;  %v10361_v41 = vld [vmem:[#allocation4 + $0x1f4] ss:$72 sps:$4 sm:$0xff]  }
 0x2e2   :  { %6297 = vmatmul.mubr.bf16.vlgmr.msra.gmra.mrb[56].mxu0 %v10930_v47  ;;  %6359 = vmatpush1.bf16.msra.mxu1 %v10338_v26 }
 0x2e3   :  { %6453 = vmatpush1.bf16.msra.mxu0 %v10341_v56  ;;  %6360 = vmatprep.subr.bf16.mxu1 %v10346_v29  ;;  %v10394_v29 = vld [vmem:[#allocation4 + $0xe4c] ss:$72 sps:$4 sm:$0xff]  }
 0x2e4   :  { %6454 = vmatprep.subr.bf16.mxu0 %v10349_v30  ;;  %6302 = vmatprep.mubr.bf16.mxu0 %v10772_v23  ;;  %v10397_v30 = vld [vmem:[#allocation4 + $0x554] ss:$72 sps:$4 sm:$0xff]  }
 0x2e5   :  { %6349 = vmatprep.mubr.bf16.mxu1 %v10749_v32 }
 0x2e6   :  { %6361 = vmatpush1.bf16.msra.mxu1 %v10344_v35 }
 0x2e7   :  { %6455 = vmatpush1.bf16.msra.mxu0 %v10347_v36  ;;  %6362 = vmatprep.subr.bf16.mxu1 %v10352_v37  ;;  %v10392_v36 = vld [vmem:[#allocation4 + $0xe48] ss:$72 sps:$4 sm:$0xff]  }
 0x2e8   :  { %6456 = vmatprep.subr.bf16.mxu0 %v10355_v38  ;;  %v10395_v37 = vld [vmem:[#allocation4 + $0x550] ss:$72 sps:$4 sm:$0xff]   ;;  %v10400_v38 = vld [vmem:[#allocation4 + $0xedc] ss:$72 sps:$4 sm:$0xff]  }
 0x2e9   :  { %6350 = vmatmul.mubr.bf16.gmra.mrb[60].mxu1 %v10751_v33 }
 0x2ea   :  { %6303 = vmatmul.mubr.bf16.gmra.mrb[48].mxu0 %v10778_v31  ;;  %6363 = vmatpush1.bf16.msra.mxu1 %v10350_v39  ;;  %v10403_v39 = vld [vmem:[#allocation4 + $0x5e4] ss:$72 sps:$4 sm:$0xff]  }
 0x2eb   :  { %6457 = vmatpush1.bf16.msra.mxu0 %v10353_v59  ;;  %6364 = vmatprep.subr.bf16.mxu1 %v10358_v52  ;;  %v10398_v59 = vld [vmem:[#allocation4 + $0xed8] ss:$72 sps:$4 sm:$0xff]  }
 0x2ec   :  { %6458 = vmatprep.subr.bf16.mxu0 %v10361_v41  ;;  %6484 = vmatprep.mubr.bf16.mxu0 %v10942_v57  ;;  %v10401_v52 = vld [vmem:[#allocation4 + $0x5e0] ss:$72 sps:$4 sm:$0xff]   ;;  %v10406_v41 = vld [vmem:[#allocation4 + $0xf6c] ss:$72 sps:$4 sm:$0xff]  }
 0x2ed   :  { %6390 = vmatprep.mubr.bf16.mxu1 %v10902_v4 }
 0x2ee   :  { %6365 = vmatpush1.bf16.msra.mxu1 %v10356_v42  ;;  %v10409_v42 = vld [vmem:[#allocation4 + $0x674] ss:$72 sps:$4 sm:$0xff]  }
 0x2ef   :  { %6459 = vmatpush1.bf16.msra.mxu0 %v10359_v43  ;;  %6366 = vmatprep.subr.bf16.mxu1 %v10364_v63  ;;  %v10404_v43 = vld [vmem:[#allocation4 + $0xf68] ss:$72 sps:$4 sm:$0xff]  }
 0x2f0   :  { %6460 = vmatprep.subr.bf16.mxu0 %v10367_v7  ;;  %v10407_v63 = vld [vmem:[#allocation4 + $0x670] ss:$72 sps:$4 sm:$0xff]   ;;  %v10412_v7 = vld [vmem:[#allocation4 + $0xffc] ss:$72 sps:$4 sm:$0xff]  }
 0x2f2   :  { %6367 = vmatpush1.bf16.msra.mxu1 %v10362_v50  ;;  %v10415_v50 = vld [vmem:[#allocation4 + $0x704] ss:$72 sps:$4 sm:$0xff]  }
 0x2f3   :  { %6461 = vmatpush1.bf16.msra.mxu0 %v10365_v48  ;;  %6368 = vmatprep.subr.bf16.mxu1 %v10370_v49  ;;  %v10410_v48 = vld [vmem:[#allocation4 + $0xff8] ss:$72 sps:$4 sm:$0xff]  }
 0x2f4   :  { %6462 = vmatprep.subr.bf16.mxu0 %v10373_v9  ;;  %v6063_v57 = vpop.f32.mrb[40].mxu1  ;;  %v10413_v49 = vld [vmem:[#allocation4 + $0x700] ss:$72 sps:$4 sm:$0xff]   ;;  %v10418_v9 = vld [vmem:[#allocation4 + $0x108c] ss:$72 sps:$4 sm:$0xff]  }
 0x2f5   :  { %v6016_v40 = vpop.f32.mrb[40].mxu0  ;;  %v6064_v4 = vpop.f32.mrb[41].mxu1  ;;  %v10422_v57 = vld [vmem:[#allocation4 + $0x1118] ss:$72 sps:$4 sm:$0xff]  }
 0x2f6   :  { %v6017_v13 = vpop.f32.mrb[41].mxu0  ;;  %6369 = vmatpush1.bf16.msra.mxu1 %v10368_v5  ;;  %v6065_v61 = vpop.f32.mrb[42].mxu1  ;;  %v10421_v5 = vld [vmem:[#allocation4 + $0x794] ss:$72 sps:$4 sm:$0xff]   ;;  %v10427_v40 = vld [vmem:[#allocation4 + $0x824] ss:$72 sps:$4 sm:$0xff]  }
 0x2f7   :  { %v6018_v19 = vpop.f32.mrb[42].mxu0  ;;  %6463 = vmatpush1.bf16.msra.mxu0 %v10371_v10  ;;  %6370 = vmatprep.subr.bf16.mxu1 %v10376_v53  ;;  %v6066_v2 = vpop.f32.mrb[43].mxu1  ;;  %v10416_v10 = vld [vmem:[#allocation4 + $0x1088] ss:$72 sps:$4 sm:$0xff]   ;;  %v10430_v4 = vld [vmem:[#allocation4 + $0x11ac] ss:$72 sps:$4 sm:$0xff]  }
 0x2f8   :  { %v6019_v62 = vpop.f32.mrb[43].mxu0  ;;  %6464 = vmatprep.subr.bf16.mxu0 %v10379_v55  ;;  %v10419_v53 = vld [vmem:[#allocation4 + $0x790] ss:$72 sps:$4 sm:$0xff]   ;;  %v10424_v55 = vld [vmem:[#allocation4 + $0x111c] ss:$72 sps:$4 sm:$0xff]  }
 0x2f9   :  { %v10425_v13 = vld [vmem:[#allocation4 + $0x820] ss:$72 sps:$4 sm:$0xff]   ;;  %v10433_v19 = vld [vmem:[#allocation4 + $0x8b4] ss:$72 sps:$4 sm:$0xff]   ;;  %v10439_v62 = vld [vmem:[#allocation4 + $0x944] ss:$72 sps:$4 sm:$0xff]  }
 0x2fa   :  { %6371 = vmatpush1.bf16.msra.mxu1 %v10374_v58  ;;  %v10428_v58 = vld [vmem:[#allocation4 + $0x11a8] ss:$72 sps:$4 sm:$0xff]   ;;  %v10436_v61 = vld [vmem:[#allocation4 + $0x123c] ss:$72 sps:$4 sm:$0xff]   ;;  %v10442_v2 = vld [vmem:[#allocation4 + $0x12cc] ss:$72 sps:$4 sm:$0xff]  }
 0x2fb   :  { %6465 = vmatpush1.bf16.msra.mxu0 %v10377_v60  ;;  %6372 = vmatprep.subr.bf16.mxu1 %v10382_v0  ;;  %v10431_v60 = vld [vmem:[#allocation4 + $0x8b0] ss:$72 sps:$4 sm:$0xff]  }
 0x2fc   :  { %6466 = vmatprep.subr.bf16.mxu0 %v10385_v1  ;;  %v10434_v0 = vld [vmem:[#allocation4 + $0x1238] ss:$72 sps:$4 sm:$0xff]  }
 0x2fd   :  { %v6022_v14 = vpop.f32.mrb[32].mxu0  ;;  %v10437_v1 = vld [vmem:[#allocation4 + $0x940] ss:$72 sps:$4 sm:$0xff]  }
 0x2fe   :  { %v6607_v15 = vmax.f32 %v6022_v14, 0.0  ;;  %v6024_v16 = vpop.f32.mrb[33].mxu0  ;;  %6373 = vmatpush1.bf16.msra.mxu1 %v10380_v3  ;;  %v10445_v3 = vld [vmem:[#allocation4 + $0x9d4] ss:$72 sps:$4 sm:$0xff]  }
 0x2ff   :  { %v6608_v18 = vmax.f32 %v6024_v16, 0.0  ;;  %v6026_v22 = vpop.f32.mrb[34].mxu0  ;;  %6467 = vmatpush1.bf16.msra.mxu0 %v10383_v8  ;;  %6374 = vmatprep.subr.bf16.mxu1 %v10388_v11  ;;  %v10595_v8 = vld [vmem:[%s11086_s0] ss:$24 sps:$4 sm:$0xff]   ;;  %v10440_v11 = vld [vmem:[#allocation4 + $0x12c8] ss:$72 sps:$4 sm:$0xff]  }
 0x300   :  { %v10957_v26 = vpack.c.bf16 %v6607_v15, %v6607_v15  ;;  %v6027_v56 = vpop.f32.mrb[35].mxu0  ;;  %6468 = vmatprep.subr.bf16.mxu0 %v10391_v6  ;;  %v10443_v6 = vld [vmem:[#allocation4 + $0x9d0] ss:$72 sps:$4 sm:$0xff]   ;;  %v10448_v14 = vld [vmem:[#allocation4 + $0x135c] ss:$72 sps:$4 sm:$0xff]  }
 0x301   :  { %v10959_v35 = vpack.c.bf16 %v6608_v18, %v6608_v18  ;;  %v10451_v15 = vld [vmem:[#allocation4 + $0xa64] ss:$72 sps:$4 sm:$0xff]   ;;  %v10446_v16 = vld [vmem:[#allocation4 + $0x1358] ss:$72 sps:$4 sm:$0xff]  }
 0x302   :  { %6375 = vmatpush1.bf16.msra.mxu1 %v10386_v24  ;;  %v10449_v18 = vld [vmem:[#allocation4 + $0xa60] ss:$72 sps:$4 sm:$0xff]   ;;  %v10454_v22 = vld [vmem:[#allocation4 + $0x13ec] ss:$72 sps:$4 sm:$0xff]   ;;  %v10460_v56 = vld [vmem:[#allocation4 + $0x147c] ss:$72 sps:$4 sm:$0xff]  }
 0x303   :  { %6469 = vmatpush1.bf16.msra.mxu0 %v10389_v25  ;;  %6376 = vmatprep.subr.bf16.mxu1 %v10394_v29  ;;  %v10452_v24 = vld [vmem:[#allocation4 + $0x13e8] ss:$72 sps:$4 sm:$0xff]   ;;  %v10596_v29 = vld [vmem:[%s11086_s0 + $0xc] ss:$24 sps:$4 sm:$0xff]  }
 0x304   :  { %6470 = vmatprep.subr.bf16.mxu0 %v10397_v30  ;;  %v10455_v25 = vld [vmem:[#allocation4 + $0xaf0] ss:$72 sps:$4 sm:$0xff]  }
 0x305   :  { %v10458_v30 = vld [vmem:[#allocation4 + $0x1478] ss:$72 sps:$4 sm:$0xff]  }
 0x306   :  { %6377 = vmatpush1.bf16.msra.mxu1 %v10392_v36  ;;  %v10461_v36 = vld [vmem:[#allocation4 + $0xb80] ss:$72 sps:$4 sm:$0xff]  }
 0x307   :  { %6471 = vmatpush1.bf16.msra.mxu0 %v10395_v37  ;;  %6378 = vmatprep.subr.bf16.mxu1 %v10400_v38  ;;  %v10469_v37 = vld [vmem:[#allocation4 + $0xc14] ss:$72 sps:$4 sm:$0xff]   ;;  %v10464_v38 = vld [vmem:[#allocation4 + $0x1508] ss:$72 sps:$4 sm:$0xff]  }
 0x308   :  { %6472 = vmatprep.subr.bf16.mxu0 %v10403_v39  ;;  %v10467_v39 = vld [vmem:[#allocation4 + $0xc10] ss:$72 sps:$4 sm:$0xff]  }
 0x30a   :  { %6379 = vmatpush1.bf16.msra.mxu1 %v10398_v59  ;;  %v10475_v59 = vld [vmem:[#allocation4 + $0xca4] ss:$72 sps:$4 sm:$0xff]  }
 0x30b   :  { %6473 = vmatpush1.bf16.msra.mxu0 %v10401_v52  ;;  %6380 = vmatprep.subr.bf16.mxu1 %v10406_v41 }
 0x30c   :  { %6474 = vmatprep.subr.bf16.mxu0 %v10409_v42 }
 0x30e   :  { %6381 = vmatpush1.bf16.msra.mxu1 %v10404_v43 }
 0x30f   :  { %6475 = vmatpush1.bf16.msra.mxu0 %v10407_v63  ;;  %6382 = vmatprep.subr.bf16.mxu1 %v10412_v7  ;;  %v10470_v7 = vld [vmem:[#allocation4 + $0x1598] ss:$72 sps:$4 sm:$0xff]  }
 0x310   :  { %6476 = vmatprep.subr.bf16.mxu0 %v10415_v50  ;;  %v10473_v50 = vld [vmem:[#allocation4 + $0xca0] ss:$72 sps:$4 sm:$0xff]  }
 0x312   :  { %6383 = vmatpush1.bf16.msra.mxu1 %v10410_v48 }
 0x313   :  { %6477 = vmatpush1.bf16.msra.mxu0 %v10413_v49  ;;  %6384 = vmatprep.subr.bf16.mxu1 %v10418_v9  ;;  %v10478_v9 = vld [vmem:[#allocation4 + $0x162c] ss:$72 sps:$4 sm:$0xff]  }
 0x314   :  { %6478 = vmatprep.subr.bf16.mxu0 %v10421_v5  ;;  %v10481_v5 = vld [vmem:[#allocation4 + $0xd34] ss:$72 sps:$4 sm:$0xff]  }
 0x316   :  { %6385 = vmatpush1.bf16.msra.mxu1 %v10416_v10 }
 0x317   :  { %6479 = vmatpush1.bf16.msra.mxu0 %v10419_v53  ;;  %6386 = vmatprep.subr.bf16.mxu1 %v10424_v55  ;;  %v10476_v53 = vld [vmem:[#allocation4 + $0x1628] ss:$72 sps:$4 sm:$0xff]  }
 0x318   :  { %6480 = vmatprep.subr.bf16.mxu0 %v10427_v40  ;;  %v10479_v55 = vld [vmem:[#allocation4 + $0xd30] ss:$72 sps:$4 sm:$0xff]   ;;  %v10484_v40 = vld [vmem:[#allocation4 + $0x16bc] ss:$72 sps:$4 sm:$0xff]  }
 0x31a   :  { %6387 = vmatpush1.bf16.msra.mxu1 %v10422_v57  ;;  %v10487_v57 = vld [vmem:[#allocation4 + $0xdc4] ss:$72 sps:$4 sm:$0xff]  }
 0x31b   :  { %6481 = vmatpush1.bf16.msra.mxu0 %v10425_v13  ;;  %6388 = vmatprep.subr.bf16.mxu1 %v10430_v4  ;;  %v10482_v13 = vld [vmem:[#allocation4 + $0x16b8] ss:$72 sps:$4 sm:$0xff]  }
 0x31c   :  { %6482 = vmatprep.subr.bf16.mxu0 %v10433_v19  ;;  %v10485_v4 = vld [vmem:[#allocation4 + $0xdc0] ss:$72 sps:$4 sm:$0xff]   ;;  %v10490_v19 = vld [vmem:[#allocation4 + $0x174c] ss:$72 sps:$4 sm:$0xff]  }
 0x31e   :  { %6389 = vmatpush1.bf16.msra.mxu1 %v10428_v58  ;;  %v10493_v58 = vld [vmem:[#allocation4 + $0xe54] ss:$72 sps:$4 sm:$0xff]  }
 0x31f   :  { %6483 = vmatpush1.bf16.msra.mxu0 %v10431_v60  ;;  %6405 = vmatprep.subr.bf16.mxu1 %v10436_v61  ;;  %v10488_v60 = vld [vmem:[#allocation4 + $0x1748] ss:$72 sps:$4 sm:$0xff]  }
 0x320   :  { %6499 = vmatprep.subr.bf16.mxu0 %v10439_v62  ;;  %v10491_v61 = vld [vmem:[#allocation4 + $0xe50] ss:$72 sps:$4 sm:$0xff]   ;;  %v10496_v62 = vld [vmem:[#allocation4 + $0x17dc] ss:$72 sps:$4 sm:$0xff]  }
 0x321   :  { %6391 = vmatmul.mubr.bf16.vlgmr.msra.gmra.mrb[64].mxu1 %v10913_v12  ;;  %v10457_v12 = vld [vmem:[#allocation4 + $0xaf4] ss:$72 sps:$4 sm:$0xff]  }
 0x322   :  { %6485 = vmatmul.mubr.bf16.vlgmr.msra.gmra.mrb[60].mxu0 %v10595_v8  ;;  %6406 = vmatpush1.bf16.msra.mxu1 %v10434_v0  ;;  %v10499_v0 = vld [vmem:[#allocation4 + $0xee4] ss:$72 sps:$4 sm:$0xff]   ;;  %v10505_v8 = vld [vmem:[#allocation4 + $0xf74] ss:$72 sps:$4 sm:$0xff]  }
 0x323   :  { %6500 = vmatpush1.bf16.msra.mxu0 %v10437_v1  ;;  %6407 = vmatprep.subr.bf16.mxu1 %v10442_v2  ;;  %v10494_v1 = vld [vmem:[#allocation4 + $0x17d8] ss:$72 sps:$4 sm:$0xff]  }
 0x324   :  { %6501 = vmatprep.subr.bf16.mxu0 %v10445_v3  ;;  %6396 = vmatprep.mubr.bf16.mxu1 %v10742_v27  ;;  %v10497_v2 = vld [vmem:[#allocation4 + $0xee0] ss:$72 sps:$4 sm:$0xff]   ;;  %v10502_v3 = vld [vmem:[#allocation4 + $0x186c] ss:$72 sps:$4 sm:$0xff]  }
 0x325   :  { %6490 = vmatprep.mubr.bf16.mxu0 %v10749_v32  ;;  %v10463_v32 = vld [vmem:[#allocation4 + $0xb84] ss:$72 sps:$4 sm:$0xff]  }
 0x326   :  { %6408 = vmatpush1.bf16.msra.mxu1 %v10440_v11  ;;  %v10500_v11 = vld [vmem:[#allocation4 + $0x1868] ss:$72 sps:$4 sm:$0xff]  }
 0x327   :  { %6502 = vmatpush1.bf16.msra.mxu0 %v10443_v6  ;;  %6409 = vmatprep.subr.bf16.mxu1 %v10448_v14  ;;  %v10503_v6 = vld [vmem:[#allocation4 + $0xf70] ss:$72 sps:$4 sm:$0xff]   ;;  %v10508_v14 = vld [vmem:[#allocation4 + $0x18fc] ss:$72 sps:$4 sm:$0xff]  }
 0x328   :  { %6503 = vmatprep.subr.bf16.mxu0 %v10451_v15  ;;  %v10511_v15 = vld [vmem:[#allocation4 + $0x1004] ss:$72 sps:$4 sm:$0xff]  }
 0x329   :  { %6397 = vmatmul.mubr.bf16.gmra.mrb[60].mxu1 %v10744_v28 }
 0x32a   :  { %6491 = vmatmul.mubr.bf16.gmra.mrb[64].mxu0 %v10751_v33  ;;  %6410 = vmatpush1.bf16.msra.mxu1 %v10446_v16  ;;  %v10466_v33 = vld [vmem:[#allocation4 + $0x150c] ss:$72 sps:$4 sm:$0xff]   ;;  %v10506_v16 = vld [vmem:[#allocation4 + $0x18f8] ss:$72 sps:$4 sm:$0xff]  }
 0x32b   :  { %6504 = vmatpush1.bf16.msra.mxu0 %v10449_v18  ;;  %6411 = vmatprep.subr.bf16.mxu1 %v10454_v22  ;;  %v10509_v18 = vld [vmem:[#allocation4 + $0x1000] ss:$72 sps:$4 sm:$0xff]   ;;  %v10514_v22 = vld [vmem:[#allocation4 + $0x198c] ss:$72 sps:$4 sm:$0xff]  }
 0x32c   :  { %6505 = vmatprep.subr.bf16.mxu0 %v10457_v12  ;;  %6437 = vmatprep.mubr.bf16.mxu1 %v10923_v34  ;;  %v10472_v34 = vld [vmem:[#allocation4 + $0x159c] ss:$72 sps:$4 sm:$0xff]  }
 0x32d   :  { %6531 = vmatprep.mubr.bf16.mxu0 %v10596_v29  ;;  %v10517_v12 = vld [vmem:[#allocation4 + $0x1094] ss:$72 sps:$4 sm:$0xff]   ;;  %v10518_v29 = vld [vmem:[#allocation4 + $0x1a18] ss:$72 sps:$4 sm:$0xff]  }
 0x32e   :  { %6412 = vmatpush1.bf16.msra.mxu1 %v10452_v24  ;;  %v10512_v24 = vld [vmem:[#allocation4 + $0x1988] ss:$72 sps:$4 sm:$0xff]  }
 0x32f   :  { %6506 = vmatpush1.bf16.msra.mxu0 %v10455_v25  ;;  %6413 = vmatprep.subr.bf16.mxu1 %v10460_v56  ;;  %v10515_v25 = vld [vmem:[#allocation4 + $0x1090] ss:$72 sps:$4 sm:$0xff]   ;;  %v10520_v56 = vld [vmem:[#allocation4 + $0x1a1c] ss:$72 sps:$4 sm:$0xff]  }
 0x330   :  { %6507 = vmatprep.subr.bf16.mxu0 %v10463_v32  ;;  %v10523_v32 = vld [vmem:[#allocation4 + $0x1124] ss:$72 sps:$4 sm:$0xff]  }
 0x332   :  { %6414 = vmatpush1.bf16.msra.mxu1 %v10458_v30  ;;  %v10521_v30 = vld [vmem:[#allocation4 + $0x1120] ss:$72 sps:$4 sm:$0xff]  }
 0x333   :  { %6508 = vmatpush1.bf16.msra.mxu0 %v10461_v36  ;;  %6415 = vmatprep.subr.bf16.mxu1 %v10466_v33  ;;  %v10526_v36 = vld [vmem:[#allocation4 + $0x1aac] ss:$72 sps:$4 sm:$0xff]  }
 0x334   :  { %6509 = vmatprep.subr.bf16.mxu0 %v10469_v37  ;;  %v6110_v41 = vpop.f32.mrb[48].mxu1  ;;  %v10529_v33 = vld [vmem:[#allocation4 + $0x11b4] ss:$72 sps:$4 sm:$0xff]   ;;  %v10524_v37 = vld [vmem:[#allocation4 + $0x1aa8] ss:$72 sps:$4 sm:$0xff]  }
 0x335   :  { %v6204_v52 = vpop.f32.mrb[44].mxu0  ;;  %v6111_v43 = vpop.f32.mrb[49].mxu1  ;;  %v10533_v41 = vld [vmem:[#allocation4 + $0x12d0] ss:$72 sps:$4 sm:$0xff]  }
 0x336   :  { %v6205_v42 = vpop.f32.mrb[45].mxu0  ;;  %6416 = vmatpush1.bf16.msra.mxu1 %v10464_v38  ;;  %v6112_v48 = vpop.f32.mrb[50].mxu1  ;;  %v10527_v38 = vld [vmem:[#allocation4 + $0x11b0] ss:$72 sps:$4 sm:$0xff]   ;;  %v10597_v52 = vld [vmem:[%s11086_s0 + $0x8] ss:$24 sps:$4 sm:$0xff]  }
 0x337   :  { %v6206_v63 = vpop.f32.mrb[46].mxu0  ;;  %6510 = vmatpush1.bf16.msra.mxu0 %v10467_v39  ;;  %6417 = vmatprep.subr.bf16.mxu1 %v10472_v34  ;;  %v6113_v10 = vpop.f32.mrb[51].mxu1  ;;  %v10532_v39 = vld [vmem:[#allocation4 + $0x1244] ss:$72 sps:$4 sm:$0xff]   ;;  %v10530_v34 = vld [vmem:[#allocation4 + $0x1240] ss:$72 sps:$4 sm:$0xff]  }
 0x338   :  { %v6207_v49 = vpop.f32.mrb[47].mxu0  ;;  %6511 = vmatprep.subr.bf16.mxu0 %v10475_v59  ;;  %v10535_v59 = vld [vmem:[#allocation4 + $0x12d4] ss:$72 sps:$4 sm:$0xff]   ;;  %v10538_v42 = vld [vmem:[#allocation4 + $0x1364] ss:$72 sps:$4 sm:$0xff]  }
 0x339   :  { %v10536_v43 = vld [vmem:[#allocation4 + $0x1360] ss:$72 sps:$4 sm:$0xff]   ;;  %v10541_v63 = vld [vmem:[#allocation4 + $0x13f4] ss:$72 sps:$4 sm:$0xff]   ;;  %v10545_v49 = vld [vmem:[#allocation4 + $0x1510] ss:$72 sps:$4 sm:$0xff]  }
 0x33a   :  { %6418 = vmatpush1.bf16.msra.mxu1 %v10470_v7  ;;  %v10598_v7 = vld [vmem:[%s11086_s0 + $0x14] ss:$24 sps:$4 sm:$0xff]   ;;  %v10542_v48 = vld [vmem:[#allocation4 + $0x1480] ss:$72 sps:$4 sm:$0xff]  }
 0x33b   :  { %6512 = vmatpush1.bf16.msra.mxu0 %v10473_v50  ;;  %6419 = vmatprep.subr.bf16.mxu1 %v10478_v9  ;;  %v10544_v50 = vld [vmem:[#allocation4 + $0x1484] ss:$72 sps:$4 sm:$0xff]  }
 0x33c   :  { %6513 = vmatprep.subr.bf16.mxu0 %v10481_v5  ;;  %v10550_v9 = vld [vmem:[#allocation4 + $0x15a4] ss:$72 sps:$4 sm:$0xff]  }
 0x33e   :  { %6420 = vmatpush1.bf16.msra.mxu1 %v10476_v53 }
 0x33f   :  { %6514 = vmatpush1.bf16.msra.mxu0 %v10479_v55  ;;  %6421 = vmatprep.subr.bf16.mxu1 %v10484_v40  ;;  %v10548_v40 = vld [vmem:[#allocation4 + $0x15a0] ss:$72 sps:$4 sm:$0xff]  }
 0x340   :  { %6515 = vmatprep.subr.bf16.mxu0 %v10487_v57 }
 0x342   :  { %6422 = vmatpush1.bf16.msra.mxu1 %v10482_v13 }
 0x343   :  { %6516 = vmatpush1.bf16.msra.mxu0 %v10485_v4  ;;  %6423 = vmatprep.subr.bf16.mxu1 %v10490_v19  ;;  %v10553_v19 = vld [vmem:[#allocation4 + $0x1634] ss:$72 sps:$4 sm:$0xff]  }
 0x344   :  { %6517 = vmatprep.subr.bf16.mxu0 %v10493_v58  ;;  %v10551_v58 = vld [vmem:[#allocation4 + $0x1630] ss:$72 sps:$4 sm:$0xff]  }
 0x346   :  { %6424 = vmatpush1.bf16.msra.mxu1 %v10488_v60  ;;  %v10556_v60 = vld [vmem:[#allocation4 + $0x16c4] ss:$72 sps:$4 sm:$0xff]  }
 0x347   :  { %6518 = vmatpush1.bf16.msra.mxu0 %v10491_v61  ;;  %6425 = vmatprep.subr.bf16.mxu1 %v10496_v62 }
 0x348   :  { %6519 = vmatprep.subr.bf16.mxu0 %v10499_v0 }
 0x34a   :  { %6426 = vmatpush1.bf16.msra.mxu1 %v10494_v1 }
 0x34b   :  { %6520 = vmatpush1.bf16.msra.mxu0 %v10497_v2  ;;  %6427 = vmatprep.subr.bf16.mxu1 %v10502_v3  ;;  %v10554_v3 = vld [vmem:[#allocation4 + $0x16c0] ss:$72 sps:$4 sm:$0xff]  }
 0x34c   :  { %6521 = vmatprep.subr.bf16.mxu0 %v10505_v8 }
 0x34e   :  { %6428 = vmatpush1.bf16.msra.mxu1 %v10500_v11 }
 0x34f   :  { %6522 = vmatpush1.bf16.msra.mxu0 %v10503_v6  ;;  %6429 = vmatprep.subr.bf16.mxu1 %v10508_v14  ;;  %v10559_v6 = vld [vmem:[#allocation4 + $0x1754] ss:$72 sps:$4 sm:$0xff]  }
 0x350   :  { %6523 = vmatprep.subr.bf16.mxu0 %v10511_v15  ;;  %v10557_v15 = vld [vmem:[#allocation4 + $0x1750] ss:$72 sps:$4 sm:$0xff]  }
 0x352   :  { %6430 = vmatpush1.bf16.msra.mxu1 %v10506_v16  ;;  %v10562_v16 = vld [vmem:[#allocation4 + $0x17e4] ss:$72 sps:$4 sm:$0xff]  }
 0x353   :  { %6524 = vmatpush1.bf16.msra.mxu0 %v10509_v18  ;;  %6431 = vmatprep.subr.bf16.mxu1 %v10514_v22  ;;  %v10560_v18 = vld [vmem:[#allocation4 + $0x17e0] ss:$72 sps:$4 sm:$0xff]   ;;  %v10565_v22 = vld [vmem:[#allocation4 + $0x1874] ss:$72 sps:$4 sm:$0xff]  }
 0x354   :  { %6525 = vmatprep.subr.bf16.mxu0 %v10517_v12  ;;  %v10563_v12 = vld [vmem:[#allocation4 + $0x1870] ss:$72 sps:$4 sm:$0xff]  }
 0x356   :  { %6432 = vmatpush1.bf16.msra.mxu1 %v10512_v24  ;;  %v10568_v24 = vld [vmem:[#allocation4 + $0x1904] ss:$72 sps:$4 sm:$0xff]  }
 0x357   :  { %6526 = vmatpush1.bf16.msra.mxu0 %v10515_v25  ;;  %6433 = vmatprep.subr.bf16.mxu1 %v10520_v56  ;;  %v10566_v25 = vld [vmem:[#allocation4 + $0x1900] ss:$72 sps:$4 sm:$0xff]   ;;  %v10571_v56 = vld [vmem:[#allocation4 + $0x1994] ss:$72 sps:$4 sm:$0xff]  }
 0x358   :  { %6527 = vmatprep.subr.bf16.mxu0 %v10523_v32  ;;  %v10569_v32 = vld [vmem:[#allocation4 + $0x1990] ss:$72 sps:$4 sm:$0xff]  }
 0x35a   :  { %6434 = vmatpush1.bf16.msra.mxu1 %v10518_v29  ;;  %v10574_v29 = vld [vmem:[#allocation4 + $0x1a24] ss:$72 sps:$4 sm:$0xff]  }
 0x35b   :  { %6528 = vmatpush1.bf16.msra.mxu0 %v10521_v30  ;;  %6435 = vmatprep.subr.bf16.mxu1 %v10526_v36  ;;  %v10572_v30 = vld [vmem:[#allocation4 + $0x1a20] ss:$72 sps:$4 sm:$0xff]   ;;  %v10577_v36 = vld [vmem:[#allocation4 + $0x1ab4] ss:$72 sps:$4 sm:$0xff]  }
 0x35c   :  { %6529 = vmatprep.subr.bf16.mxu0 %v10529_v33  ;;  %v10575_v33 = vld [vmem:[#allocation4 + $0x1ab0] ss:$72 sps:$4 sm:$0xff]  }
 0x35e   :  { %6436 = vmatpush1.bf16.msra.mxu1 %v10524_v37  ;;  %v10599_v37 = vld [vmem:[%s11086_s0 + $0x10] ss:$24 sps:$4 sm:$0xff]  }
 0x35f   :  { %6530 = vmatpush1.bf16.msra.mxu0 %v10527_v38 }
 0x360   :  { %6546 = vmatprep.subr.bf16.mxu0 %v10532_v39 }
 0x361   :  { %6438 = vmatmul.mubr.bf16.vlgmr.msra.gmra.mrb[68].mxu1 %v10930_v47  ;;  %v10539_v47 = vld [vmem:[#allocation4 + $0x13f0] ss:$72 sps:$4 sm:$0xff]  }
 0x362   :  { %6532 = vmatmul.mubr.bf16.vlgmr.msra.gmra.mrb[68].mxu0 %v10597_v52  ;;  %6443 = vmatprep.mubr.bf16.mxu1 %v10772_v23 }
 0x363   :  { %6547 = vmatpush1.bf16.msra.mxu0 %v10530_v34  ;;  %6537 = vmatprep.mubr.bf16.mxu0 %v10742_v27  ;;  %v10547_v27 = vld [vmem:[#allocation4 + $0x1514] ss:$72 sps:$4 sm:$0xff]  }
 0x364   :  { %6548 = vmatprep.subr.bf16.mxu0 %v10535_v59 }
 0x367   :  { %6549 = vmatpush1.bf16.msra.mxu0 %v10533_v41 }
 0x368   :  { %6550 = vmatprep.subr.bf16.mxu0 %v10538_v42 }
 0x369   :  { %6444 = vmatmul.mubr.bf16.gmra.mrb[60].mxu1 %v10778_v31 }
 0x36a   :  { %6538 = vmatmul.mubr.bf16.gmra.mrb[64].mxu0 %v10744_v28 }
 0x36b   :  { %6551 = vmatpush1.bf16.msra.mxu0 %v10536_v43  ;;  %6578 = vmatprep.mubr.bf16.mxu0 %v10598_v7 }
 0x36c   :  { %6552 = vmatprep.subr.bf16.mxu0 %v10541_v63 }
 0x36f   :  { %6553 = vmatpush1.bf16.msra.mxu0 %v10539_v47 }
 0x370   :  { %6554 = vmatprep.subr.bf16.mxu0 %v10544_v50 }
 0x373   :  { %6555 = vmatpush1.bf16.msra.mxu0 %v10542_v48 }
 0x374   :  { %6556 = vmatprep.subr.bf16.mxu0 %v10547_v27  ;;  %v6157_v10 = vpop.f32.mrb[52].mxu1 }
 0x375   :  { %v6251_v5 = vpop.f32.mrb[52].mxu0  ;;  %v6158_v53 = vpop.f32.mrb[53].mxu1 }
 0x376   :  { %v6252_v28 = vpop.f32.mrb[53].mxu0  ;;  %v6159_v57 = vpop.f32.mrb[54].mxu1 }
 0x377   :  { %v6253_v55 = vpop.f32.mrb[54].mxu0  ;;  %6557 = vmatpush1.bf16.msra.mxu0 %v10545_v49  ;;  %v6160_v4 = vpop.f32.mrb[55].mxu1 }
 0x378   :  { %v6254_v13 = vpop.f32.mrb[55].mxu0  ;;  %6558 = vmatprep.subr.bf16.mxu0 %v10550_v9 }
 0x37b   :  { %6559 = vmatpush1.bf16.msra.mxu0 %v10548_v40 }
 0x37c   :  { %6560 = vmatprep.subr.bf16.mxu0 %v10553_v19  ;;  %v6163_v61 = vpop.f32.mrb[44].mxu1 }
 0x37d   :  { %v6609_v62 = vmax.f32 %v6163_v61, 0.0  ;;  %v6165_v0 = vpop.f32.mrb[45].mxu1 }
 0x37e   :  { %v6610_v1 = vmax.f32 %v6165_v0, 0.0  ;;  %v6167_v2 = vpop.f32.mrb[46].mxu1 }
 0x37f   :  { %6561 = vmatpush1.bf16.msra.mxu0 %v10551_v58  ;;  %v10984_v8 = vpack.c.bf16 %v6609_v62, %v6609_v62  ;;  %v6168_v11 = vpop.f32.mrb[47].mxu1 }
 0x380   :  { %6562 = vmatprep.subr.bf16.mxu0 %v10556_v60  ;;  %v10986_v14 = vpack.c.bf16 %v6610_v1, %v6610_v1 }
 0x383   :  { %6563 = vmatpush1.bf16.msra.mxu0 %v10554_v3 }
 0x384   :  { %6564 = vmatprep.subr.bf16.mxu0 %v10559_v6 }
 0x387   :  { %6565 = vmatpush1.bf16.msra.mxu0 %v10557_v15 }
 0x388   :  { %6566 = vmatprep.subr.bf16.mxu0 %v10562_v16 }
 0x38b   :  { %6567 = vmatpush1.bf16.msra.mxu0 %v10560_v18 }
 0x38c   :  { %6568 = vmatprep.subr.bf16.mxu0 %v10565_v22 }
 0x38f   :  { %6569 = vmatpush1.bf16.msra.mxu0 %v10563_v12 }
 0x390   :  { %6570 = vmatprep.subr.bf16.mxu0 %v10568_v24 }
 0x393   :  { %6571 = vmatpush1.bf16.msra.mxu0 %v10566_v25 }
 0x394   :  { %6572 = vmatprep.subr.bf16.mxu0 %v10571_v56 }
 0x397   :  { %6573 = vmatpush1.bf16.msra.mxu0 %v10569_v32 }
 0x398   :  { %6574 = vmatprep.subr.bf16.mxu0 %v10574_v29 }
 0x39b   :  { %6575 = vmatpush1.bf16.msra.mxu0 %v10572_v30 }
 0x39c   :  { %6576 = vmatprep.subr.bf16.mxu0 %v10577_v36 }
 0x39f   :  { %6577 = vmatpush1.bf16.msra.mxu0 %v10575_v33 }
 0x3a2   :  { %6579 = vmatmul.mubr.bf16.vlgmr.msra.gmra.mrb[72].mxu0 %v10599_v37 }
 0x3a3   :  { %6584 = vmatprep.mubr.bf16.mxu0 %v10772_v23 }
 0x3aa   :  { %6585 = vmatmul.mubr.bf16.gmra.mrb[64].mxu0 %v10778_v31 }
 0x3b4   :  { %v6345_v39 = vpop.f32.mrb[56].mxu1 }
 0x3b5   :  { %v6298_v38 = vpop.f32.mrb[56].mxu0  ;;  %v6346_v59 = vpop.f32.mrb[57].mxu1 }
 0x3b6   :  { %v6299_v34 = vpop.f32.mrb[57].mxu0  ;;  %v6347_v41 = vpop.f32.mrb[58].mxu1 }
 0x3b7   :  { %v6300_v52 = vpop.f32.mrb[58].mxu0  ;;  %v6348_v43 = vpop.f32.mrb[59].mxu1 }
 0x3b8   :  { %v6301_v42 = vpop.f32.mrb[59].mxu0 }
 0x3bd   :  { %v6304_v63 = vpop.f32.mrb[48].mxu0 }
 0x3be   :  { %v6611_v47 = vmax.f32 %v6304_v63, 0.0  ;;  %v6306_v7 = vpop.f32.mrb[49].mxu0 }
 0x3bf   :  { %v6612_v50 = vmax.f32 %v6306_v7, 0.0  ;;  %v6308_v48 = vpop.f32.mrb[50].mxu0 }
 0x3c0   :  { %v10993_v27 = vpack.c.bf16 %v6611_v47, %v6611_v47  ;;  %v6309_v49 = vpop.f32.mrb[51].mxu0 }
 0x3c1   :  { %v10995_v9 = vpack.c.bf16 %v6612_v50, %v6612_v50 }
 0x3f4   :  { %v6392_v31 = vpop.f32.mrb[64].mxu1 }
 0x3f5   :  { %v6486_v23 = vpop.f32.mrb[60].mxu0  ;;  %v6393_v10 = vpop.f32.mrb[65].mxu1 }
 0x3f6   :  { %v6487_v5 = vpop.f32.mrb[61].mxu0  ;;  %v6394_v53 = vpop.f32.mrb[66].mxu1 }
 0x3f7   :  { %v6488_v28 = vpop.f32.mrb[62].mxu0  ;;  %v6395_v40 = vpop.f32.mrb[67].mxu1 }
 0x3f8   :  { %v6489_v55 = vpop.f32.mrb[63].mxu0 }
 0x434   :  { %v6439_v13 = vpop.f32.mrb[68].mxu1 }
 0x435   :  { %v6533_v57 = vpop.f32.mrb[68].mxu0  ;;  %v6440_v19 = vpop.f32.mrb[69].mxu1 }
 0x436   :  { %v6534_v4 = vpop.f32.mrb[69].mxu0  ;;  %v6441_v60 = vpop.f32.mrb[70].mxu1 }
 0x437   :  { %v6535_v58 = vpop.f32.mrb[70].mxu0  ;;  %v6442_v62 = vpop.f32.mrb[71].mxu1 }
 0x438   :  { %v6536_v61 = vpop.f32.mrb[71].mxu0 }
 0x43c   :  { %v6445_v0 = vpop.f32.mrb[60].mxu1 }
 0x43d   :  { %v6613_v1 = vmax.f32 %v6445_v0, 0.0  ;;  %v6447_v2 = vpop.f32.mrb[61].mxu1 }
 0x43e   :  { %v6614_v3 = vmax.f32 %v6447_v2, 0.0  ;;  %v6449_v11 = vpop.f32.mrb[62].mxu1 }
 0x43f   :  { %v10997_v6 = vpack.c.bf16 %v6613_v1, %v6613_v1  ;;  %v6450_v15 = vpop.f32.mrb[63].mxu1 }
 0x440   :  { %v10999_v16 = vpack.c.bf16 %v6614_v3, %v6614_v3 }
 0x475   :  { %v6580_v18 = vpop.f32.mrb[72].mxu0 }
 0x476   :  { %v6581_v22 = vpop.f32.mrb[73].mxu0 }
 0x477   :  { %v6582_v12 = vpop.f32.mrb[74].mxu0 }
 0x478   :  { %v6583_v24 = vpop.f32.mrb[75].mxu0 }
 0x47d   :  { %v6586_v25 = vpop.f32.mrb[64].mxu0 }
 0x47e   :  { %v6615_v56 = vmax.f32 %v6586_v25, 0.0  ;;  %v6588_v32 = vpop.f32.mrb[65].mxu0 }
 0x47f   :  { %v6616_v29 = vmax.f32 %v6588_v32, 0.0  ;;  %v6590_v30 = vpop.f32.mrb[66].mxu0 }
 0x480   :  { %v11001_v36 = vpack.c.bf16 %v6615_v56, %v6615_v56  ;;  %v6591_v33 = vpop.f32.mrb[67].mxu0 }
 0x481   :  { %v11003_v37 = vpack.c.bf16 %v6616_v29, %v6616_v29 }
 0x482   :  { %10660 = dma.done.wait [#allocation3], 73728 }
 0x483   :  { %10661 = vsyncadd [#allocation3], 4294893568  ;;  %7247 = vmatprep.mubr.bf16.mxu1 %v10843_v54  ;;  %7376 = vmatprep.mubr.bf16.mxu0 %v10843_v54  ;;  %v6640_v38 = vld [vmem:[#allocation2 + $0x8] sm:$0xff]  ;;  %v6642_v39 = vld [vmem:[#allocation2 + $0x18] sm:$0xff]  ;;  %vm10677_vm1 = vmmov 1   ;;  %vm8137_vm4 = vcmask 130048  }
 0x484   :  { %v6639_v34 = vld [vmem:[#allocation2] sm:$0xff]  ;;  %7215 = vmatprep.subr.bf16.mxu1 %v6640_v38  ;;  %7344 = vmatprep.subr.bf16.mxu0 %v6642_v39  ;;  %v6641_v59 = vld [vmem:[#allocation2 + $0x10] sm:$0xff]  ;;  %v6652_v52 = vld [vmem:[#allocation2 + $0x68] sm:$0xff]  ;;  %s10679_s0 = smov [#allocation7]  }
 0x485   :  { %v6654_v41 = vld [vmem:[#allocation2 + $0x78] sm:$0xff]  ;;  %7216 = vmatpush1.bf16.msra.mxu1 %v6639_v34  ;;  %7345 = vmatpush1.bf16.msra.mxu0 %v6641_v59  ;;  %v6651_v42 = vld [vmem:[#allocation2 + $0x60] sm:$0xff]  ;;  %v6653_v43 = vld [vmem:[#allocation2 + $0x70] sm:$0xff]  ;;  %s8223_s17 = sshll.u32 %s10679_s0, 4  ;;  %s8224_s17 = int_to_ptr.vmem [resolvable:$true] %s8223_s17 }
 0x486   :  { %7217 = vmatprep.subr.bf16.mxu1 %v6652_v52  ;;  %7346 = vmatprep.subr.bf16.mxu0 %v6654_v41  ;;  %v6664_v63 = vld [vmem:[#allocation2 + $0xc8] sm:$0xff]  ;;  %v6666_v47 = vld [vmem:[#allocation2 + $0xd8] sm:$0xff]  ;;  %v6663_v54 = vld [vmem:[#allocation2 + $0xc0] sm:$0xff]  ;;  %s10636_s18 = scalar_lea.vmem %s8224_s17, 16  ;;  %s10640_s19 = scalar_lea.vmem %s8224_s17, 32 }
 0x487   :  { %v6665_v7 = vld [vmem:[#allocation2 + $0xd0] sm:$0xff]  ;;  %v6676_v50 = vld [vmem:[#allocation2 + $0x128] sm:$0xff]  ;;  %v6678_v48 = vld [vmem:[#allocation2 + $0x138] sm:$0xff]  ;;  %p10637_p8 = scmp.ne.s32.totalorder %s8224_s17, %s10636_s18  ;;  %p10641_p9 = scmp.lt.s32.totalorder %s8224_s17, %s8224_s17 }
 0x488   :  { %v6675_v49 = vld [vmem:[#allocation2 + $0x120] sm:$0xff]  ;;  %v6677_v23 = vld [vmem:[#allocation2 + $0x130] sm:$0xff]  ;;  %v6688_v31 = vld [vmem:[#allocation2 + $0x188] sm:$0xff]  ;;  %p10642_p10 = scmp.lt.s32.totalorder %s10640_s19, %s10636_s18 }
 0x489   :  { %7218 = vmatpush1.bf16.msra.mxu1 %v6651_v42  ;;  %7347 = vmatpush1.bf16.msra.mxu0 %v6653_v43  ;;  %v6690_v5 = vld [vmem:[#allocation2 + $0x198] sm:$0xff]  ;;  %v6687_v10 = vld [vmem:[#allocation2 + $0x180] sm:$0xff]  ;;  %v6689_v28 = vld [vmem:[#allocation2 + $0x190] sm:$0xff] }
 0x48a   :  { %7219 = vmatprep.subr.bf16.mxu1 %v6664_v63  ;;  %7348 = vmatprep.subr.bf16.mxu0 %v6666_v47  ;;  %v6700_v53 = vld [vmem:[#allocation2 + $0x1e8] sm:$0xff]  ;;  %v6702_v55 = vld [vmem:[#allocation2 + $0x1f8] sm:$0xff]  ;;  %v6699_v40 = vld [vmem:[#allocation2 + $0x1e0] sm:$0xff]  ;;  %p10643_p11 = por %p10642_p10, %p10641_p9 }
 0x48b   :  { %v6701_v57 = vld [vmem:[#allocation2 + $0x1f0] sm:$0xff]  ;;  %v6712_v13 = vld [vmem:[#allocation2 + $0x248] sm:$0xff]  ;;  %v6714_v4 = vld [vmem:[#allocation2 + $0x258] sm:$0xff] }
 0x48c   :  { %v6711_v19 = vld [vmem:[#allocation2 + $0x240] sm:$0xff]  ;;  %v6713_v58 = vld [vmem:[#allocation2 + $0x250] sm:$0xff]  ;;  %v6724_v60 = vld [vmem:[#allocation2 + $0x2a8] sm:$0xff]  ;;  %p10644_p12 = pnand %p10643_p11, %p10637_p8 }
 0x48d   :  { %7220 = vmatpush1.bf16.msra.mxu1 %v6663_v54  ;;  %7349 = vmatpush1.bf16.msra.mxu0 %v6665_v7  ;;  %v6726_v61 = vld [vmem:[#allocation2 + $0x2b8] sm:$0xff]  ;;  %v6723_v62 = vld [vmem:[#allocation2 + $0x2a0] sm:$0xff]  ;;  %v6725_v0 = vld [vmem:[#allocation2 + $0x2b0] sm:$0xff] }
 0x48e   :  { %7221 = vmatprep.subr.bf16.mxu1 %v6676_v50  ;;  %7350 = vmatprep.subr.bf16.mxu0 %v6678_v48  ;;  %v6736_v1 = vld [vmem:[#allocation2 + $0x308] sm:$0xff]  ;;  %v6738_v2 = vld [vmem:[#allocation2 + $0x318] sm:$0xff]  ;;  %v6735_v3 = vld [vmem:[#allocation2 + $0x300] sm:$0xff] }
 0x48f   :  { %v6737_v11 = vld [vmem:[#allocation2 + $0x310] sm:$0xff]  ;;  %v6748_v15 = vld [vmem:[#allocation2 + $0x368] sm:$0xff]  ;;  %v6750_v18 = vld [vmem:[#allocation2 + $0x378] sm:$0xff] }
 0x490   :  { %v6747_v22 = vld [vmem:[#allocation2 + $0x360] sm:$0xff]  ;;  %v6749_v12 = vld [vmem:[#allocation2 + $0x370] sm:$0xff]  ;;  %v6760_v24 = vld [vmem:[#allocation2 + $0x3c8] sm:$0xff] }
 0x491   :  { %7222 = vmatpush1.bf16.msra.mxu1 %v6675_v49  ;;  %7351 = vmatpush1.bf16.msra.mxu0 %v6677_v23  ;;  %v6762_v25 = vld [vmem:[#allocation2 + $0x3d8] sm:$0xff]  ;;  %v6759_v56 = vld [vmem:[#allocation2 + $0x3c0] sm:$0xff]  ;;  %v6761_v32 = vld [vmem:[#allocation2 + $0x3d0] sm:$0xff] }
 0x492   :  { %7223 = vmatprep.subr.bf16.mxu1 %v6688_v31  ;;  %7352 = vmatprep.subr.bf16.mxu0 %v6690_v5  ;;  %v6772_v29 = vld [vmem:[#allocation2 + $0x428] sm:$0xff]  ;;  %v6774_v30 = vld [vmem:[#allocation2 + $0x438] sm:$0xff]  ;;  %v6771_v33 = vld [vmem:[#allocation2 + $0x420] sm:$0xff] }
 0x493   :  { %v6773_v38 = vld [vmem:[#allocation2 + $0x430] sm:$0xff]  ;;  %v6784_v39 = vld [vmem:[#allocation2 + $0x488] sm:$0xff]  ;;  %v6786_v34 = vld [vmem:[#allocation2 + $0x498] sm:$0xff] }
 0x494   :  { %v6783_v59 = vld [vmem:[#allocation2 + $0x480] sm:$0xff]  ;;  %v6785_v52 = vld [vmem:[#allocation2 + $0x490] sm:$0xff]  ;;  %v6796_v41 = vld [vmem:[#allocation2 + $0x4e8] sm:$0xff] }
 0x495   :  { %7224 = vmatpush1.bf16.msra.mxu1 %v6687_v10  ;;  %7353 = vmatpush1.bf16.msra.mxu0 %v6689_v28  ;;  %v6798_v42 = vld [vmem:[#allocation2 + $0x4f8] sm:$0xff]  ;;  %v6795_v43 = vld [vmem:[#allocation2 + $0x4e0] sm:$0xff]  ;;  %v6797_v63 = vld [vmem:[#allocation2 + $0x4f0] sm:$0xff] }
 0x496   :  { %7225 = vmatprep.subr.bf16.mxu1 %v6700_v53  ;;  %7354 = vmatprep.subr.bf16.mxu0 %v6702_v55  ;;  %v6808_v47 = vld [vmem:[#allocation2 + $0x548] sm:$0xff]  ;;  %v6810_v54 = vld [vmem:[#allocation2 + $0x558] sm:$0xff]  ;;  %v6807_v7 = vld [vmem:[#allocation2 + $0x540] sm:$0xff] }
 0x497   :  { %v6809_v50 = vld [vmem:[#allocation2 + $0x550] sm:$0xff]  ;;  %v6820_v48 = vld [vmem:[#allocation2 + $0x5a8] sm:$0xff]  ;;  %v6822_v49 = vld [vmem:[#allocation2 + $0x5b8] sm:$0xff] }
 0x498   :  { %v6819_v23 = vld [vmem:[#allocation2 + $0x5a0] sm:$0xff]  ;;  %v6821_v31 = vld [vmem:[#allocation2 + $0x5b0] sm:$0xff]  ;;  %v6832_v5 = vld [vmem:[#allocation2 + $0x608] sm:$0xff] }
 0x499   :  { %7226 = vmatpush1.bf16.msra.mxu1 %v6699_v40  ;;  %7355 = vmatpush1.bf16.msra.mxu0 %v6701_v57  ;;  %v6834_v10 = vld [vmem:[#allocation2 + $0x618] sm:$0xff]  ;;  %v6831_v28 = vld [vmem:[#allocation2 + $0x600] sm:$0xff]  ;;  %v6833_v53 = vld [vmem:[#allocation2 + $0x610] sm:$0xff] }
 0x49a   :  { %7227 = vmatprep.subr.bf16.mxu1 %v6712_v13  ;;  %7356 = vmatprep.subr.bf16.mxu0 %v6714_v4  ;;  %v6844_v55 = vld [vmem:[#allocation2 + $0x668] sm:$0xff]  ;;  %v6846_v40 = vld [vmem:[#allocation2 + $0x678] sm:$0xff]  ;;  %v6843_v57 = vld [vmem:[#allocation2 + $0x660] sm:$0xff] }
 0x49b   :  { %v6845_v13 = vld [vmem:[#allocation2 + $0x670] sm:$0xff]  ;;  %v6856_v4 = vld [vmem:[#allocation2 + $0x6c8] sm:$0xff] }
 0x49d   :  { %7228 = vmatpush1.bf16.msra.mxu1 %v6711_v19  ;;  %7357 = vmatpush1.bf16.msra.mxu0 %v6713_v58  ;;  %v6858_v19 = vld [vmem:[#allocation2 + $0x6d8] sm:$0xff]  ;;  %v6855_v58 = vld [vmem:[#allocation2 + $0x6c0] sm:$0xff] }
 0x49e   :  { %7229 = vmatprep.subr.bf16.mxu1 %v6724_v60  ;;  %7358 = vmatprep.subr.bf16.mxu0 %v6726_v61  ;;  %v6857_v60 = vld [vmem:[#allocation2 + $0x6d0] sm:$0xff]  ;;  %v6868_v61 = vld [vmem:[#allocation2 + $0x728] sm:$0xff] }
 0x4a1   :  { %7230 = vmatpush1.bf16.msra.mxu1 %v6723_v62  ;;  %7359 = vmatpush1.bf16.msra.mxu0 %v6725_v0  ;;  %v6867_v62 = vld [vmem:[#allocation2 + $0x720] sm:$0xff]  ;;  %v6869_v0 = vld [vmem:[#allocation2 + $0x730] sm:$0xff] }
 0x4a2   :  { %7231 = vmatprep.subr.bf16.mxu1 %v6736_v1  ;;  %7360 = vmatprep.subr.bf16.mxu0 %v6738_v2  ;;  %v6880_v1 = vld [vmem:[#allocation2 + $0x788] sm:$0xff]  ;;  %v6882_v2 = vld [vmem:[#allocation2 + $0x798] sm:$0xff] }
 0x4a5   :  { %7232 = vmatpush1.bf16.msra.mxu1 %v6735_v3  ;;  %7361 = vmatpush1.bf16.msra.mxu0 %v6737_v11  ;;  %v6881_v3 = vld [vmem:[#allocation2 + $0x790] sm:$0xff]  ;;  %v6892_v11 = vld [vmem:[#allocation2 + $0x7e8] sm:$0xff] }
 0x4a6   :  { %7233 = vmatprep.subr.bf16.mxu1 %v6748_v15  ;;  %7362 = vmatprep.subr.bf16.mxu0 %v6750_v18  ;;  %v6894_v15 = vld [vmem:[#allocation2 + $0x7f8] sm:$0xff]  ;;  %v6891_v18 = vld [vmem:[#allocation2 + $0x7e0] sm:$0xff] }
 0x4a9   :  { %7234 = vmatpush1.bf16.msra.mxu1 %v6747_v22  ;;  %7363 = vmatpush1.bf16.msra.mxu0 %v6749_v12  ;;  %v6893_v22 = vld [vmem:[#allocation2 + $0x7f0] sm:$0xff]  ;;  %v6904_v12 = vld [vmem:[#allocation2 + $0x848] sm:$0xff] }
 0x4aa   :  { %7235 = vmatprep.subr.bf16.mxu1 %v6760_v24  ;;  %7364 = vmatprep.subr.bf16.mxu0 %v6762_v25  ;;  %v6906_v24 = vld [vmem:[#allocation2 + $0x858] sm:$0xff]  ;;  %v6903_v25 = vld [vmem:[#allocation2 + $0x840] sm:$0xff] }
 0x4ad   :  { %7236 = vmatpush1.bf16.msra.mxu1 %v6759_v56  ;;  %7365 = vmatpush1.bf16.msra.mxu0 %v6761_v32  ;;  %v6905_v56 = vld [vmem:[#allocation2 + $0x850] sm:$0xff]  ;;  %v6916_v32 = vld [vmem:[#allocation2 + $0x8a8] sm:$0xff] }
 0x4ae   :  { %7237 = vmatprep.subr.bf16.mxu1 %v6772_v29  ;;  %7366 = vmatprep.subr.bf16.mxu0 %v6774_v30  ;;  %v6918_v29 = vld [vmem:[#allocation2 + $0x8b8] sm:$0xff]  ;;  %v6915_v30 = vld [vmem:[#allocation2 + $0x8a0] sm:$0xff] }
 0x4b1   :  { %7238 = vmatpush1.bf16.msra.mxu1 %v6771_v33  ;;  %7367 = vmatpush1.bf16.msra.mxu0 %v6773_v38  ;;  %v6917_v33 = vld [vmem:[#allocation2 + $0x8b0] sm:$0xff]  ;;  %v6928_v38 = vld [vmem:[#allocation2 + $0x908] sm:$0xff] }
 0x4b2   :  { %7239 = vmatprep.subr.bf16.mxu1 %v6784_v39  ;;  %7368 = vmatprep.subr.bf16.mxu0 %v6786_v34  ;;  %v6930_v39 = vld [vmem:[#allocation2 + $0x918] sm:$0xff]  ;;  %v6927_v34 = vld [vmem:[#allocation2 + $0x900] sm:$0xff] }
 0x4b5   :  { %7240 = vmatpush1.bf16.msra.mxu1 %v6783_v59  ;;  %7369 = vmatpush1.bf16.msra.mxu0 %v6785_v52  ;;  %v6929_v59 = vld [vmem:[#allocation2 + $0x910] sm:$0xff]  ;;  %v6940_v52 = vld [vmem:[#allocation2 + $0x968] sm:$0xff] }
 0x4b6   :  { %7241 = vmatprep.subr.bf16.mxu1 %v6796_v41  ;;  %7370 = vmatprep.subr.bf16.mxu0 %v6798_v42  ;;  %v6942_v41 = vld [vmem:[#allocation2 + $0x978] sm:$0xff]  ;;  %v6939_v42 = vld [vmem:[#allocation2 + $0x960] sm:$0xff] }
 0x4b9   :  { %7242 = vmatpush1.bf16.msra.mxu1 %v6795_v43  ;;  %7371 = vmatpush1.bf16.msra.mxu0 %v6797_v63  ;;  %v6941_v43 = vld [vmem:[#allocation2 + $0x970] sm:$0xff]  ;;  %v6952_v63 = vld [vmem:[#allocation2 + $0x9c8] sm:$0xff] }
 0x4ba   :  { %7243 = vmatprep.subr.bf16.mxu1 %v6808_v47  ;;  %7372 = vmatprep.subr.bf16.mxu0 %v6810_v54  ;;  %v6954_v47 = vld [vmem:[#allocation2 + $0x9d8] sm:$0xff]  ;;  %v6951_v54 = vld [vmem:[#allocation2 + $0x9c0] sm:$0xff] }
 0x4bd   :  { %7244 = vmatpush1.bf16.msra.mxu1 %v6807_v7  ;;  %7373 = vmatpush1.bf16.msra.mxu0 %v6809_v50  ;;  %v6953_v7 = vld [vmem:[#allocation2 + $0x9d0] sm:$0xff]  ;;  %v6964_v50 = vld [vmem:[#allocation2 + $0xa28] sm:$0xff] }
 0x4be   :  { %7245 = vmatprep.subr.bf16.mxu1 %v6820_v48  ;;  %7374 = vmatprep.subr.bf16.mxu0 %v6822_v49  ;;  %v6966_v48 = vld [vmem:[#allocation2 + $0xa38] sm:$0xff]  ;;  %v6963_v49 = vld [vmem:[#allocation2 + $0xa20] sm:$0xff] }
 0x4c1   :  { %7246 = vmatpush1.bf16.msra.mxu1 %v6819_v23  ;;  %7375 = vmatpush1.bf16.msra.mxu0 %v6821_v31  ;;  %v6965_v23 = vld [vmem:[#allocation2 + $0xa30] sm:$0xff]  ;;  %v6976_v31 = vld [vmem:[#allocation2 + $0xa88] sm:$0xff] }
 0x4c2   :  { %7258 = vmatprep.subr.bf16.mxu1 %v6832_v5  ;;  %7387 = vmatprep.subr.bf16.mxu0 %v6834_v10  ;;  %v6978_v5 = vld [vmem:[#allocation2 + $0xa98] sm:$0xff]  ;;  %v6975_v10 = vld [vmem:[#allocation2 + $0xa80] sm:$0xff] }
 0x4c4   :  { %7248 = vmatmul.mubr.bf16.vlgmr.msra.gmra.mrb[72].mxu1 %v10841_v17  ;;  %7377 = vmatmul.mubr.bf16.vlgmr.msra.gmra.mrb[76].mxu0 %v10841_v17  ;;  %v6870_v17 = vld [vmem:[#allocation2 + $0x738] sm:$0xff] }
 0x4c5   :  { %7259 = vmatpush1.bf16.msra.mxu1 %v6831_v28  ;;  %7388 = vmatpush1.bf16.msra.mxu0 %v6833_v53  ;;  %v6977_v28 = vld [vmem:[#allocation2 + $0xa90] sm:$0xff]  ;;  %v6988_v53 = vld [vmem:[#allocation2 + $0xae8] sm:$0xff] }
 0x4c6   :  { %7260 = vmatprep.subr.bf16.mxu1 %v6844_v55  ;;  %7389 = vmatprep.subr.bf16.mxu0 %v6846_v40  ;;  %v6990_v55 = vld [vmem:[#allocation2 + $0xaf8] sm:$0xff]  ;;  %v6987_v40 = vld [vmem:[#allocation2 + $0xae0] sm:$0xff] }
 0x4c7   :  { %7290 = vmatprep.mubr.bf16.mxu1 %v10885_v45  ;;  %7419 = vmatprep.mubr.bf16.mxu0 %v10885_v45  ;;  %v6879_v45 = vld [vmem:[#allocation2 + $0x780] sm:$0xff] }
 0x4c9   :  { %7261 = vmatpush1.bf16.msra.mxu1 %v6843_v57  ;;  %7390 = vmatpush1.bf16.msra.mxu0 %v6845_v13  ;;  %v6989_v57 = vld [vmem:[#allocation2 + $0xaf0] sm:$0xff]  ;;  %v7000_v13 = vld [vmem:[#allocation2 + $0xb48] sm:$0xff] }
 0x4ca   :  { %7262 = vmatprep.subr.bf16.mxu1 %v6856_v4  ;;  %7391 = vmatprep.subr.bf16.mxu0 %v6858_v19  ;;  %v7002_v4 = vld [vmem:[#allocation2 + $0xb58] sm:$0xff]  ;;  %v6999_v19 = vld [vmem:[#allocation2 + $0xb40] sm:$0xff] }
 0x4cd   :  { %7263 = vmatpush1.bf16.msra.mxu1 %v6855_v58  ;;  %7392 = vmatpush1.bf16.msra.mxu0 %v6857_v60  ;;  %v7001_v58 = vld [vmem:[#allocation2 + $0xb50] sm:$0xff]  ;;  %v7012_v60 = vld [vmem:[#allocation2 + $0xba8] sm:$0xff] }
 0x4ce   :  { %7264 = vmatprep.subr.bf16.mxu1 %v6868_v61  ;;  %7393 = vmatprep.subr.bf16.mxu0 %v6870_v17  ;;  %v7014_v61 = vld [vmem:[#allocation2 + $0xbb8] sm:$0xff]  ;;  %v7011_v17 = vld [vmem:[#allocation2 + $0xba0] sm:$0xff] }
 0x4d1   :  { %7265 = vmatpush1.bf16.msra.mxu1 %v6867_v62  ;;  %7394 = vmatpush1.bf16.msra.mxu0 %v6869_v0  ;;  %v7013_v62 = vld [vmem:[#allocation2 + $0xbb0] sm:$0xff]  ;;  %v7024_v0 = vld [vmem:[#allocation2 + $0xc08] sm:$0xff] }
 0x4d2   :  { %7266 = vmatprep.subr.bf16.mxu1 %v6880_v1  ;;  %7395 = vmatprep.subr.bf16.mxu0 %v6882_v2  ;;  %v7026_v1 = vld [vmem:[#allocation2 + $0xc18] sm:$0xff]  ;;  %v7023_v2 = vld [vmem:[#allocation2 + $0xc00] sm:$0xff] }
 0x4d5   :  { %7267 = vmatpush1.bf16.msra.mxu1 %v6879_v45  ;;  %7396 = vmatpush1.bf16.msra.mxu0 %v6881_v3  ;;  %v7025_v45 = vld [vmem:[#allocation2 + $0xc10] sm:$0xff]  ;;  %v7036_v3 = vld [vmem:[#allocation2 + $0xc68] sm:$0xff] }
 0x4d6   :  { %7268 = vmatprep.subr.bf16.mxu1 %v6892_v11  ;;  %7397 = vmatprep.subr.bf16.mxu0 %v6894_v15  ;;  %v7038_v11 = vld [vmem:[#allocation2 + $0xc78] sm:$0xff]  ;;  %v7035_v15 = vld [vmem:[#allocation2 + $0xc60] sm:$0xff] }
 0x4d9   :  { %7269 = vmatpush1.bf16.msra.mxu1 %v6891_v18  ;;  %7398 = vmatpush1.bf16.msra.mxu0 %v6893_v22  ;;  %v7037_v18 = vld [vmem:[#allocation2 + $0xc70] sm:$0xff]  ;;  %v7048_v22 = vld [vmem:[#allocation2 + $0xcc8] sm:$0xff] }
 0x4da   :  { %7270 = vmatprep.subr.bf16.mxu1 %v6904_v12  ;;  %7399 = vmatprep.subr.bf16.mxu0 %v6906_v24  ;;  %v7050_v12 = vld [vmem:[#allocation2 + $0xcd8] sm:$0xff]  ;;  %v7047_v24 = vld [vmem:[#allocation2 + $0xcc0] sm:$0xff] }
 0x4dd   :  { %7271 = vmatpush1.bf16.msra.mxu1 %v6903_v25  ;;  %7400 = vmatpush1.bf16.msra.mxu0 %v6905_v56  ;;  %v7049_v25 = vld [vmem:[#allocation2 + $0xcd0] sm:$0xff]  ;;  %v7060_v56 = vld [vmem:[#allocation2 + $0xd28] sm:$0xff] }
 0x4de   :  { %7272 = vmatprep.subr.bf16.mxu1 %v6916_v32  ;;  %7401 = vmatprep.subr.bf16.mxu0 %v6918_v29  ;;  %v7059_v32 = vld [vmem:[#allocation2 + $0xd20] sm:$0xff]  ;;  %v7061_v29 = vld [vmem:[#allocation2 + $0xd30] sm:$0xff] }
 0x4e1   :  { %7273 = vmatpush1.bf16.msra.mxu1 %v6915_v30  ;;  %7402 = vmatpush1.bf16.msra.mxu0 %v6917_v33  ;;  %v7072_v30 = vld [vmem:[#allocation2 + $0xd88] sm:$0xff]  ;;  %v7074_v33 = vld [vmem:[#allocation2 + $0xd98] sm:$0xff] }
 0x4e2   :  { %7274 = vmatprep.subr.bf16.mxu1 %v6928_v38  ;;  %7403 = vmatprep.subr.bf16.mxu0 %v6930_v39  ;;  %v7073_v38 = vld [vmem:[#allocation2 + $0xd90] sm:$0xff]  ;;  %v7084_v39 = vld [vmem:[#allocation2 + $0xde8] sm:$0xff] }
 0x4e5   :  { %7275 = vmatpush1.bf16.msra.mxu1 %v6927_v34  ;;  %7404 = vmatpush1.bf16.msra.mxu0 %v6929_v59  ;;  %v7086_v34 = vld [vmem:[#allocation2 + $0xdf8] sm:$0xff]  ;;  %v7083_v59 = vld [vmem:[#allocation2 + $0xde0] sm:$0xff] }
 0x4e6   :  { %7276 = vmatprep.subr.bf16.mxu1 %v6940_v52  ;;  %7405 = vmatprep.subr.bf16.mxu0 %v6942_v41  ;;  %v7085_v52 = vld [vmem:[#allocation2 + $0xdf0] sm:$0xff]  ;;  %v7096_v41 = vld [vmem:[#allocation2 + $0xe48] sm:$0xff] }
 0x4e9   :  { %7277 = vmatpush1.bf16.msra.mxu1 %v6939_v42  ;;  %7406 = vmatpush1.bf16.msra.mxu0 %v6941_v43  ;;  %v7098_v42 = vld [vmem:[#allocation2 + $0xe58] sm:$0xff]  ;;  %v7095_v43 = vld [vmem:[#allocation2 + $0xe40] sm:$0xff] }
 0x4ea   :  { %7278 = vmatprep.subr.bf16.mxu1 %v6952_v63  ;;  %7407 = vmatprep.subr.bf16.mxu0 %v6954_v47  ;;  %v7097_v63 = vld [vmem:[#allocation2 + $0xe50] sm:$0xff]  ;;  %v7108_v47 = vld [vmem:[#allocation2 + $0xea8] sm:$0xff] }
 0x4ed   :  { %7279 = vmatpush1.bf16.msra.mxu1 %v6951_v54  ;;  %7408 = vmatpush1.bf16.msra.mxu0 %v6953_v7  ;;  %v7110_v54 = vld [vmem:[#allocation2 + $0xeb8] sm:$0xff]  ;;  %v7107_v7 = vld [vmem:[#allocation2 + $0xea0] sm:$0xff] }
 0x4ee   :  { %7280 = vmatprep.subr.bf16.mxu1 %v6964_v50  ;;  %7409 = vmatprep.subr.bf16.mxu0 %v6966_v48  ;;  %v7109_v50 = vld [vmem:[#allocation2 + $0xeb0] sm:$0xff]  ;;  %v7120_v48 = vld [vmem:[#allocation2 + $0xf08] sm:$0xff] }
 0x4f1   :  { %7281 = vmatpush1.bf16.msra.mxu1 %v6963_v49  ;;  %7410 = vmatpush1.bf16.msra.mxu0 %v6965_v23  ;;  %v7122_v49 = vld [vmem:[#allocation2 + $0xf18] sm:$0xff]  ;;  %v7119_v23 = vld [vmem:[#allocation2 + $0xf00] sm:$0xff] }
 0x4f2   :  { %7282 = vmatprep.subr.bf16.mxu1 %v6976_v31  ;;  %7411 = vmatprep.subr.bf16.mxu0 %v6978_v5  ;;  %v7121_v31 = vld [vmem:[#allocation2 + $0xf10] sm:$0xff]  ;;  %v7132_v5 = vld [vmem:[#allocation2 + $0xf68] sm:$0xff] }
 0x4f5   :  { %7283 = vmatpush1.bf16.msra.mxu1 %v6975_v10  ;;  %7412 = vmatpush1.bf16.msra.mxu0 %v6977_v28  ;;  %v7134_v10 = vld [vmem:[#allocation2 + $0xf78] sm:$0xff]  ;;  %v7131_v28 = vld [vmem:[#allocation2 + $0xf60] sm:$0xff] }
 0x4f6   :  { %7284 = vmatprep.subr.bf16.mxu1 %v6988_v53  ;;  %7413 = vmatprep.subr.bf16.mxu0 %v6990_v55  ;;  %v7133_v53 = vld [vmem:[#allocation2 + $0xf70] sm:$0xff]  ;;  %v7144_v55 = vld [vmem:[#allocation2 + $0xfc8] sm:$0xff] }
 0x4f9   :  { %7285 = vmatpush1.bf16.msra.mxu1 %v6987_v40  ;;  %7414 = vmatpush1.bf16.msra.mxu0 %v6989_v57  ;;  %v7146_v40 = vld [vmem:[#allocation2 + $0xfd8] sm:$0xff]  ;;  %v7143_v57 = vld [vmem:[#allocation2 + $0xfc0] sm:$0xff] }
 0x4fa   :  { %7286 = vmatprep.subr.bf16.mxu1 %v7000_v13  ;;  %7415 = vmatprep.subr.bf16.mxu0 %v7002_v4  ;;  %v7145_v13 = vld [vmem:[#allocation2 + $0xfd0] sm:$0xff]  ;;  %v7156_v4 = vld [vmem:[#allocation2 + $0x1028] sm:$0xff] }
 0x4fd   :  { %7287 = vmatpush1.bf16.msra.mxu1 %v6999_v19  ;;  %7416 = vmatpush1.bf16.msra.mxu0 %v7001_v58  ;;  %v7158_v19 = vld [vmem:[#allocation2 + $0x1038] sm:$0xff]  ;;  %v7155_v58 = vld [vmem:[#allocation2 + $0x1020] sm:$0xff] }
 0x4fe   :  { %7288 = vmatprep.subr.bf16.mxu1 %v7012_v60  ;;  %7417 = vmatprep.subr.bf16.mxu0 %v7014_v61  ;;  %v7157_v60 = vld [vmem:[#allocation2 + $0x1030] sm:$0xff]  ;;  %v7168_v61 = vld [vmem:[#allocation2 + $0x1088] sm:$0xff] }
 0x501   :  { %7289 = vmatpush1.bf16.msra.mxu1 %v7011_v17  ;;  %7418 = vmatpush1.bf16.msra.mxu0 %v7013_v62  ;;  %v7170_v17 = vld [vmem:[#allocation2 + $0x1098] sm:$0xff]  ;;  %v7167_v62 = vld [vmem:[#allocation2 + $0x1080] sm:$0xff] }
 0x502   :  { %7301 = vmatprep.subr.bf16.mxu1 %v7024_v0  ;;  %7430 = vmatprep.subr.bf16.mxu0 %v7026_v1  ;;  %v7169_v0 = vld [vmem:[#allocation2 + $0x1090] sm:$0xff]  ;;  %v7180_v1 = vld [vmem:[#allocation2 + $0x10e8] sm:$0xff] }
 0x504   :  { %7291 = vmatmul.mubr.bf16.vlgmr.msra.gmra.mrb[72].mxu1 %v10883_v44  ;;  %7420 = vmatmul.mubr.bf16.vlgmr.msra.gmra.mrb[76].mxu0 %v10883_v44  ;;  %v7062_v44 = vld [vmem:[#allocation2 + $0xd38] sm:$0xff] }
 0x505   :  { %7302 = vmatpush1.bf16.msra.mxu1 %v7023_v2  ;;  %7431 = vmatpush1.bf16.msra.mxu0 %v7025_v45  ;;  %v7182_v2 = vld [vmem:[#allocation2 + $0x10f8] sm:$0xff]  ;;  %v7179_v45 = vld [vmem:[#allocation2 + $0x10e0] sm:$0xff] }
 0x506   :  { %7303 = vmatprep.subr.bf16.mxu1 %v7036_v3  ;;  %7432 = vmatprep.subr.bf16.mxu0 %v7038_v11  ;;  %v7181_v3 = vld [vmem:[#allocation2 + $0x10f0] sm:$0xff]  ;;  %v7192_v11 = vld [vmem:[#allocation2 + $0x1148] sm:$0xff] }
 0x507   :  { %7333 = vmatprep.mubr.bf16.mxu1 %v10907_v21  ;;  %7462 = vmatprep.mubr.bf16.mxu0 %v10907_v21  ;;  %v7071_v21 = vld [vmem:[#allocation2 + $0xd80] sm:$0xff] }
 0x509   :  { %7304 = vmatpush1.bf16.msra.mxu1 %v7035_v15  ;;  %7433 = vmatpush1.bf16.msra.mxu0 %v7037_v18  ;;  %v7194_v15 = vld [vmem:[#allocation2 + $0x1158] sm:$0xff]  ;;  %v7191_v18 = vld [vmem:[#allocation2 + $0x1140] sm:$0xff] }
 0x50a   :  { %7305 = vmatprep.subr.bf16.mxu1 %v7048_v22  ;;  %7434 = vmatprep.subr.bf16.mxu0 %v7050_v12  ;;  %v7193_v22 = vld [vmem:[#allocation2 + $0x1150] sm:$0xff]  ;;  %v7204_v12 = vld [vmem:[#allocation2 + $0x11a8] sm:$0xff] }
 0x50d   :  { %7306 = vmatpush1.bf16.msra.mxu1 %v7047_v24  ;;  %7435 = vmatpush1.bf16.msra.mxu0 %v7049_v25  ;;  %v7206_v24 = vld [vmem:[#allocation2 + $0x11b8] sm:$0xff]  ;;  %v7203_v25 = vld [vmem:[#allocation2 + $0x11a0] sm:$0xff] }
 0x50e   :  { %7307 = vmatprep.subr.bf16.mxu1 %v7060_v56  ;;  %7436 = vmatprep.subr.bf16.mxu0 %v7062_v44  ;;  %v7205_v56 = vld [vmem:[#allocation2 + $0x11b0] sm:$0xff]  ;;  %v6644_v44 = vld [vmem:[#allocation2 + $0x28] sm:$0xff] }
 0x511   :  { %7308 = vmatpush1.bf16.msra.mxu1 %v7059_v32  ;;  %7437 = vmatpush1.bf16.msra.mxu0 %v7061_v29  ;;  %v6646_v32 = vld [vmem:[#allocation2 + $0x38] sm:$0xff]  ;;  %v6643_v29 = vld [vmem:[#allocation2 + $0x20] sm:$0xff] }
 0x512   :  { %7309 = vmatprep.subr.bf16.mxu1 %v7072_v30  ;;  %7438 = vmatprep.subr.bf16.mxu0 %v7074_v33  ;;  %v6645_v30 = vld [vmem:[#allocation2 + $0x30] sm:$0xff]  ;;  %v6656_v33 = vld [vmem:[#allocation2 + $0x88] sm:$0xff] }
 0x515   :  { %7310 = vmatpush1.bf16.msra.mxu1 %v7071_v21  ;;  %7439 = vmatpush1.bf16.msra.mxu0 %v7073_v38  ;;  %v6658_v21 = vld [vmem:[#allocation2 + $0x98] sm:$0xff]  ;;  %v6655_v38 = vld [vmem:[#allocation2 + $0x80] sm:$0xff] }
 0x516   :  { %7311 = vmatprep.subr.bf16.mxu1 %v7084_v39  ;;  %7440 = vmatprep.subr.bf16.mxu0 %v7086_v34  ;;  %v6657_v39 = vld [vmem:[#allocation2 + $0x90] sm:$0xff]  ;;  %v6668_v34 = vld [vmem:[#allocation2 + $0xe8] sm:$0xff] }
 0x519   :  { %7312 = vmatpush1.bf16.msra.mxu1 %v7083_v59  ;;  %7441 = vmatpush1.bf16.msra.mxu0 %v7085_v52  ;;  %v6670_v59 = vld [vmem:[#allocation2 + $0xf8] sm:$0xff]  ;;  %v6667_v52 = vld [vmem:[#allocation2 + $0xe0] sm:$0xff] }
 0x51a   :  { %7313 = vmatprep.subr.bf16.mxu1 %v7096_v41  ;;  %7442 = vmatprep.subr.bf16.mxu0 %v7098_v42  ;;  %v6669_v41 = vld [vmem:[#allocation2 + $0xf0] sm:$0xff]  ;;  %v6680_v42 = vld [vmem:[#allocation2 + $0x148] sm:$0xff] }
 0x51d   :  { %7314 = vmatpush1.bf16.msra.mxu1 %v7095_v43  ;;  %7443 = vmatpush1.bf16.msra.mxu0 %v7097_v63  ;;  %v6679_v43 = vld [vmem:[#allocation2 + $0x140] sm:$0xff]  ;;  %v6681_v63 = vld [vmem:[#allocation2 + $0x150] sm:$0xff] }
 0x51e   :  { %7315 = vmatprep.subr.bf16.mxu1 %v7108_v47  ;;  %7444 = vmatprep.subr.bf16.mxu0 %v7110_v54  ;;  %v6692_v47 = vld [vmem:[#allocation2 + $0x1a8] sm:$0xff]  ;;  %v6694_v54 = vld [vmem:[#allocation2 + $0x1b8] sm:$0xff] }
 0x521   :  { %7316 = vmatpush1.bf16.msra.mxu1 %v7107_v7  ;;  %7445 = vmatpush1.bf16.msra.mxu0 %v7109_v50  ;;  %v6693_v7 = vld [vmem:[#allocation2 + $0x1b0] sm:$0xff]  ;;  %v6704_v50 = vld [vmem:[#allocation2 + $0x208] sm:$0xff] }
 0x522   :  { %7317 = vmatprep.subr.bf16.mxu1 %v7120_v48  ;;  %7446 = vmatprep.subr.bf16.mxu0 %v7122_v49  ;;  %v6706_v48 = vld [vmem:[#allocation2 + $0x218] sm:$0xff]  ;;  %v6703_v49 = vld [vmem:[#allocation2 + $0x200] sm:$0xff] }
 0x525   :  { %7318 = vmatpush1.bf16.msra.mxu1 %v7119_v23  ;;  %7447 = vmatpush1.bf16.msra.mxu0 %v7121_v31  ;;  %v6705_v23 = vld [vmem:[#allocation2 + $0x210] sm:$0xff]  ;;  %v6716_v31 = vld [vmem:[#allocation2 + $0x268] sm:$0xff] }
 0x526   :  { %7319 = vmatprep.subr.bf16.mxu1 %v7132_v5  ;;  %7448 = vmatprep.subr.bf16.mxu0 %v7134_v10  ;;  %v6718_v5 = vld [vmem:[#allocation2 + $0x278] sm:$0xff]  ;;  %v6715_v10 = vld [vmem:[#allocation2 + $0x260] sm:$0xff] }
 0x529   :  { %7320 = vmatpush1.bf16.msra.mxu1 %v7131_v28  ;;  %7449 = vmatpush1.bf16.msra.mxu0 %v7133_v53  ;;  %v6717_v28 = vld [vmem:[#allocation2 + $0x270] sm:$0xff]  ;;  %v6728_v53 = vld [vmem:[#allocation2 + $0x2c8] sm:$0xff] }
 0x52a   :  { %7321 = vmatprep.subr.bf16.mxu1 %v7144_v55  ;;  %7450 = vmatprep.subr.bf16.mxu0 %v7146_v40  ;;  %v6730_v55 = vld [vmem:[#allocation2 + $0x2d8] sm:$0xff]  ;;  %v6727_v40 = vld [vmem:[#allocation2 + $0x2c0] sm:$0xff] }
 0x52d   :  { %7322 = vmatpush1.bf16.msra.mxu1 %v7143_v57  ;;  %7451 = vmatpush1.bf16.msra.mxu0 %v7145_v13  ;;  %v6729_v57 = vld [vmem:[#allocation2 + $0x2d0] sm:$0xff]  ;;  %v6740_v13 = vld [vmem:[#allocation2 + $0x328] sm:$0xff] }
 0x52e   :  { %7323 = vmatprep.subr.bf16.mxu1 %v7156_v4  ;;  %7452 = vmatprep.subr.bf16.mxu0 %v7158_v19  ;;  %v6742_v4 = vld [vmem:[#allocation2 + $0x338] sm:$0xff]  ;;  %v6739_v19 = vld [vmem:[#allocation2 + $0x320] sm:$0xff] }
 0x531   :  { %7324 = vmatpush1.bf16.msra.mxu1 %v7155_v58  ;;  %7453 = vmatpush1.bf16.msra.mxu0 %v7157_v60  ;;  %v6741_v58 = vld [vmem:[#allocation2 + $0x330] sm:$0xff]  ;;  %v6752_v60 = vld [vmem:[#allocation2 + $0x388] sm:$0xff] }
 0x532   :  { %7325 = vmatprep.subr.bf16.mxu1 %v7168_v61  ;;  %7454 = vmatprep.subr.bf16.mxu0 %v7170_v17  ;;  %v6754_v61 = vld [vmem:[#allocation2 + $0x398] sm:$0xff]  ;;  %v6751_v17 = vld [vmem:[#allocation2 + $0x380] sm:$0xff] }
 0x535   :  { %7326 = vmatpush1.bf16.msra.mxu1 %v7167_v62  ;;  %7455 = vmatpush1.bf16.msra.mxu0 %v7169_v0  ;;  %v6753_v62 = vld [vmem:[#allocation2 + $0x390] sm:$0xff]  ;;  %v6764_v0 = vld [vmem:[#allocation2 + $0x3e8] sm:$0xff] }
 0x536   :  { %7327 = vmatprep.subr.bf16.mxu1 %v7180_v1  ;;  %7456 = vmatprep.subr.bf16.mxu0 %v7182_v2  ;;  %v6766_v1 = vld [vmem:[#allocation2 + $0x3f8] sm:$0xff]  ;;  %v6763_v2 = vld [vmem:[#allocation2 + $0x3e0] sm:$0xff] }
 0x539   :  { %7328 = vmatpush1.bf16.msra.mxu1 %v7179_v45  ;;  %7457 = vmatpush1.bf16.msra.mxu0 %v7181_v3  ;;  %v6765_v45 = vld [vmem:[#allocation2 + $0x3f0] sm:$0xff]  ;;  %v6776_v3 = vld [vmem:[#allocation2 + $0x448] sm:$0xff] }
 0x53a   :  { %7329 = vmatprep.subr.bf16.mxu1 %v7192_v11  ;;  %7458 = vmatprep.subr.bf16.mxu0 %v7194_v15  ;;  %v6778_v11 = vld [vmem:[#allocation2 + $0x458] sm:$0xff]  ;;  %v6775_v15 = vld [vmem:[#allocation2 + $0x440] sm:$0xff] }
 0x53d   :  { %7330 = vmatpush1.bf16.msra.mxu1 %v7191_v18  ;;  %7459 = vmatpush1.bf16.msra.mxu0 %v7193_v22  ;;  %v6777_v18 = vld [vmem:[#allocation2 + $0x450] sm:$0xff]  ;;  %v6788_v22 = vld [vmem:[#allocation2 + $0x4a8] sm:$0xff] }
 0x53e   :  { %7331 = vmatprep.subr.bf16.mxu1 %v7204_v12  ;;  %7460 = vmatprep.subr.bf16.mxu0 %v7206_v24  ;;  %v6790_v12 = vld [vmem:[#allocation2 + $0x4b8] sm:$0xff]  ;;  %v6787_v24 = vld [vmem:[#allocation2 + $0x4a0] sm:$0xff] }
 0x541   :  { %7332 = vmatpush1.bf16.msra.mxu1 %v7203_v25  ;;  %7461 = vmatpush1.bf16.msra.mxu0 %v7205_v56  ;;  %v6789_v25 = vld [vmem:[#allocation2 + $0x4b0] sm:$0xff]  ;;  %v6800_v56 = vld [vmem:[#allocation2 + $0x508] sm:$0xff] }
 0x542   :  { %7473 = vmatprep.subr.bf16.mxu1 %v6644_v44  ;;  %7596 = vmatprep.subr.bf16.mxu0 %v6646_v32  ;;  %v6802_v44 = vld [vmem:[#allocation2 + $0x518] sm:$0xff]  ;;  %v6799_v32 = vld [vmem:[#allocation2 + $0x500] sm:$0xff] }
 0x544   :  { %7334 = vmatmul.mubr.bf16.vlgmr.msra.gmra.mrb[72].mxu1 %v10905_v20  ;;  %7463 = vmatmul.mubr.bf16.vlgmr.msra.gmra.mrb[76].mxu0 %v10905_v20  ;;  %v6682_v20 = vld [vmem:[#allocation2 + $0x158] sm:$0xff] }
 0x545   :  { %7474 = vmatpush1.bf16.msra.mxu1 %v6643_v29  ;;  %7597 = vmatpush1.bf16.msra.mxu0 %v6645_v30  ;;  %v6801_v29 = vld [vmem:[#allocation2 + $0x510] sm:$0xff]  ;;  %v6812_v30 = vld [vmem:[#allocation2 + $0x568] sm:$0xff] }
 0x546   :  { %7475 = vmatprep.subr.bf16.mxu1 %v6656_v33  ;;  %7598 = vmatprep.subr.bf16.mxu0 %v6658_v21  ;;  %v6814_v33 = vld [vmem:[#allocation2 + $0x578] sm:$0xff]  ;;  %v6811_v21 = vld [vmem:[#allocation2 + $0x560] sm:$0xff] }
 0x547   :  { %7505 = vmatprep.mubr.bf16.mxu1 %v10947_v51  ;;  %7628 = vmatprep.mubr.bf16.mxu0 %v10947_v51  ;;  %v6691_v51 = vld [vmem:[#allocation2 + $0x1a0] sm:$0xff] }
 0x549   :  { %7476 = vmatpush1.bf16.msra.mxu1 %v6655_v38  ;;  %7599 = vmatpush1.bf16.msra.mxu0 %v6657_v39  ;;  %v6813_v38 = vld [vmem:[#allocation2 + $0x570] sm:$0xff]  ;;  %v6824_v39 = vld [vmem:[#allocation2 + $0x5c8] sm:$0xff] }
 0x54a   :  { %7477 = vmatprep.subr.bf16.mxu1 %v6668_v34  ;;  %7600 = vmatprep.subr.bf16.mxu0 %v6670_v59  ;;  %v6826_v34 = vld [vmem:[#allocation2 + $0x5d8] sm:$0xff]  ;;  %v6823_v59 = vld [vmem:[#allocation2 + $0x5c0] sm:$0xff] }
 0x54d   :  { %7478 = vmatpush1.bf16.msra.mxu1 %v6667_v52  ;;  %7601 = vmatpush1.bf16.msra.mxu0 %v6669_v41  ;;  %v6825_v52 = vld [vmem:[#allocation2 + $0x5d0] sm:$0xff]  ;;  %v6836_v41 = vld [vmem:[#allocation2 + $0x628] sm:$0xff] }
 0x54e   :  { %7479 = vmatprep.subr.bf16.mxu1 %v6680_v42  ;;  %7602 = vmatprep.subr.bf16.mxu0 %v6682_v20  ;;  %v6838_v42 = vld [vmem:[#allocation2 + $0x638] sm:$0xff]  ;;  %v6835_v20 = vld [vmem:[#allocation2 + $0x620] sm:$0xff] }
 0x551   :  { %7480 = vmatpush1.bf16.msra.mxu1 %v6679_v43  ;;  %7603 = vmatpush1.bf16.msra.mxu0 %v6681_v63  ;;  %v6837_v43 = vld [vmem:[#allocation2 + $0x630] sm:$0xff]  ;;  %v6848_v63 = vld [vmem:[#allocation2 + $0x688] sm:$0xff] }
 0x552   :  { %7481 = vmatprep.subr.bf16.mxu1 %v6692_v47  ;;  %7604 = vmatprep.subr.bf16.mxu0 %v6694_v54  ;;  %v6850_v47 = vld [vmem:[#allocation2 + $0x698] sm:$0xff]  ;;  %v6847_v54 = vld [vmem:[#allocation2 + $0x680] sm:$0xff] }
 0x555   :  { %7482 = vmatpush1.bf16.msra.mxu1 %v6691_v51  ;;  %7605 = vmatpush1.bf16.msra.mxu0 %v6693_v7  ;;  %v6849_v51 = vld [vmem:[#allocation2 + $0x690] sm:$0xff]  ;;  %v6860_v7 = vld [vmem:[#allocation2 + $0x6e8] sm:$0xff] }
 0x556   :  { %7483 = vmatprep.subr.bf16.mxu1 %v6704_v50  ;;  %7606 = vmatprep.subr.bf16.mxu0 %v6706_v48  ;;  %v6862_v50 = vld [vmem:[#allocation2 + $0x6f8] sm:$0xff]  ;;  %v6859_v48 = vld [vmem:[#allocation2 + $0x6e0] sm:$0xff] }
 0x559   :  { %7484 = vmatpush1.bf16.msra.mxu1 %v6703_v49  ;;  %7607 = vmatpush1.bf16.msra.mxu0 %v6705_v23  ;;  %v6861_v49 = vld [vmem:[#allocation2 + $0x6f0] sm:$0xff]  ;;  %v6872_v23 = vld [vmem:[#allocation2 + $0x748] sm:$0xff] }
 0x55a   :  { %7485 = vmatprep.subr.bf16.mxu1 %v6716_v31  ;;  %7608 = vmatprep.subr.bf16.mxu0 %v6718_v5  ;;  %v6871_v31 = vld [vmem:[#allocation2 + $0x740] sm:$0xff]  ;;  %v6873_v5 = vld [vmem:[#allocation2 + $0x750] sm:$0xff] }
 0x55d   :  { %7486 = vmatpush1.bf16.msra.mxu1 %v6715_v10  ;;  %7609 = vmatpush1.bf16.msra.mxu0 %v6717_v28  ;;  %v6884_v10 = vld [vmem:[#allocation2 + $0x7a8] sm:$0xff]  ;;  %v6886_v28 = vld [vmem:[#allocation2 + $0x7b8] sm:$0xff] }
 0x55e   :  { %7487 = vmatprep.subr.bf16.mxu1 %v6728_v53  ;;  %7610 = vmatprep.subr.bf16.mxu0 %v6730_v55  ;;  %v6885_v53 = vld [vmem:[#allocation2 + $0x7b0] sm:$0xff]  ;;  %v6896_v55 = vld [vmem:[#allocation2 + $0x808] sm:$0xff] }
 0x561   :  { %7488 = vmatpush1.bf16.msra.mxu1 %v6727_v40  ;;  %7611 = vmatpush1.bf16.msra.mxu0 %v6729_v57  ;;  %v6898_v40 = vld [vmem:[#allocation2 + $0x818] sm:$0xff]  ;;  %v6895_v57 = vld [vmem:[#allocation2 + $0x800] sm:$0xff] }
 0x562   :  { %7489 = vmatprep.subr.bf16.mxu1 %v6740_v13  ;;  %7612 = vmatprep.subr.bf16.mxu0 %v6742_v4  ;;  %v6897_v13 = vld [vmem:[#allocation2 + $0x810] sm:$0xff]  ;;  %v6908_v4 = vld [vmem:[#allocation2 + $0x868] sm:$0xff] }
 0x565   :  { %7490 = vmatpush1.bf16.msra.mxu1 %v6739_v19  ;;  %7613 = vmatpush1.bf16.msra.mxu0 %v6741_v58  ;;  %v6910_v19 = vld [vmem:[#allocation2 + $0x878] sm:$0xff]  ;;  %v6907_v58 = vld [vmem:[#allocation2 + $0x860] sm:$0xff] }
 0x566   :  { %7491 = vmatprep.subr.bf16.mxu1 %v6752_v60  ;;  %7614 = vmatprep.subr.bf16.mxu0 %v6754_v61  ;;  %v6909_v60 = vld [vmem:[#allocation2 + $0x870] sm:$0xff]  ;;  %v6920_v61 = vld [vmem:[#allocation2 + $0x8c8] sm:$0xff] }
 0x569   :  { %7492 = vmatpush1.bf16.msra.mxu1 %v6751_v17  ;;  %7615 = vmatpush1.bf16.msra.mxu0 %v6753_v62  ;;  %v6922_v17 = vld [vmem:[#allocation2 + $0x8d8] sm:$0xff]  ;;  %v6919_v62 = vld [vmem:[#allocation2 + $0x8c0] sm:$0xff] }
 0x56a   :  { %7493 = vmatprep.subr.bf16.mxu1 %v6764_v0  ;;  %7616 = vmatprep.subr.bf16.mxu0 %v6766_v1  ;;  %v6921_v0 = vld [vmem:[#allocation2 + $0x8d0] sm:$0xff]  ;;  %v6932_v1 = vld [vmem:[#allocation2 + $0x928] sm:$0xff] }
 0x56d   :  { %7494 = vmatpush1.bf16.msra.mxu1 %v6763_v2  ;;  %7617 = vmatpush1.bf16.msra.mxu0 %v6765_v45  ;;  %v6934_v2 = vld [vmem:[#allocation2 + $0x938] sm:$0xff]  ;;  %v6931_v45 = vld [vmem:[#allocation2 + $0x920] sm:$0xff] }
 0x56e   :  { %7495 = vmatprep.subr.bf16.mxu1 %v6776_v3  ;;  %7618 = vmatprep.subr.bf16.mxu0 %v6778_v11  ;;  %v6933_v3 = vld [vmem:[#allocation2 + $0x930] sm:$0xff]  ;;  %v6944_v11 = vld [vmem:[#allocation2 + $0x988] sm:$0xff] }
 0x571   :  { %7496 = vmatpush1.bf16.msra.mxu1 %v6775_v15  ;;  %7619 = vmatpush1.bf16.msra.mxu0 %v6777_v18  ;;  %v6946_v15 = vld [vmem:[#allocation2 + $0x998] sm:$0xff]  ;;  %v6943_v18 = vld [vmem:[#allocation2 + $0x980] sm:$0xff] }
 0x572   :  { %7497 = vmatprep.subr.bf16.mxu1 %v6788_v22  ;;  %7620 = vmatprep.subr.bf16.mxu0 %v6790_v12  ;;  %v6945_v22 = vld [vmem:[#allocation2 + $0x990] sm:$0xff]  ;;  %v6956_v12 = vld [vmem:[#allocation2 + $0x9e8] sm:$0xff] }
 0x575   :  { %7498 = vmatpush1.bf16.msra.mxu1 %v6787_v24  ;;  %7621 = vmatpush1.bf16.msra.mxu0 %v6789_v25  ;;  %v6958_v24 = vld [vmem:[#allocation2 + $0x9f8] sm:$0xff]  ;;  %v6955_v25 = vld [vmem:[#allocation2 + $0x9e0] sm:$0xff] }
 0x576   :  { %7499 = vmatprep.subr.bf16.mxu1 %v6800_v56  ;;  %7622 = vmatprep.subr.bf16.mxu0 %v6802_v44  ;;  %v6957_v56 = vld [vmem:[#allocation2 + $0x9f0] sm:$0xff]  ;;  %v6968_v44 = vld [vmem:[#allocation2 + $0xa48] sm:$0xff] }
 0x579   :  { %7500 = vmatpush1.bf16.msra.mxu1 %v6799_v32  ;;  %7623 = vmatpush1.bf16.msra.mxu0 %v6801_v29  ;;  %v6970_v32 = vld [vmem:[#allocation2 + $0xa58] sm:$0xff]  ;;  %v6967_v29 = vld [vmem:[#allocation2 + $0xa40] sm:$0xff] }
 0x57a   :  { %7501 = vmatprep.subr.bf16.mxu1 %v6812_v30  ;;  %7624 = vmatprep.subr.bf16.mxu0 %v6814_v33  ;;  %v6969_v30 = vld [vmem:[#allocation2 + $0xa50] sm:$0xff]  ;;  %v6980_v33 = vld [vmem:[#allocation2 + $0xaa8] sm:$0xff] }
 0x57d   :  { %7502 = vmatpush1.bf16.msra.mxu1 %v6811_v21  ;;  %7625 = vmatpush1.bf16.msra.mxu0 %v6813_v38  ;;  %v6982_v21 = vld [vmem:[#allocation2 + $0xab8] sm:$0xff]  ;;  %v6979_v38 = vld [vmem:[#allocation2 + $0xaa0] sm:$0xff] }
 0x57e   :  { %7503 = vmatprep.subr.bf16.mxu1 %v6824_v39  ;;  %7626 = vmatprep.subr.bf16.mxu0 %v6826_v34  ;;  %v6981_v39 = vld [vmem:[#allocation2 + $0xab0] sm:$0xff]  ;;  %v6992_v34 = vld [vmem:[#allocation2 + $0xb08] sm:$0xff] }
 0x581   :  { %7504 = vmatpush1.bf16.msra.mxu1 %v6823_v59  ;;  %7627 = vmatpush1.bf16.msra.mxu0 %v6825_v52  ;;  %v6994_v59 = vld [vmem:[#allocation2 + $0xb18] sm:$0xff]  ;;  %v6991_v52 = vld [vmem:[#allocation2 + $0xb00] sm:$0xff] }
 0x582   :  { %7514 = vmatprep.subr.bf16.mxu1 %v6836_v41  ;;  %7637 = vmatprep.subr.bf16.mxu0 %v6838_v42  ;;  %v6993_v41 = vld [vmem:[#allocation2 + $0xb10] sm:$0xff]  ;;  %v7004_v42 = vld [vmem:[#allocation2 + $0xb68] sm:$0xff] }
 0x584   :  { %7506 = vmatmul.mubr.bf16.vlgmr.msra.gmra.mrb[76].mxu1 %v10945_v46  ;;  %7629 = vmatmul.mubr.bf16.vlgmr.msra.gmra.mrb[80].mxu0 %v10945_v46  ;;  %v6874_v46 = vld [vmem:[#allocation2 + $0x758] sm:$0xff] }
 0x585   :  { %7515 = vmatpush1.bf16.msra.mxu1 %v6835_v20  ;;  %7638 = vmatpush1.bf16.msra.mxu0 %v6837_v43  ;;  %v7006_v20 = vld [vmem:[#allocation2 + $0xb78] sm:$0xff]  ;;  %v7003_v43 = vld [vmem:[#allocation2 + $0xb60] sm:$0xff] }
 0x586   :  { %7516 = vmatprep.subr.bf16.mxu1 %v6848_v63  ;;  %7639 = vmatprep.subr.bf16.mxu0 %v6850_v47  ;;  %v7005_v63 = vld [vmem:[#allocation2 + $0xb70] sm:$0xff]  ;;  %v7016_v47 = vld [vmem:[#allocation2 + $0xbc8] sm:$0xff] }
 0x587   :  { %7546 = vmatprep.mubr.bf16.mxu1 %v10959_v35  ;;  %7669 = vmatprep.mubr.bf16.mxu0 %v10959_v35  ;;  %v6883_v35 = vld [vmem:[#allocation2 + $0x7a0] sm:$0xff] }
 0x589   :  { %7517 = vmatpush1.bf16.msra.mxu1 %v6847_v54  ;;  %7640 = vmatpush1.bf16.msra.mxu0 %v6849_v51  ;;  %v7018_v54 = vld [vmem:[#allocation2 + $0xbd8] sm:$0xff]  ;;  %v7015_v51 = vld [vmem:[#allocation2 + $0xbc0] sm:$0xff] }
 0x58a   :  { %7518 = vmatprep.subr.bf16.mxu1 %v6860_v7  ;;  %7641 = vmatprep.subr.bf16.mxu0 %v6862_v50  ;;  %v7017_v7 = vld [vmem:[#allocation2 + $0xbd0] sm:$0xff]  ;;  %v7028_v50 = vld [vmem:[#allocation2 + $0xc28] sm:$0xff] }
 0x58d   :  { %7519 = vmatpush1.bf16.msra.mxu1 %v6859_v48  ;;  %7642 = vmatpush1.bf16.msra.mxu0 %v6861_v49  ;;  %v7030_v48 = vld [vmem:[#allocation2 + $0xc38] sm:$0xff]  ;;  %v7027_v49 = vld [vmem:[#allocation2 + $0xc20] sm:$0xff] }
 0x58e   :  { %7520 = vmatprep.subr.bf16.mxu1 %v6872_v23  ;;  %7643 = vmatprep.subr.bf16.mxu0 %v6874_v46  ;;  %v7029_v23 = vld [vmem:[#allocation2 + $0xc30] sm:$0xff]  ;;  %v7040_v46 = vld [vmem:[#allocation2 + $0xc88] sm:$0xff] }
 0x591   :  { %7521 = vmatpush1.bf16.msra.mxu1 %v6871_v31  ;;  %7644 = vmatpush1.bf16.msra.mxu0 %v6873_v5  ;;  %v7042_v31 = vld [vmem:[#allocation2 + $0xc98] sm:$0xff]  ;;  %v7039_v5 = vld [vmem:[#allocation2 + $0xc80] sm:$0xff] }
 0x592   :  { %7522 = vmatprep.subr.bf16.mxu1 %v6884_v10  ;;  %7645 = vmatprep.subr.bf16.mxu0 %v6886_v28  ;;  %v7041_v10 = vld [vmem:[#allocation2 + $0xc90] sm:$0xff]  ;;  %v7052_v28 = vld [vmem:[#allocation2 + $0xce8] sm:$0xff] }
 0x595   :  { %7523 = vmatpush1.bf16.msra.mxu1 %v6883_v35  ;;  %7646 = vmatpush1.bf16.msra.mxu0 %v6885_v53  ;;  %v7054_v35 = vld [vmem:[#allocation2 + $0xcf8] sm:$0xff]  ;;  %v7051_v53 = vld [vmem:[#allocation2 + $0xce0] sm:$0xff] }
 0x596   :  { %7524 = vmatprep.subr.bf16.mxu1 %v6896_v55  ;;  %7647 = vmatprep.subr.bf16.mxu0 %v6898_v40  ;;  %v7053_v55 = vld [vmem:[#allocation2 + $0xcf0] sm:$0xff]  ;;  %v7064_v40 = vld [vmem:[#allocation2 + $0xd48] sm:$0xff] }
 0x599   :  { %7525 = vmatpush1.bf16.msra.mxu1 %v6895_v57  ;;  %7648 = vmatpush1.bf16.msra.mxu0 %v6897_v13  ;;  %v7063_v57 = vld [vmem:[#allocation2 + $0xd40] sm:$0xff]  ;;  %v7065_v13 = vld [vmem:[#allocation2 + $0xd50] sm:$0xff] }
 0x59a   :  { %7526 = vmatprep.subr.bf16.mxu1 %v6908_v4  ;;  %7649 = vmatprep.subr.bf16.mxu0 %v6910_v19  ;;  %v7076_v4 = vld [vmem:[#allocation2 + $0xda8] sm:$0xff]  ;;  %v7078_v19 = vld [vmem:[#allocation2 + $0xdb8] sm:$0xff] }
 0x59d   :  { %7527 = vmatpush1.bf16.msra.mxu1 %v6907_v58  ;;  %7650 = vmatpush1.bf16.msra.mxu0 %v6909_v60  ;;  %v7077_v58 = vld [vmem:[#allocation2 + $0xdb0] sm:$0xff]  ;;  %v7088_v60 = vld [vmem:[#allocation2 + $0xe08] sm:$0xff] }
 0x59e   :  { %7528 = vmatprep.subr.bf16.mxu1 %v6920_v61  ;;  %7651 = vmatprep.subr.bf16.mxu0 %v6922_v17  ;;  %v7090_v61 = vld [vmem:[#allocation2 + $0xe18] sm:$0xff]  ;;  %v7087_v17 = vld [vmem:[#allocation2 + $0xe00] sm:$0xff] }
 0x5a1   :  { %7529 = vmatpush1.bf16.msra.mxu1 %v6919_v62  ;;  %7652 = vmatpush1.bf16.msra.mxu0 %v6921_v0  ;;  %v7089_v62 = vld [vmem:[#allocation2 + $0xe10] sm:$0xff]  ;;  %v7100_v0 = vld [vmem:[#allocation2 + $0xe68] sm:$0xff] }
 0x5a2   :  { %7530 = vmatprep.subr.bf16.mxu1 %v6932_v1  ;;  %7653 = vmatprep.subr.bf16.mxu0 %v6934_v2  ;;  %v7102_v1 = vld [vmem:[#allocation2 + $0xe78] sm:$0xff]  ;;  %v7099_v2 = vld [vmem:[#allocation2 + $0xe60] sm:$0xff] }
 0x5a5   :  { %7531 = vmatpush1.bf16.msra.mxu1 %v6931_v45  ;;  %7654 = vmatpush1.bf16.msra.mxu0 %v6933_v3  ;;  %v7101_v45 = vld [vmem:[#allocation2 + $0xe70] sm:$0xff]  ;;  %v7112_v3 = vld [vmem:[#allocation2 + $0xec8] sm:$0xff] }
 0x5a6   :  { %7532 = vmatprep.subr.bf16.mxu1 %v6944_v11  ;;  %7655 = vmatprep.subr.bf16.mxu0 %v6946_v15  ;;  %v7114_v11 = vld [vmem:[#allocation2 + $0xed8] sm:$0xff]  ;;  %v7111_v15 = vld [vmem:[#allocation2 + $0xec0] sm:$0xff] }
 0x5a9   :  { %7533 = vmatpush1.bf16.msra.mxu1 %v6943_v18  ;;  %7656 = vmatpush1.bf16.msra.mxu0 %v6945_v22  ;;  %v7113_v18 = vld [vmem:[#allocation2 + $0xed0] sm:$0xff]  ;;  %v7124_v22 = vld [vmem:[#allocation2 + $0xf28] sm:$0xff] }
 0x5aa   :  { %7534 = vmatprep.subr.bf16.mxu1 %v6956_v12  ;;  %7657 = vmatprep.subr.bf16.mxu0 %v6958_v24  ;;  %v7126_v12 = vld [vmem:[#allocation2 + $0xf38] sm:$0xff]  ;;  %v7123_v24 = vld [vmem:[#allocation2 + $0xf20] sm:$0xff] }
 0x5ad   :  { %7535 = vmatpush1.bf16.msra.mxu1 %v6955_v25  ;;  %7658 = vmatpush1.bf16.msra.mxu0 %v6957_v56  ;;  %v7125_v25 = vld [vmem:[#allocation2 + $0xf30] sm:$0xff]  ;;  %v7136_v56 = vld [vmem:[#allocation2 + $0xf88] sm:$0xff] }
 0x5ae   :  { %7536 = vmatprep.subr.bf16.mxu1 %v6968_v44  ;;  %7659 = vmatprep.subr.bf16.mxu0 %v6970_v32  ;;  %v7138_v44 = vld [vmem:[#allocation2 + $0xf98] sm:$0xff]  ;;  %v7135_v32 = vld [vmem:[#allocation2 + $0xf80] sm:$0xff] }
 0x5b1   :  { %7537 = vmatpush1.bf16.msra.mxu1 %v6967_v29  ;;  %7660 = vmatpush1.bf16.msra.mxu0 %v6969_v30  ;;  %v7137_v29 = vld [vmem:[#allocation2 + $0xf90] sm:$0xff]  ;;  %v7148_v30 = vld [vmem:[#allocation2 + $0xfe8] sm:$0xff] }
 0x5b2   :  { %7538 = vmatprep.subr.bf16.mxu1 %v6980_v33  ;;  %7661 = vmatprep.subr.bf16.mxu0 %v6982_v21  ;;  %v7150_v33 = vld [vmem:[#allocation2 + $0xff8] sm:$0xff]  ;;  %v7147_v21 = vld [vmem:[#allocation2 + $0xfe0] sm:$0xff] }
 0x5b5   :  { %7539 = vmatpush1.bf16.msra.mxu1 %v6979_v38  ;;  %7662 = vmatpush1.bf16.msra.mxu0 %v6981_v39  ;;  %v7149_v38 = vld [vmem:[#allocation2 + $0xff0] sm:$0xff]  ;;  %v7160_v39 = vld [vmem:[#allocation2 + $0x1048] sm:$0xff] }
 0x5b6   :  { %7540 = vmatprep.subr.bf16.mxu1 %v6992_v34  ;;  %7663 = vmatprep.subr.bf16.mxu0 %v6994_v59  ;;  %v7162_v34 = vld [vmem:[#allocation2 + $0x1058] sm:$0xff]  ;;  %v7159_v59 = vld [vmem:[#allocation2 + $0x1040] sm:$0xff] }
 0x5b9   :  { %7541 = vmatpush1.bf16.msra.mxu1 %v6991_v52  ;;  %7664 = vmatpush1.bf16.msra.mxu0 %v6993_v41  ;;  %v7161_v52 = vld [vmem:[#allocation2 + $0x1050] sm:$0xff]  ;;  %v7172_v41 = vld [vmem:[#allocation2 + $0x10a8] sm:$0xff] }
 0x5ba   :  { %7542 = vmatprep.subr.bf16.mxu1 %v7004_v42  ;;  %7665 = vmatprep.subr.bf16.mxu0 %v7006_v20  ;;  %v7174_v42 = vld [vmem:[#allocation2 + $0x10b8] sm:$0xff]  ;;  %v7171_v20 = vld [vmem:[#allocation2 + $0x10a0] sm:$0xff] }
 0x5bd   :  { %7543 = vmatpush1.bf16.msra.mxu1 %v7003_v43  ;;  %7666 = vmatpush1.bf16.msra.mxu0 %v7005_v63  ;;  %v7173_v43 = vld [vmem:[#allocation2 + $0x10b0] sm:$0xff]  ;;  %v7184_v63 = vld [vmem:[#allocation2 + $0x1108] sm:$0xff] }
 0x5be   :  { %7544 = vmatprep.subr.bf16.mxu1 %v7016_v47  ;;  %7667 = vmatprep.subr.bf16.mxu0 %v7018_v54  ;;  %v7186_v47 = vld [vmem:[#allocation2 + $0x1118] sm:$0xff]  ;;  %v7183_v54 = vld [vmem:[#allocation2 + $0x1100] sm:$0xff] }
 0x5c1   :  { %7545 = vmatpush1.bf16.msra.mxu1 %v7015_v51  ;;  %7668 = vmatpush1.bf16.msra.mxu0 %v7017_v7  ;;  %v7185_v51 = vld [vmem:[#allocation2 + $0x1110] sm:$0xff]  ;;  %v7196_v7 = vld [vmem:[#allocation2 + $0x1168] sm:$0xff] }
 0x5c2   :  { %7555 = vmatprep.subr.bf16.mxu1 %v7028_v50  ;;  %7678 = vmatprep.subr.bf16.mxu0 %v7030_v48  ;;  %v7198_v50 = vld [vmem:[#allocation2 + $0x1178] sm:$0xff]  ;;  %v7195_v48 = vld [vmem:[#allocation2 + $0x1160] sm:$0xff] }
 0x5c4   :  { %7547 = vmatmul.mubr.bf16.vlgmr.msra.gmra.mrb[76].mxu1 %v10957_v26  ;;  %7670 = vmatmul.mubr.bf16.vlgmr.msra.gmra.mrb[80].mxu0 %v10957_v26  ;;  %v7066_v26 = vld [vmem:[#allocation2 + $0xd58] sm:$0xff] }
 0x5c5   :  { %7556 = vmatpush1.bf16.msra.mxu1 %v7027_v49  ;;  %7679 = vmatpush1.bf16.msra.mxu0 %v7029_v23  ;;  %v7197_v49 = vld [vmem:[#allocation2 + $0x1170] sm:$0xff]  ;;  %v7208_v23 = vld [vmem:[#allocation2 + $0x11c8] sm:$0xff] }
 0x5c6   :  { %7557 = vmatprep.subr.bf16.mxu1 %v7040_v46  ;;  %7680 = vmatprep.subr.bf16.mxu0 %v7042_v31  ;;  %v7210_v46 = vld [vmem:[#allocation2 + $0x11d8] sm:$0xff]  ;;  %v7207_v31 = vld [vmem:[#allocation2 + $0x11c0] sm:$0xff] }
 0x5c7   :  { %7587 = vmatprep.mubr.bf16.mxu1 %v10986_v14  ;;  %7710 = vmatprep.mubr.bf16.mxu0 %v10986_v14  ;;  %v7075_v14 = vld [vmem:[#allocation2 + $0xda0] sm:$0xff] }
 0x5c9   :  { %7558 = vmatpush1.bf16.msra.mxu1 %v7039_v5  ;;  %7681 = vmatpush1.bf16.msra.mxu0 %v7041_v10  ;;  %v7209_v5 = vld [vmem:[#allocation2 + $0x11d0] sm:$0xff]  ;;  %v6648_v10 = vld [vmem:[#allocation2 + $0x48] sm:$0xff] }
 0x5ca   :  { %7559 = vmatprep.subr.bf16.mxu1 %v7052_v28  ;;  %7682 = vmatprep.subr.bf16.mxu0 %v7054_v35  ;;  %v6650_v28 = vld [vmem:[#allocation2 + $0x58] sm:$0xff]  ;;  %v6647_v35 = vld [vmem:[#allocation2 + $0x40] sm:$0xff] }
 0x5cd   :  { %7560 = vmatpush1.bf16.msra.mxu1 %v7051_v53  ;;  %7683 = vmatpush1.bf16.msra.mxu0 %v7053_v55  ;;  %v6649_v53 = vld [vmem:[#allocation2 + $0x50] sm:$0xff]  ;;  %v6660_v55 = vld [vmem:[#allocation2 + $0xa8] sm:$0xff] }
 0x5ce   :  { %7561 = vmatprep.subr.bf16.mxu1 %v7064_v40  ;;  %7684 = vmatprep.subr.bf16.mxu0 %v7066_v26  ;;  %v6662_v40 = vld [vmem:[#allocation2 + $0xb8] sm:$0xff]  ;;  %v6659_v26 = vld [vmem:[#allocation2 + $0xa0] sm:$0xff] }
 0x5d1   :  { %7562 = vmatpush1.bf16.msra.mxu1 %v7063_v57  ;;  %7685 = vmatpush1.bf16.msra.mxu0 %v7065_v13  ;;  %v6661_v57 = vld [vmem:[#allocation2 + $0xb0] sm:$0xff]  ;;  %v6672_v13 = vld [vmem:[#allocation2 + $0x108] sm:$0xff] }
 0x5d2   :  { %7563 = vmatprep.subr.bf16.mxu1 %v7076_v4  ;;  %7686 = vmatprep.subr.bf16.mxu0 %v7078_v19  ;;  %v6674_v4 = vld [vmem:[#allocation2 + $0x118] sm:$0xff]  ;;  %v6671_v19 = vld [vmem:[#allocation2 + $0x100] sm:$0xff] }
 0x5d5   :  { %7564 = vmatpush1.bf16.msra.mxu1 %v7075_v14  ;;  %7687 = vmatpush1.bf16.msra.mxu0 %v7077_v58  ;;  %v6673_v14 = vld [vmem:[#allocation2 + $0x110] sm:$0xff]  ;;  %v6684_v58 = vld [vmem:[#allocation2 + $0x168] sm:$0xff] }
 0x5d6   :  { %7565 = vmatprep.subr.bf16.mxu1 %v7088_v60  ;;  %7688 = vmatprep.subr.bf16.mxu0 %v7090_v61  ;;  %v6683_v60 = vld [vmem:[#allocation2 + $0x160] sm:$0xff]  ;;  %v6685_v61 = vld [vmem:[#allocation2 + $0x170] sm:$0xff] }
 0x5d9   :  { %7566 = vmatpush1.bf16.msra.mxu1 %v7087_v17  ;;  %7689 = vmatpush1.bf16.msra.mxu0 %v7089_v62  ;;  %v6696_v17 = vld [vmem:[#allocation2 + $0x1c8] sm:$0xff]  ;;  %v6698_v62 = vld [vmem:[#allocation2 + $0x1d8] sm:$0xff] }
 0x5da   :  { %7567 = vmatprep.subr.bf16.mxu1 %v7100_v0  ;;  %7690 = vmatprep.subr.bf16.mxu0 %v7102_v1  ;;  %v6697_v0 = vld [vmem:[#allocation2 + $0x1d0] sm:$0xff]  ;;  %v6708_v1 = vld [vmem:[#allocation2 + $0x228] sm:$0xff] }
 0x5dd   :  { %7568 = vmatpush1.bf16.msra.mxu1 %v7099_v2  ;;  %7691 = vmatpush1.bf16.msra.mxu0 %v7101_v45  ;;  %v6710_v2 = vld [vmem:[#allocation2 + $0x238] sm:$0xff]  ;;  %v6707_v45 = vld [vmem:[#allocation2 + $0x220] sm:$0xff] }
 0x5de   :  { %7569 = vmatprep.subr.bf16.mxu1 %v7112_v3  ;;  %7692 = vmatprep.subr.bf16.mxu0 %v7114_v11  ;;  %v6709_v3 = vld [vmem:[#allocation2 + $0x230] sm:$0xff] }
 0x5e1   :  { %7570 = vmatpush1.bf16.msra.mxu1 %v7111_v15  ;;  %7693 = vmatpush1.bf16.msra.mxu0 %v7113_v18  ;;  %v6720_v18 = vld [vmem:[#allocation2 + $0x288] sm:$0xff] }
 0x5e2   :  { %7571 = vmatprep.subr.bf16.mxu1 %v7124_v22  ;;  %7694 = vmatprep.subr.bf16.mxu0 %v7126_v12  ;;  %v6722_v22 = vld [vmem:[#allocation2 + $0x298] sm:$0xff] }
 0x5e5   :  { %7572 = vmatpush1.bf16.msra.mxu1 %v7123_v24  ;;  %7695 = vmatpush1.bf16.msra.mxu0 %v7125_v25 }
 0x5e6   :  { %7573 = vmatprep.subr.bf16.mxu1 %v7136_v56  ;;  %7696 = vmatprep.subr.bf16.mxu0 %v7138_v44 }
 0x5e9   :  { %7574 = vmatpush1.bf16.msra.mxu1 %v7135_v32  ;;  %7697 = vmatpush1.bf16.msra.mxu0 %v7137_v29  ;;  %v6719_v29 = vld [vmem:[#allocation2 + $0x280] sm:$0xff] }
 0x5ea   :  { %7575 = vmatprep.subr.bf16.mxu1 %v7148_v30  ;;  %7698 = vmatprep.subr.bf16.mxu0 %v7150_v33  ;;  %v6721_v30 = vld [vmem:[#allocation2 + $0x290] sm:$0xff]  ;;  %v6732_v33 = vld [vmem:[#allocation2 + $0x2e8] sm:$0xff] }
 0x5ed   :  { %7576 = vmatpush1.bf16.msra.mxu1 %v7147_v21  ;;  %7699 = vmatpush1.bf16.msra.mxu0 %v7149_v38  ;;  %v6734_v21 = vld [vmem:[#allocation2 + $0x2f8] sm:$0xff]  ;;  %v6731_v38 = vld [vmem:[#allocation2 + $0x2e0] sm:$0xff] }
 0x5ee   :  { %7577 = vmatprep.subr.bf16.mxu1 %v7160_v39  ;;  %7700 = vmatprep.subr.bf16.mxu0 %v7162_v34  ;;  %v6733_v39 = vld [vmem:[#allocation2 + $0x2f0] sm:$0xff]  ;;  %v6744_v34 = vld [vmem:[#allocation2 + $0x348] sm:$0xff] }
 0x5f1   :  { %7578 = vmatpush1.bf16.msra.mxu1 %v7159_v59  ;;  %7701 = vmatpush1.bf16.msra.mxu0 %v7161_v52  ;;  %v6746_v59 = vld [vmem:[#allocation2 + $0x358] sm:$0xff]  ;;  %v6743_v52 = vld [vmem:[#allocation2 + $0x340] sm:$0xff] }
 0x5f2   :  { %7579 = vmatprep.subr.bf16.mxu1 %v7172_v41  ;;  %7702 = vmatprep.subr.bf16.mxu0 %v7174_v42  ;;  %v6745_v41 = vld [vmem:[#allocation2 + $0x350] sm:$0xff]  ;;  %v6756_v42 = vld [vmem:[#allocation2 + $0x3a8] sm:$0xff] }
 0x5f5   :  { %7580 = vmatpush1.bf16.msra.mxu1 %v7171_v20  ;;  %7703 = vmatpush1.bf16.msra.mxu0 %v7173_v43  ;;  %v6758_v20 = vld [vmem:[#allocation2 + $0x3b8] sm:$0xff]  ;;  %v6755_v43 = vld [vmem:[#allocation2 + $0x3a0] sm:$0xff] }
 0x5f6   :  { %7581 = vmatprep.subr.bf16.mxu1 %v7184_v63  ;;  %7704 = vmatprep.subr.bf16.mxu0 %v7186_v47  ;;  %v6757_v63 = vld [vmem:[#allocation2 + $0x3b0] sm:$0xff]  ;;  %v6768_v47 = vld [vmem:[#allocation2 + $0x408] sm:$0xff] }
 0x5f9   :  { %7582 = vmatpush1.bf16.msra.mxu1 %v7183_v54  ;;  %7705 = vmatpush1.bf16.msra.mxu0 %v7185_v51  ;;  %v6770_v54 = vld [vmem:[#allocation2 + $0x418] sm:$0xff]  ;;  %v6767_v51 = vld [vmem:[#allocation2 + $0x400] sm:$0xff] }
 0x5fa   :  { %7583 = vmatprep.subr.bf16.mxu1 %v7196_v7  ;;  %7706 = vmatprep.subr.bf16.mxu0 %v7198_v50  ;;  %v6769_v7 = vld [vmem:[#allocation2 + $0x410] sm:$0xff]  ;;  %v6780_v50 = vld [vmem:[#allocation2 + $0x468] sm:$0xff] }
 0x5fd   :  { %7584 = vmatpush1.bf16.msra.mxu1 %v7195_v48  ;;  %7707 = vmatpush1.bf16.msra.mxu0 %v7197_v49  ;;  %v6782_v48 = vld [vmem:[#allocation2 + $0x478] sm:$0xff]  ;;  %v6779_v49 = vld [vmem:[#allocation2 + $0x460] sm:$0xff] }
 0x5fe   :  { %7585 = vmatprep.subr.bf16.mxu1 %v7208_v23  ;;  %7708 = vmatprep.subr.bf16.mxu0 %v7210_v46  ;;  %v6781_v23 = vld [vmem:[#allocation2 + $0x470] sm:$0xff]  ;;  %v6792_v46 = vld [vmem:[#allocation2 + $0x4c8] sm:$0xff] }
 0x601   :  { %7586 = vmatpush1.bf16.msra.mxu1 %v7207_v31  ;;  %7709 = vmatpush1.bf16.msra.mxu0 %v7209_v5  ;;  %v6794_v31 = vld [vmem:[#allocation2 + $0x4d8] sm:$0xff]  ;;  %v6791_v5 = vld [vmem:[#allocation2 + $0x4c0] sm:$0xff] }
 0x602   :  { %7719 = vmatprep.subr.bf16.mxu1 %v6648_v10  ;;  %7842 = vmatprep.subr.bf16.mxu0 %v6650_v28  ;;  %v6793_v10 = vld [vmem:[#allocation2 + $0x4d0] sm:$0xff]  ;;  %v6804_v28 = vld [vmem:[#allocation2 + $0x528] sm:$0xff] }
 0x604   :  { %7588 = vmatmul.mubr.bf16.vlgmr.msra.gmra.mrb[76].mxu1 %v10984_v8  ;;  %7711 = vmatmul.mubr.bf16.vlgmr.msra.gmra.mrb[80].mxu0 %v10984_v8  ;;  %v6686_v8 = vld [vmem:[#allocation2 + $0x178] sm:$0xff] }
 0x605   :  { %7720 = vmatpush1.bf16.msra.mxu1 %v6647_v35  ;;  %7843 = vmatpush1.bf16.msra.mxu0 %v6649_v53  ;;  %v6806_v35 = vld [vmem:[#allocation2 + $0x538] sm:$0xff]  ;;  %v6803_v53 = vld [vmem:[#allocation2 + $0x520] sm:$0xff] }
 0x606   :  { %7721 = vmatprep.subr.bf16.mxu1 %v6660_v55  ;;  %7844 = vmatprep.subr.bf16.mxu0 %v6662_v40  ;;  %v6805_v55 = vld [vmem:[#allocation2 + $0x530] sm:$0xff]  ;;  %v6816_v40 = vld [vmem:[#allocation2 + $0x588] sm:$0xff] }
 0x607   :  { %7751 = vmatprep.mubr.bf16.mxu1 %v10995_v9  ;;  %7874 = vmatprep.mubr.bf16.mxu0 %v10995_v9  ;;  %v6695_v9 = vld [vmem:[#allocation2 + $0x1c0] sm:$0xff] }
 0x609   :  { %7722 = vmatpush1.bf16.msra.mxu1 %v6659_v26  ;;  %7845 = vmatpush1.bf16.msra.mxu0 %v6661_v57  ;;  %v6818_v26 = vld [vmem:[#allocation2 + $0x598] sm:$0xff]  ;;  %v6815_v57 = vld [vmem:[#allocation2 + $0x580] sm:$0xff] }
 0x60a   :  { %7723 = vmatprep.subr.bf16.mxu1 %v6672_v13  ;;  %7846 = vmatprep.subr.bf16.mxu0 %v6674_v4  ;;  %v6817_v13 = vld [vmem:[#allocation2 + $0x590] sm:$0xff]  ;;  %v6828_v4 = vld [vmem:[#allocation2 + $0x5e8] sm:$0xff] }
 0x60d   :  { %7724 = vmatpush1.bf16.msra.mxu1 %v6671_v19  ;;  %7847 = vmatpush1.bf16.msra.mxu0 %v6673_v14  ;;  %v6830_v19 = vld [vmem:[#allocation2 + $0x5f8] sm:$0xff]  ;;  %v6827_v14 = vld [vmem:[#allocation2 + $0x5e0] sm:$0xff] }
 0x60e   :  { %7725 = vmatprep.subr.bf16.mxu1 %v6684_v58  ;;  %7848 = vmatprep.subr.bf16.mxu0 %v6686_v8  ;;  %v6829_v58 = vld [vmem:[#allocation2 + $0x5f0] sm:$0xff]  ;;  %v6840_v8 = vld [vmem:[#allocation2 + $0x648] sm:$0xff] }
 0x611   :  { %7726 = vmatpush1.bf16.msra.mxu1 %v6683_v60  ;;  %7849 = vmatpush1.bf16.msra.mxu0 %v6685_v61  ;;  %v6842_v60 = vld [vmem:[#allocation2 + $0x658] sm:$0xff]  ;;  %v6839_v61 = vld [vmem:[#allocation2 + $0x640] sm:$0xff] }
 0x612   :  { %7727 = vmatprep.subr.bf16.mxu1 %v6696_v17  ;;  %7850 = vmatprep.subr.bf16.mxu0 %v6698_v62  ;;  %v6841_v17 = vld [vmem:[#allocation2 + $0x650] sm:$0xff]  ;;  %v6852_v62 = vld [vmem:[#allocation2 + $0x6a8] sm:$0xff] }
 0x615   :  { %7728 = vmatpush1.bf16.msra.mxu1 %v6695_v9  ;;  %7851 = vmatpush1.bf16.msra.mxu0 %v6697_v0  ;;  %v6854_v9 = vld [vmem:[#allocation2 + $0x6b8] sm:$0xff]  ;;  %v6851_v0 = vld [vmem:[#allocation2 + $0x6a0] sm:$0xff] }
 0x616   :  { %7729 = vmatprep.subr.bf16.mxu1 %v6708_v1  ;;  %7852 = vmatprep.subr.bf16.mxu0 %v6710_v2  ;;  %v6853_v1 = vld [vmem:[#allocation2 + $0x6b0] sm:$0xff]  ;;  %v6864_v2 = vld [vmem:[#allocation2 + $0x708] sm:$0xff] }
 0x617   :  { %v11031_v11 = vpop.f32.mrb[72].mxu1  ;;  %v11033_v15 = vpop.f32.mrb[76].mxu0 }
 0x618   :  { %v11035_v12 = vpop.f32.mrb[73].mxu1  ;;  %v11037_v24 = vpop.f32.mrb[77].mxu0 }
 0x619   :  { %v11039_v25 = vpop.f32.mrb[74].mxu1  ;;  %v11041_v56 = vpop.f32.mrb[78].mxu0  ;;  %7730 = vmatpush1.bf16.msra.mxu1 %v6707_v45  ;;  %7853 = vmatpush1.bf16.msra.mxu0 %v6709_v3  ;;  %v6866_v45 = vld [vmem:[#allocation2 + $0x718] sm:$0xff]  ;;  %v6863_v3 = vld [vmem:[#allocation2 + $0x700] sm:$0xff] }
 0x61a   :  { %v11043_v44 = vpop.f32.mrb[75].mxu1  ;;  %v11045_v32 = vpop.f32.mrb[79].mxu0  ;;  %7731 = vmatprep.subr.bf16.mxu1 %v6720_v18  ;;  %7854 = vmatprep.subr.bf16.mxu0 %v6722_v22  ;;  %v6865_v18 = vld [vmem:[#allocation2 + $0x710] sm:$0xff]  ;;  %v6876_v22 = vld [vmem:[#allocation2 + $0x768] sm:$0xff] }
 0x61d   :  { %7732 = vmatpush1.bf16.msra.mxu1 %v6719_v29  ;;  %7855 = vmatpush1.bf16.msra.mxu0 %v6721_v30  ;;  %v6875_v29 = vld [vmem:[#allocation2 + $0x760] sm:$0xff]  ;;  %v6877_v30 = vld [vmem:[#allocation2 + $0x770] sm:$0xff] }
 0x61e   :  { %7733 = vmatprep.subr.bf16.mxu1 %v6732_v33  ;;  %7856 = vmatprep.subr.bf16.mxu0 %v6734_v21  ;;  %v6888_v33 = vld [vmem:[#allocation2 + $0x7c8] sm:$0xff]  ;;  %v6890_v21 = vld [vmem:[#allocation2 + $0x7d8] sm:$0xff] }
 0x621   :  { %7734 = vmatpush1.bf16.msra.mxu1 %v6731_v38  ;;  %7857 = vmatpush1.bf16.msra.mxu0 %v6733_v39  ;;  %v6889_v38 = vld [vmem:[#allocation2 + $0x7d0] sm:$0xff]  ;;  %v6900_v39 = vld [vmem:[#allocation2 + $0x828] sm:$0xff] }
 0x622   :  { %7735 = vmatprep.subr.bf16.mxu1 %v6744_v34  ;;  %7858 = vmatprep.subr.bf16.mxu0 %v6746_v59  ;;  %v6902_v34 = vld [vmem:[#allocation2 + $0x838] sm:$0xff]  ;;  %v6899_v59 = vld [vmem:[#allocation2 + $0x820] sm:$0xff] }
 0x625   :  { %7736 = vmatpush1.bf16.msra.mxu1 %v6743_v52  ;;  %7859 = vmatpush1.bf16.msra.mxu0 %v6745_v41  ;;  %v6901_v52 = vld [vmem:[#allocation2 + $0x830] sm:$0xff]  ;;  %v6912_v41 = vld [vmem:[#allocation2 + $0x888] sm:$0xff] }
 0x626   :  { %7737 = vmatprep.subr.bf16.mxu1 %v6756_v42  ;;  %7860 = vmatprep.subr.bf16.mxu0 %v6758_v20  ;;  %v6914_v42 = vld [vmem:[#allocation2 + $0x898] sm:$0xff]  ;;  %v6911_v20 = vld [vmem:[#allocation2 + $0x880] sm:$0xff] }
 0x629   :  { %7738 = vmatpush1.bf16.msra.mxu1 %v6755_v43  ;;  %7861 = vmatpush1.bf16.msra.mxu0 %v6757_v63  ;;  %v6913_v43 = vld [vmem:[#allocation2 + $0x890] sm:$0xff]  ;;  %v6924_v63 = vld [vmem:[#allocation2 + $0x8e8] sm:$0xff] }
 0x62a   :  { %7739 = vmatprep.subr.bf16.mxu1 %v6768_v47  ;;  %7862 = vmatprep.subr.bf16.mxu0 %v6770_v54  ;;  %v6926_v47 = vld [vmem:[#allocation2 + $0x8f8] sm:$0xff]  ;;  %v6923_v54 = vld [vmem:[#allocation2 + $0x8e0] sm:$0xff] }
 0x62d   :  { %7740 = vmatpush1.bf16.msra.mxu1 %v6767_v51  ;;  %7863 = vmatpush1.bf16.msra.mxu0 %v6769_v7  ;;  %v6925_v51 = vld [vmem:[#allocation2 + $0x8f0] sm:$0xff]  ;;  %v6936_v7 = vld [vmem:[#allocation2 + $0x948] sm:$0xff] }
 0x62e   :  { %7741 = vmatprep.subr.bf16.mxu1 %v6780_v50  ;;  %7864 = vmatprep.subr.bf16.mxu0 %v6782_v48  ;;  %v6938_v50 = vld [vmem:[#allocation2 + $0x958] sm:$0xff]  ;;  %v6935_v48 = vld [vmem:[#allocation2 + $0x940] sm:$0xff] }
 0x631   :  { %7742 = vmatpush1.bf16.msra.mxu1 %v6779_v49  ;;  %7865 = vmatpush1.bf16.msra.mxu0 %v6781_v23  ;;  %v6937_v49 = vld [vmem:[#allocation2 + $0x950] sm:$0xff]  ;;  %v6948_v23 = vld [vmem:[#allocation2 + $0x9a8] sm:$0xff] }
 0x632   :  { %7743 = vmatprep.subr.bf16.mxu1 %v6792_v46  ;;  %7866 = vmatprep.subr.bf16.mxu0 %v6794_v31  ;;  %v6950_v46 = vld [vmem:[#allocation2 + $0x9b8] sm:$0xff]  ;;  %v6947_v31 = vld [vmem:[#allocation2 + $0x9a0] sm:$0xff] }
 0x635   :  { %7744 = vmatpush1.bf16.msra.mxu1 %v6791_v5  ;;  %7867 = vmatpush1.bf16.msra.mxu0 %v6793_v10  ;;  %v6949_v5 = vld [vmem:[#allocation2 + $0x9b0] sm:$0xff]  ;;  %v6960_v10 = vld [vmem:[#allocation2 + $0xa08] sm:$0xff] }
 0x636   :  { %7745 = vmatprep.subr.bf16.mxu1 %v6804_v28  ;;  %7868 = vmatprep.subr.bf16.mxu0 %v6806_v35  ;;  %v6962_v28 = vld [vmem:[#allocation2 + $0xa18] sm:$0xff]  ;;  %v6959_v35 = vld [vmem:[#allocation2 + $0xa00] sm:$0xff] }
 0x639   :  { %7746 = vmatpush1.bf16.msra.mxu1 %v6803_v53  ;;  %7869 = vmatpush1.bf16.msra.mxu0 %v6805_v55  ;;  %v6961_v53 = vld [vmem:[#allocation2 + $0xa10] sm:$0xff]  ;;  %v6972_v55 = vld [vmem:[#allocation2 + $0xa68] sm:$0xff] }
 0x63a   :  { %7747 = vmatprep.subr.bf16.mxu1 %v6816_v40  ;;  %7870 = vmatprep.subr.bf16.mxu0 %v6818_v26  ;;  %v6974_v40 = vld [vmem:[#allocation2 + $0xa78] sm:$0xff]  ;;  %v6971_v26 = vld [vmem:[#allocation2 + $0xa60] sm:$0xff] }
 0x63d   :  { %7748 = vmatpush1.bf16.msra.mxu1 %v6815_v57  ;;  %7871 = vmatpush1.bf16.msra.mxu0 %v6817_v13  ;;  %v6973_v57 = vld [vmem:[#allocation2 + $0xa70] sm:$0xff]  ;;  %v6984_v13 = vld [vmem:[#allocation2 + $0xac8] sm:$0xff] }
 0x63e   :  { %7749 = vmatprep.subr.bf16.mxu1 %v6828_v4  ;;  %7872 = vmatprep.subr.bf16.mxu0 %v6830_v19  ;;  %v6986_v4 = vld [vmem:[#allocation2 + $0xad8] sm:$0xff]  ;;  %v6983_v19 = vld [vmem:[#allocation2 + $0xac0] sm:$0xff] }
 0x641   :  { %7750 = vmatpush1.bf16.msra.mxu1 %v6827_v14  ;;  %7873 = vmatpush1.bf16.msra.mxu0 %v6829_v58  ;;  %v6985_v14 = vld [vmem:[#allocation2 + $0xad0] sm:$0xff]  ;;  %v6996_v58 = vld [vmem:[#allocation2 + $0xb28] sm:$0xff] }
 0x642   :  { %7760 = vmatprep.subr.bf16.mxu1 %v6840_v8  ;;  %7883 = vmatprep.subr.bf16.mxu0 %v6842_v60  ;;  %v6998_v8 = vld [vmem:[#allocation2 + $0xb38] sm:$0xff]  ;;  %v6995_v60 = vld [vmem:[#allocation2 + $0xb20] sm:$0xff] }
 0x644   :  { %7752 = vmatmul.mubr.bf16.vlgmr.msra.gmra.mrb[80].mxu1 %v10993_v27  ;;  %7875 = vmatmul.mubr.bf16.vlgmr.msra.gmra.mrb[84].mxu0 %v10993_v27  ;;  %v6878_v27 = vld [vmem:[#allocation2 + $0x778] sm:$0xff] }
 0x645   :  { %7761 = vmatpush1.bf16.msra.mxu1 %v6839_v61  ;;  %7884 = vmatpush1.bf16.msra.mxu0 %v6841_v17  ;;  %v6997_v61 = vld [vmem:[#allocation2 + $0xb30] sm:$0xff]  ;;  %v7008_v17 = vld [vmem:[#allocation2 + $0xb88] sm:$0xff] }
 0x646   :  { %7762 = vmatprep.subr.bf16.mxu1 %v6852_v62  ;;  %7885 = vmatprep.subr.bf16.mxu0 %v6854_v9  ;;  %v7010_v62 = vld [vmem:[#allocation2 + $0xb98] sm:$0xff]  ;;  %v7007_v9 = vld [vmem:[#allocation2 + $0xb80] sm:$0xff] }
 0x647   :  { %7792 = vmatprep.mubr.bf16.mxu1 %v10999_v16  ;;  %7915 = vmatprep.mubr.bf16.mxu0 %v10999_v16  ;;  %v6887_v16 = vld [vmem:[#allocation2 + $0x7c0] sm:$0xff] }
 0x649   :  { %7763 = vmatpush1.bf16.msra.mxu1 %v6851_v0  ;;  %7886 = vmatpush1.bf16.msra.mxu0 %v6853_v1  ;;  %v7009_v0 = vld [vmem:[#allocation2 + $0xb90] sm:$0xff]  ;;  %v7020_v1 = vld [vmem:[#allocation2 + $0xbe8] sm:$0xff] }
 0x64a   :  { %7764 = vmatprep.subr.bf16.mxu1 %v6864_v2  ;;  %7887 = vmatprep.subr.bf16.mxu0 %v6866_v45  ;;  %v7022_v2 = vld [vmem:[#allocation2 + $0xbf8] sm:$0xff]  ;;  %v7019_v45 = vld [vmem:[#allocation2 + $0xbe0] sm:$0xff] }
 0x64d   :  { %7765 = vmatpush1.bf16.msra.mxu1 %v6863_v3  ;;  %7888 = vmatpush1.bf16.msra.mxu0 %v6865_v18  ;;  %v7021_v3 = vld [vmem:[#allocation2 + $0xbf0] sm:$0xff]  ;;  %v7032_v18 = vld [vmem:[#allocation2 + $0xc48] sm:$0xff] }
 0x64e   :  { %7766 = vmatprep.subr.bf16.mxu1 %v6876_v22  ;;  %7889 = vmatprep.subr.bf16.mxu0 %v6878_v27  ;;  %v7034_v22 = vld [vmem:[#allocation2 + $0xc58] sm:$0xff]  ;;  %v7031_v27 = vld [vmem:[#allocation2 + $0xc40] sm:$0xff] }
 0x651   :  { %7767 = vmatpush1.bf16.msra.mxu1 %v6875_v29  ;;  %7890 = vmatpush1.bf16.msra.mxu0 %v6877_v30  ;;  %v7033_v29 = vld [vmem:[#allocation2 + $0xc50] sm:$0xff]  ;;  %v7044_v30 = vld [vmem:[#allocation2 + $0xca8] sm:$0xff] }
 0x652   :  { %7768 = vmatprep.subr.bf16.mxu1 %v6888_v33  ;;  %7891 = vmatprep.subr.bf16.mxu0 %v6890_v21  ;;  %v7046_v33 = vld [vmem:[#allocation2 + $0xcb8] sm:$0xff]  ;;  %v7043_v21 = vld [vmem:[#allocation2 + $0xca0] sm:$0xff] }
 0x655   :  { %7769 = vmatpush1.bf16.msra.mxu1 %v6887_v16  ;;  %7892 = vmatpush1.bf16.msra.mxu0 %v6889_v38  ;;  %v7045_v16 = vld [vmem:[#allocation2 + $0xcb0] sm:$0xff]  ;;  %v7056_v38 = vld [vmem:[#allocation2 + $0xd08] sm:$0xff] }
 0x656   :  { %7770 = vmatprep.subr.bf16.mxu1 %v6900_v39  ;;  %7893 = vmatprep.subr.bf16.mxu0 %v6902_v34  ;;  %v7058_v39 = vld [vmem:[#allocation2 + $0xd18] sm:$0xff]  ;;  %v7055_v34 = vld [vmem:[#allocation2 + $0xd00] sm:$0xff] }
 0x659   :  { %7771 = vmatpush1.bf16.msra.mxu1 %v6899_v59  ;;  %7894 = vmatpush1.bf16.msra.mxu0 %v6901_v52  ;;  %v7057_v59 = vld [vmem:[#allocation2 + $0xd10] sm:$0xff]  ;;  %v7068_v52 = vld [vmem:[#allocation2 + $0xd68] sm:$0xff] }
 0x65a   :  { %7772 = vmatprep.subr.bf16.mxu1 %v6912_v41  ;;  %7895 = vmatprep.subr.bf16.mxu0 %v6914_v42  ;;  %v7067_v41 = vld [vmem:[#allocation2 + $0xd60] sm:$0xff]  ;;  %v7069_v42 = vld [vmem:[#allocation2 + $0xd70] sm:$0xff] }
 0x65d   :  { %7773 = vmatpush1.bf16.msra.mxu1 %v6911_v20  ;;  %7896 = vmatpush1.bf16.msra.mxu0 %v6913_v43  ;;  %v7080_v20 = vld [vmem:[#allocation2 + $0xdc8] sm:$0xff]  ;;  %v7082_v43 = vld [vmem:[#allocation2 + $0xdd8] sm:$0xff] }
 0x65e   :  { %7774 = vmatprep.subr.bf16.mxu1 %v6924_v63  ;;  %7897 = vmatprep.subr.bf16.mxu0 %v6926_v47  ;;  %v7081_v63 = vld [vmem:[#allocation2 + $0xdd0] sm:$0xff]  ;;  %v7092_v47 = vld [vmem:[#allocation2 + $0xe28] sm:$0xff] }
 0x661   :  { %7775 = vmatpush1.bf16.msra.mxu1 %v6923_v54  ;;  %7898 = vmatpush1.bf16.msra.mxu0 %v6925_v51  ;;  %v7094_v54 = vld [vmem:[#allocation2 + $0xe38] sm:$0xff]  ;;  %v7091_v51 = vld [vmem:[#allocation2 + $0xe20] sm:$0xff] }
 0x662   :  { %7776 = vmatprep.subr.bf16.mxu1 %v6936_v7  ;;  %7899 = vmatprep.subr.bf16.mxu0 %v6938_v50  ;;  %v7093_v7 = vld [vmem:[#allocation2 + $0xe30] sm:$0xff]  ;;  %v7104_v50 = vld [vmem:[#allocation2 + $0xe88] sm:$0xff] }
 0x665   :  { %7777 = vmatpush1.bf16.msra.mxu1 %v6935_v48  ;;  %7900 = vmatpush1.bf16.msra.mxu0 %v6937_v49  ;;  %v7106_v48 = vld [vmem:[#allocation2 + $0xe98] sm:$0xff]  ;;  %v7103_v49 = vld [vmem:[#allocation2 + $0xe80] sm:$0xff] }
 0x666   :  { %7778 = vmatprep.subr.bf16.mxu1 %v6948_v23  ;;  %7901 = vmatprep.subr.bf16.mxu0 %v6950_v46  ;;  %v7105_v23 = vld [vmem:[#allocation2 + $0xe90] sm:$0xff]  ;;  %v7116_v46 = vld [vmem:[#allocation2 + $0xee8] sm:$0xff] }
 0x669   :  { %7779 = vmatpush1.bf16.msra.mxu1 %v6947_v31  ;;  %7902 = vmatpush1.bf16.msra.mxu0 %v6949_v5  ;;  %v7118_v31 = vld [vmem:[#allocation2 + $0xef8] sm:$0xff]  ;;  %v7115_v5 = vld [vmem:[#allocation2 + $0xee0] sm:$0xff] }
 0x66a   :  { %7780 = vmatprep.subr.bf16.mxu1 %v6960_v10  ;;  %7903 = vmatprep.subr.bf16.mxu0 %v6962_v28  ;;  %v7117_v10 = vld [vmem:[#allocation2 + $0xef0] sm:$0xff]  ;;  %v7128_v28 = vld [vmem:[#allocation2 + $0xf48] sm:$0xff] }
 0x66d   :  { %7781 = vmatpush1.bf16.msra.mxu1 %v6959_v35  ;;  %7904 = vmatpush1.bf16.msra.mxu0 %v6961_v53  ;;  %v7130_v35 = vld [vmem:[#allocation2 + $0xf58] sm:$0xff]  ;;  %v7127_v53 = vld [vmem:[#allocation2 + $0xf40] sm:$0xff] }
 0x66e   :  { %7782 = vmatprep.subr.bf16.mxu1 %v6972_v55  ;;  %7905 = vmatprep.subr.bf16.mxu0 %v6974_v40  ;;  %v7129_v55 = vld [vmem:[#allocation2 + $0xf50] sm:$0xff]  ;;  %v7140_v40 = vld [vmem:[#allocation2 + $0xfa8] sm:$0xff] }
 0x671   :  { %7783 = vmatpush1.bf16.msra.mxu1 %v6971_v26  ;;  %7906 = vmatpush1.bf16.msra.mxu0 %v6973_v57  ;;  %v7142_v26 = vld [vmem:[#allocation2 + $0xfb8] sm:$0xff]  ;;  %v7139_v57 = vld [vmem:[#allocation2 + $0xfa0] sm:$0xff] }
 0x672   :  { %7784 = vmatprep.subr.bf16.mxu1 %v6984_v13  ;;  %7907 = vmatprep.subr.bf16.mxu0 %v6986_v4  ;;  %v7141_v13 = vld [vmem:[#allocation2 + $0xfb0] sm:$0xff]  ;;  %v7152_v4 = vld [vmem:[#allocation2 + $0x1008] sm:$0xff] }
 0x675   :  { %7785 = vmatpush1.bf16.msra.mxu1 %v6983_v19  ;;  %7908 = vmatpush1.bf16.msra.mxu0 %v6985_v14  ;;  %v7154_v19 = vld [vmem:[#allocation2 + $0x1018] sm:$0xff]  ;;  %v7151_v14 = vld [vmem:[#allocation2 + $0x1000] sm:$0xff] }
 0x676   :  { %7786 = vmatprep.subr.bf16.mxu1 %v6996_v58  ;;  %7909 = vmatprep.subr.bf16.mxu0 %v6998_v8  ;;  %v7153_v58 = vld [vmem:[#allocation2 + $0x1010] sm:$0xff]  ;;  %v7164_v8 = vld [vmem:[#allocation2 + $0x1068] sm:$0xff] }
 0x679   :  { %7787 = vmatpush1.bf16.msra.mxu1 %v6995_v60  ;;  %7910 = vmatpush1.bf16.msra.mxu0 %v6997_v61  ;;  %v7166_v60 = vld [vmem:[#allocation2 + $0x1078] sm:$0xff]  ;;  %v7163_v61 = vld [vmem:[#allocation2 + $0x1060] sm:$0xff] }
 0x67a   :  { %7788 = vmatprep.subr.bf16.mxu1 %v7008_v17  ;;  %7911 = vmatprep.subr.bf16.mxu0 %v7010_v62  ;;  %v7165_v17 = vld [vmem:[#allocation2 + $0x1070] sm:$0xff]  ;;  %v7176_v62 = vld [vmem:[#allocation2 + $0x10c8] sm:$0xff] }
 0x67d   :  { %7789 = vmatpush1.bf16.msra.mxu1 %v7007_v9  ;;  %7912 = vmatpush1.bf16.msra.mxu0 %v7009_v0  ;;  %v7178_v9 = vld [vmem:[#allocation2 + $0x10d8] sm:$0xff]  ;;  %v7175_v0 = vld [vmem:[#allocation2 + $0x10c0] sm:$0xff] }
 0x67e   :  { %7790 = vmatprep.subr.bf16.mxu1 %v7020_v1  ;;  %7913 = vmatprep.subr.bf16.mxu0 %v7022_v2  ;;  %v7177_v1 = vld [vmem:[#allocation2 + $0x10d0] sm:$0xff]  ;;  %v7188_v2 = vld [vmem:[#allocation2 + $0x1128] sm:$0xff] }
 0x681   :  { %7791 = vmatpush1.bf16.msra.mxu1 %v7019_v45  ;;  %7914 = vmatpush1.bf16.msra.mxu0 %v7021_v3  ;;  %v7190_v45 = vld [vmem:[#allocation2 + $0x1138] sm:$0xff]  ;;  %v7187_v3 = vld [vmem:[#allocation2 + $0x1120] sm:$0xff] }
 0x682   :  { %7801 = vmatprep.subr.bf16.mxu1 %v7032_v18  ;;  %7924 = vmatprep.subr.bf16.mxu0 %v7034_v22  ;;  %v7189_v18 = vld [vmem:[#allocation2 + $0x1130] sm:$0xff]  ;;  %v7200_v22 = vld [vmem:[#allocation2 + $0x1188] sm:$0xff] }
 0x684   :  { %7793 = vmatmul.mubr.bf16.vlgmr.msra.gmra.mrb[80].mxu1 %v10997_v6  ;;  %7916 = vmatmul.mubr.bf16.vlgmr.msra.gmra.mrb[84].mxu0 %v10997_v6  ;;  %v7070_v6 = vld [vmem:[#allocation2 + $0xd78] sm:$0xff] }
 0x685   :  { %7802 = vmatpush1.bf16.msra.mxu1 %v7031_v27  ;;  %7925 = vmatpush1.bf16.msra.mxu0 %v7033_v29  ;;  %v7202_v27 = vld [vmem:[#allocation2 + $0x1198] sm:$0xff]  ;;  %v7199_v29 = vld [vmem:[#allocation2 + $0x1180] sm:$0xff] }
 0x686   :  { %7803 = vmatprep.subr.bf16.mxu1 %v7044_v30  ;;  %7926 = vmatprep.subr.bf16.mxu0 %v7046_v33  ;;  %v7201_v30 = vld [vmem:[#allocation2 + $0x1190] sm:$0xff]  ;;  %v7212_v33 = vld [vmem:[#allocation2 + $0x11e8] sm:$0xff] }
 0x687   :  { %7833 = vmatprep.mubr.bf16.mxu1 %v11003_v37  ;;  %7956 = vmatprep.mubr.bf16.mxu0 %v11003_v37  ;;  %v7079_v37 = vld [vmem:[#allocation2 + $0xdc0] sm:$0xff] }
 0x689   :  { %7804 = vmatpush1.bf16.msra.mxu1 %v7043_v21  ;;  %7927 = vmatpush1.bf16.msra.mxu0 %v7045_v16  ;;  %v7214_v21 = vld [vmem:[#allocation2 + $0x11f8] sm:$0xff]  ;;  %v7211_v16 = vld [vmem:[#allocation2 + $0x11e0] sm:$0xff] }
 0x68a   :  { %7805 = vmatprep.subr.bf16.mxu1 %v7056_v38  ;;  %7928 = vmatprep.subr.bf16.mxu0 %v7058_v39  ;;  %v7213_v38 = vld [vmem:[#allocation2 + $0x11f0] sm:$0xff] }
 0x68d   :  { %7806 = vmatpush1.bf16.msra.mxu1 %v7055_v34  ;;  %7929 = vmatpush1.bf16.msra.mxu0 %v7057_v59 }
 0x68e   :  { %7807 = vmatprep.subr.bf16.mxu1 %v7068_v52  ;;  %7930 = vmatprep.subr.bf16.mxu0 %v7070_v6 }
 0x691   :  { %7808 = vmatpush1.bf16.msra.mxu1 %v7067_v41  ;;  %7931 = vmatpush1.bf16.msra.mxu0 %v7069_v42 }
 0x692   :  { %7809 = vmatprep.subr.bf16.mxu1 %v7080_v20  ;;  %7932 = vmatprep.subr.bf16.mxu0 %v7082_v43 }
 0x695   :  { %7810 = vmatpush1.bf16.msra.mxu1 %v7079_v37  ;;  %7933 = vmatpush1.bf16.msra.mxu0 %v7081_v63 }
 0x696   :  { %7811 = vmatprep.subr.bf16.mxu1 %v7092_v47  ;;  %7934 = vmatprep.subr.bf16.mxu0 %v7094_v54 }
 0x699   :  { %7812 = vmatpush1.bf16.msra.mxu1 %v7091_v51  ;;  %7935 = vmatpush1.bf16.msra.mxu0 %v7093_v7 }
 0x69a   :  { %7813 = vmatprep.subr.bf16.mxu1 %v7104_v50  ;;  %7936 = vmatprep.subr.bf16.mxu0 %v7106_v48 }
 0x69d   :  { %7814 = vmatpush1.bf16.msra.mxu1 %v7103_v49  ;;  %7937 = vmatpush1.bf16.msra.mxu0 %v7105_v23  ;;  %v8115_v23 = vlaneseq }
 0x69e   :  { %7815 = vmatprep.subr.bf16.mxu1 %v7116_v46  ;;  %7938 = vmatprep.subr.bf16.mxu0 %v7118_v31 }
 0x69f   :  { %v8119_v46 = vand.u32 127, %v8115_v23  ;;  %v8116_v31 = vshrl.u32 %v8115_v23, 7 }
 0x6a1   :  { %7816 = vmatpush1.bf16.msra.mxu1 %v7115_v5  ;;  %7939 = vmatpush1.bf16.msra.mxu0 %v7117_v10  ;;  %vm8122_vm0 = vcmp.lt.s32.totalorder %v8119_v46, 8  ;;  %vm8127_vm5 = vcmp.eq.s32.totalorder %v8116_v31, %v8119_v46 }
 0x6a2   :  { %7817 = vmatprep.subr.bf16.mxu1 %v7128_v28  ;;  %7940 = vmatprep.subr.bf16.mxu0 %v7130_v35  ;;  %vm8123_vm2 = vmxor %vm10677_vm1, %vm8122_vm0 }
 0x6a3   :  { %vm8125_vm3 = vmxor %vm8123_vm2, %vm10677_vm1 }
 0x6a4   :  { %vm8126_vm6 = vmxor %vm8122_vm0, %vm10677_vm1 }
 0x6a5   :  { %7818 = vmatpush1.bf16.msra.mxu1 %v7127_v53  ;;  %7941 = vmatpush1.bf16.msra.mxu0 %v7129_v55 }
 0x6a6   :  { %7819 = vmatprep.subr.bf16.mxu1 %v7140_v40  ;;  %7942 = vmatprep.subr.bf16.mxu0 %v7142_v26 }
 0x6a9   :  { %7820 = vmatpush1.bf16.msra.mxu1 %v7139_v57  ;;  %7943 = vmatpush1.bf16.msra.mxu0 %v7141_v13 }
 0x6aa   :  { %7821 = vmatprep.subr.bf16.mxu1 %v7152_v4  ;;  %7944 = vmatprep.subr.bf16.mxu0 %v7154_v19 }
 0x6ad   :  { %7822 = vmatpush1.bf16.msra.mxu1 %v7151_v14  ;;  %7945 = vmatpush1.bf16.msra.mxu0 %v7153_v58 }
 0x6ae   :  { %7823 = vmatprep.subr.bf16.mxu1 %v7164_v8  ;;  %7946 = vmatprep.subr.bf16.mxu0 %v7166_v60 }
 0x6b1   :  { %7824 = vmatpush1.bf16.msra.mxu1 %v7163_v61  ;;  %7947 = vmatpush1.bf16.msra.mxu0 %v7165_v17  ;;  %v8117_v61 = vadd.s32 8, %v8116_v31 }
 0x6b2   :  { %7825 = vmatprep.subr.bf16.mxu1 %v7176_v62  ;;  %7948 = vmatprep.subr.bf16.mxu0 %v7178_v9 }
 0x6b3   :  { %vm8128_vm7 = vcmp.eq.s32.totalorder %v8117_v61, %v8119_v46 }
 0x6b5   :  { %7826 = vmatpush1.bf16.msra.mxu1 %v7175_v0  ;;  %7949 = vmatpush1.bf16.msra.mxu0 %v7177_v1 }
 0x6b6   :  { %7827 = vmatprep.subr.bf16.mxu1 %v7188_v2  ;;  %7950 = vmatprep.subr.bf16.mxu0 %v7190_v45 }
 0x6b9   :  { %7828 = vmatpush1.bf16.msra.mxu1 %v7187_v3  ;;  %7951 = vmatpush1.bf16.msra.mxu0 %v7189_v18 }
 0x6ba   :  { %7829 = vmatprep.subr.bf16.mxu1 %v7200_v22  ;;  %7952 = vmatprep.subr.bf16.mxu0 %v7202_v27 }
 0x6bd   :  { %7830 = vmatpush1.bf16.msra.mxu1 %v7199_v29  ;;  %7953 = vmatpush1.bf16.msra.mxu0 %v7201_v30 }
 0x6be   :  { %7831 = vmatprep.subr.bf16.mxu1 %v7212_v33  ;;  %7954 = vmatprep.subr.bf16.mxu0 %v7214_v21 }
 0x6c1   :  { %7832 = vmatpush1.bf16.msra.mxu1 %v7211_v16  ;;  %7955 = vmatpush1.bf16.msra.mxu0 %v7213_v38 }
 0x6c4   :  { %7834 = vmatmul.mubr.bf16.vlgmr.msra.gmra.mrb[80].mxu1 %v11001_v36  ;;  %7957 = vmatmul.mubr.bf16.vlgmr.msra.gmra.mrb[84].mxu0 %v11001_v36 }
 0x6c5   :  { %8029 = vmatprep.mubr.f32.mxu1 %v11035_v12 }
 0x6d7   :  { %v7589_v39 = vpop.f32.mrb[76].mxu1  ;;  %v7712_v34 = vpop.f32.mrb[80].mxu0 }
 0x6d8   :  { %v7591_v59 = vpop.f32.mrb[77].mxu1  ;;  %v7714_v52 = vpop.f32.mrb[81].mxu0 }
 0x6d9   :  { %v7593_v6 = vpop.f32.mrb[78].mxu1  ;;  %v7716_v41 = vpop.f32.mrb[82].mxu0 }
 0x6da   :  { %v7594_v42 = vpop.f32.mrb[79].mxu1  ;;  %v7717_v20 = vpop.f32.mrb[83].mxu0 }
 0x797   :  { %v7835_v43 = vpop.f32.mrb[80].mxu1  ;;  %v7958_v37 = vpop.f32.mrb[84].mxu0 }
 0x798   :  { %v9121_v63 = vpack.c.bf16 %v7589_v39, %v7835_v43  ;;  %v9125_v47 = vpack.c.bf16 %v7712_v34, %v7958_v37  ;;  %v7837_v54 = vpop.f32.mrb[81].mxu1  ;;  %v7960_v51 = vpop.f32.mrb[85].mxu0 }
 0x799   :  { %v9119_v7 = vpack.c.bf16 %v7591_v59, %v7837_v54  ;;  %v9123_v50 = vpack.c.bf16 %v7714_v52, %v7960_v51  ;;  %v7839_v48 = vpop.f32.mrb[82].mxu1  ;;  %v7962_v36 = vpop.f32.mrb[86].mxu0 }
 0x79a   :  { %v7840_v49 = vpop.f32.mrb[83].mxu1  ;;  %v7963_v12 = vpop.f32.mrb[87].mxu0 }
 0x79b   :  { %9120 = vmatprep.subr.bf16.mxu1 %v9119_v7 }
 0x79c   :  { %9122 = vmatpush1.bf16.xpose.msra.mxu1 %v9121_v63 }
 0x79d   :  { %9124 = vmatprep.subr.bf16.mxu1 %v9123_v50 }
 0x7a3   :  { %8030 = vmatmul.mubr.f32.vlgmr.msra.gmra.mrb[84].mxu1 %v11031_v11 }
 0x7a4   :  { %8034 = vmatprep.mubr.f32.mxu1 %v11043_v44  ;;  %9126 = vmatpush1.bf16.xpose.msra.mxu1 %v9125_v47 }
 0x7a7   :  { %8035 = vmatmul.mubr.f32.gmra.mrb[86].mxu1 %v11039_v25 }
 0x7a8   :  { %8104 = vmatprep.mubr.f32.mxu1 %v11037_v24 }
 0x7ab   :  { %8105 = vmatmul.mubr.f32.vlgmr.msra.gmra.mrb[84].mxu1 %v11033_v15  ;;  %v10678_v15 = vmov 0.0  }
 0x7ac   :  { %8109 = vmatprep.mubr.f32.mxu1 %v11045_v32  ;;  %v9116_v5 = vsel %vm8127_vm5, 1.0, %v10678_v15  ;;  %v9117_v17 = vsel %vm8128_vm7, 1.0, %v10678_v15 }
 0x7af   :  { %8110 = vmatmul.mubr.f32.gmra.mrb[86].mxu1 %v11041_v56 }
 0x87e   :  { %v8106_v11 = vpop.f32.mrb[84].mxu1 }
 0x87f   :  { %v8133_v44 = vsel %vm8125_vm3, %v8106_v11, -1e+30  ;;  %v8108_v25 = vpop.f32.mrb[85].mxu1  ;;  %v8135_v28 = vmul.f32 %v9116_v5, %v8106_v11 }
 0x880   :  { %v8144_v24 = vsel %vm8137_vm4, %v8133_v44, -inf }
 0x881   :  { %8145 = vmax.xlane.f32.xlu0 %v8144_v24  ;;  %v8138_v40 = vsel %vm8137_vm4, %v8135_v28, 0.0 }
 0x882   :  { %v8111_v32 = vpop.f32.mrb[86].mxu1 }
 0x883   :  { %v8134_v56 = vsel %vm8126_vm6, %v8111_v32, -1e+30  ;;  %v8113_v10 = vpop.f32.mrb[87].mxu1  ;;  %v8136_v62 = vmul.f32 %v9117_v17, %v8111_v32 }
 0x884   :  { %v8147_v35 = vsel %vm8137_vm4, %v8134_v56, -inf }
 0x885   :  { %8148 = vmax.xlane.f32.xlu0 %v8147_v35  ;;  %v8185_v53 = vmax.f32 %v8144_v24, %v8147_v35  ;;  %v8141_v45 = vsel %vm8137_vm4, %v8136_v62, 0.0 }
 0x886   :  { %v8178_v22 = vadd.f32 %v8141_v45, %v8138_v40 }
 0x887   :  { %v8186_v55 = vrot.slane %v8185_v53, 4 }
 0x888   :  { %v8179_v30 = vrot.slane %v8178_v22, 4 }
 0x889   :  { %v8187_v26 = vmax.f32 %v8185_v53, %v8186_v55  ;;  %8139 = vadd.xlane.f32.xlu0 %v8138_v40 }
 0x88a   :  { %v8180_v16 = vadd.f32 %v8179_v30, %v8178_v22 }
 0x88b   :  { %v8188_v57 = vrot.slane %v8187_v26, 2 }
 0x88c   :  { %v8181_v39 = vrot.slane %v8180_v16, 2 }
 0x88d   :  { %v8189_v13 = vmax.f32 %v8187_v26, %v8188_v57 }
 0x88e   :  { %v8182_v34 = vadd.f32 %v8181_v39, %v8180_v16 }
 0x88f   :  { %v8190_v4 = vrot.slane %v8189_v13, 1 }
 0x890   :  { %v8183_v59 = vrot.slane %v8182_v34, 1 }
 0x891   :  { %v8191_v19 = vmax.f32 %v8189_v13, %v8190_v4 }
 0x892   :  { %v8184_v41 = vadd.f32 %v8183_v59, %v8182_v34 }
 0x893   :  { %v8192_v14 = vsub.f32 %v8133_v44, %v8191_v19  ;;  %v8193_v58 = vsub.f32 %v8134_v56, %v8191_v19 }
 0x895   :  { %v8194_v8 = vmul.f32 1.442695, %v8192_v14  ;;  %v8196_v60 = vmul.f32 1.442695, %v8193_v58 }
 0x897   :  { %10600 = vpow2.f32 %v8194_v8 }
 0x898   :  { %10602 = vpow2.f32 %v8196_v60 }
 0x8a1   :  { %v10601_v9 = vpop.eup %10600 }
 0x8a2   :  { %v10603_v0 = vpop.eup %10602  ;;  %v8198_v1 = vsel %vm8137_vm4, %v10601_v9, 0.0 }
 0x8a3   :  { %v8199_v2 = vsel %vm8137_vm4, %v10603_v0, 0.0 }
 0x8a4   :  { %v8200_v3 = vadd.f32 %v8199_v2, %v8198_v1 }
 0x8a6   :  { %v8201_v18 = vrot.slane %v8200_v3, 4 }
 0x8a8   :  { %v8202_v27 = vadd.f32 %v8201_v18, %v8200_v3 }
 0x8aa   :  { %v8203_v29 = vrot.slane %v8202_v27, 2 }
 0x8ac   :  { %v8204_v33 = vadd.f32 %v8203_v29, %v8202_v27 }
 0x8ae   :  { %v8205_v21 = vrot.slane %v8204_v33, 1 }
 0x8b0   :  { %v8206_v38 = vadd.f32 %v8205_v21, %v8204_v33 }
 0x8b2   :  { %10604 = vlog2.f32 %v8206_v38 }
 0x8bc   :  { %v10605_v52 = vpop.eup %10604 }
 0x8bd   :  { %v8208_v6 = vmul.f32 0.6931472, %v10605_v52 }
 0x8bf   :  { %v8209_v42 = vadd.f32 %v8208_v6, %v8191_v19 }
 0x8c1   :  { %v8210_v20 = vsub.f32 %v8184_v41, %v8209_v42 }
 0x8c3   :  { %v8211_v43 = vsel %vm8137_vm4, %v8210_v20, 0.0 }
 0x8c4   :  { %8212 = vadd.xlane.f32.xlu0 %v8211_v43 }
 0x90e   :  { %v8146_v37 = vpop.xlane.xlu0 %8145 }
 0x90f   :  { %v8150_v63 = vsub.f32 %v8133_v44, %v8146_v37 }
 0x911   :  { %v8152_v47 = vmul.f32 1.442695, %v8150_v63 }
 0x912   :  { %v8149_v54 = vpop.xlane.xlu0 %8148 }
 0x913   :  { %10606 = vpow2.f32 %v8152_v47  ;;  %v8151_v51 = vsub.f32 %v8134_v56, %v8149_v54 }
 0x915   :  { %v8154_v7 = vmul.f32 1.442695, %v8151_v51 }
 0x916   :  { %v8140_v15 = vpop.xlane.xlu0 %8139 }
 0x917   :  { %10608 = vpow2.f32 %v8154_v7 }
 0x91d   :  { %v10607_v50 = vpop.eup %10606 }
 0x91e   :  { %v8156_v48 = vsel %vm8137_vm4, %v10607_v50, 0.0 }
 0x91f   :  { %8157 = vadd.xlane.f32.xlu1 %v8156_v48 }
 0x921   :  { %v10609_v36 = vpop.eup %10608 }
 0x922   :  { %v8159_v49 = vsel %vm8137_vm4, %v10609_v36, 0.0 }
 0x923   :  { %8160 = vadd.xlane.f32.xlu1 %v8159_v49 }
 0x927   :  { %8142 = vadd.xlane.f32.xlu1 %v8141_v45 }
 0x951   :  { %v8213_v26 = vpop.xlane.xlu0 %8212 }
 0x952   :  { %v8214_v13 = vsub.f32 0.0, %v8213_v26 }
 0x9ac   :  { %v8158_v12 = vpop.xlane.xlu1 %8157 }
 0x9ad   :  { %10610 = vlog2.f32 %v8158_v12 }
 0x9b0   :  { %v8161_v23 = vpop.xlane.xlu1 %8160 }
 0x9b1   :  { %10612 = vlog2.f32 %v8161_v23 }
 0x9b4   :  { %v8143_v5 = vpop.xlane.xlu1 %8142 }
 0x9b7   :  { %v10611_v46 = vpop.eup %10610 }
 0x9b8   :  { %v8163_v31 = vmul.f32 0.6931472, %v10611_v46 }
 0x9ba   :  { %v8166_v44 = vadd.f32 %v8163_v31, %v8146_v37 }
 0x9bb   :  { %v10613_v11 = vpop.eup %10612 }
 0x9bc   :  { %v8165_v25 = vmul.f32 0.6931472, %v10613_v11  ;;  %v8168_v32 = vsub.f32 %v8140_v15, %v8166_v44 }
 0x9be   :  { %v8167_v24 = vadd.f32 %v8165_v25, %v8149_v54 }
 0x9c0   :  { %v8169_v56 = vsub.f32 %v8143_v5, %v8167_v24 }
 0x9c2   :  { %v8170_v10 = vadd.f32 %v8169_v56, %v8168_v32 }
 0x9c4   :  { %v8171_v28 = vrot.slane %v8170_v10, 4 }
 0x9c6   :  { %v8172_v35 = vadd.f32 %v8171_v28, %v8170_v10 }
 0x9c8   :  { %v8173_v53 = vrot.slane %v8172_v35, 2 }
 0x9ca   :  { %v8174_v55 = vadd.f32 %v8173_v53, %v8172_v35 }
 0x9cc   :  { %v8175_v40 = vrot.slane %v8174_v55, 1 }
 0x9ce   :  { %v8176_v57 = vadd.f32 %v8175_v40, %v8174_v55 }
 0x9d0   :  { %v8177_v4 = vsub.f32 0.0, %v8176_v57 }
 0x9d2   :  { %v8215_v19 = vadd.f32 %v8214_v13, %v8177_v4 }
 0x9d4   :  { %8216 = vst [vmem:[#allocation7] sm:$0x1] %v8215_v19 }
 0x9d5   :  { %10647 = shalt.err (!%p10644_p12)
}
 0x9d6   :  { %s10648_s22 = scalar_lea.hbm %s11089_s3, 16 }
 0x9d7   :  { %p10649_p13 = scmp.ne.s32.totalorder %s11089_s3, %s10648_s22  ;;  %p10652_p0 = scmp.lt.u32.totalorder %s10648_s22, %s11089_s3 }
 0x9d9   :  { %p10654_p1 = pnand %p10652_p0, %p10649_p13 }
 0x9db   :  { %10657 = shalt.err (!%p10654_p1)
}
 0x9dc   :  { %8226 = dma.vmem_to_hbm [thread:$0]  %s8224_s17, 16, %s11089_s3, [#allocation6]  }
 0x9dd   :  { %10662 = dma.done.wait [#allocation6], 16  }
 0x9de   :  { %10663 = vsyncadd [#allocation6], 4294967280 }
 0x9df   :  { %8230 = vsyncpa [#allocation5], 1 }
 0x9e0   :  { %8231 = vsyncpa [#allocation6], 1 }
 0x9e1   :  { %8232 = vsyncmov [#allocation3] }
 0x9e4   :  { %s8233_s29 = vpop.sfrf %8232 }
 0x9e5   :  { %p9118_p2 = scmp.ne.s32.totalorder %s8233_s29, 0 }
 0x9e7   :  { %8237 = shalt.err (%p9118_p2)  }

</bundles_post_ra>
